<compile_context>
chip_gen: v5e
topology: v5e:2x2
jax: 0.10.0
libtpu: 0.0.40
codegen_flags: <defaults>
</compile_context>

<pallas_src>
import jax
import jax.numpy as jnp
import numpy as np
from jax import lax
from jax.experimental import pallas as pl
from jax.experimental.pallas import tpu as pltpu

D_A, D_V, D_CAT = 1024, 512, 1536
N_OUT = 1024                   # fc_a/fc_v out_features
NB_SPACE_NODE = 1024           # must equal embedding width for fc_out to typecheck
NB_CLASSES = 2
BN_EPS = 1e-5
N_SPLIT = 2                    # output-feature split (2 TCs on v7x; pipelined elsewhere)


def _bn_train(v, gamma, beta):
    """BatchNorm1d training forward: per-feature batch mean / biased var."""
    mu = jnp.mean(v, axis=0, keepdims=True)
    var = jnp.mean((v - mu) ** 2, axis=0, keepdims=True)
    return (v - mu) * lax.rsqrt(var + BN_EPS) * gamma + beta


def aff_kernel(x_ref,                 # [B, 1536] f32
               w_ref,                 # [1536, NH] bf16   fused fc_a|fc_v weight half
               ba_ref, bv_ref,        # [1, NH] f32       fc_a / fc_v bias halves
               g_av_ref, b_av_ref,    # [1, 1536] f32     bn_a|bn_v gamma/beta (K axis)
               gc_ref, btc_ref,       # [1, 1536] f32     bn_cat gamma/beta
               watt_d_ref,            # [1, 1536] f32     attention weight diff (row0-row1)
               batt_d_ref,            # [1, 1] f32        attention bias diff
               wout_ref,              # [2, NH] f32       fc_out weight half (transposed)
               ga2_ref, bta2_ref,     # [1, NH] f32       bn_a gamma/beta half (2nd BN)
               emb_ref, out_ref):     # [B, NH], [1, B, 2]
    x = x_ref[...]                                        # [B, 1536]
    B = x.shape[0]

    # Shared BatchNorm1d training statistics over the full 1536-wide input
    # (per-column stats of the 1024/512 slices are identical to slices of these).
    mu = jnp.mean(x, axis=0, keepdims=True)
    var = jnp.mean((x - mu) ** 2, axis=0, keepdims=True)
    xn = (x - mu) * lax.rsqrt(var + BN_EPS)               # [B, 1536]

    # bn_cat -> attention score first, so xc_n dies before the fc input goes live.
    # 2-class softmax == sigmoid(score0 - score1); detach is a forward no-op.
    xc_n = xn * gc_ref[...] + btc_ref[...]
    d = jnp.sum(xc_n * watt_d_ref[...], axis=1, keepdims=True) + batt_d_ref[...]
    score_a = 1.0 / (1.0 + jnp.exp(-d))                   # [B, 1]
    score_b = 1.0 - score_a

    # bn_a | bn_v affine (fused over K), pre-scaled by the attention scores so the
    # two Linear layers collapse into a single MXU matmul.
    col = lax.broadcasted_iota(jnp.int32, (B, D_CAT), 1)
    scale = jnp.where(col < D_A, score_a, score_b)        # [B, 1536]
    x_av = (xn * g_av_ref[...] + b_av_ref[...]) * scale

    # Fused fc_a/fc_v (bf16 weights, f32 accumulation); bias folded with the scores.
    e_p = jnp.dot(x_av.astype(jnp.bfloat16), w_ref[...],
                  preferred_element_type=jnp.float32)
    e_p = e_p + ba_ref[...] * score_a + bv_ref[...] * score_b   # [B, NH]

    # Dropout(0.5): identity (see TODO at top of file).

    # Second bn_a(E_p) with fresh batch stats; stats are per-feature so the
    # output-feature split is safe.
    mu2 = jnp.mean(e_p, axis=0, keepdims=True)
    var2 = jnp.mean((e_p - mu2) ** 2, axis=0, keepdims=True)
    e_p = (e_p - mu2) * lax.rsqrt(var2 + BN_EPS) * ga2_ref[...] + bta2_ref[...]

    emb_ref[...] = e_p

    # fc_out partial contribution of this output-feature half (lane-dense VPU
    # multiply + lane reduction; bias added once in the wrapper).
    o0 = jnp.sum(e_p * wout_ref[0:1, :], axis=1, keepdims=True)
    o1 = jnp.sum(e_p * wout_ref[1:2, :], axis=1, keepdims=True)
    ocol = lax.broadcasted_iota(jnp.int32, (B, NB_CLASSES), 1)
    out_ref[...] = jnp.where(ocol == 0, o0, o1)[None]


def attention_feature_fusion(x, p):
    """Returns (embedding [B,1024], output [B,nb_classes]) — training forward."""
    B = x.shape[0]
    NH = N_OUT // N_SPLIT

    in_specs = [
        pl.BlockSpec((B, D_CAT), lambda j: (0, 0)),          # x (same block both steps)
        pl.BlockSpec((D_CAT, NH), lambda j: (0, j)),         # fused bf16 weight half
        pl.BlockSpec((1, NH), lambda j: (0, j)),             # ba half
        pl.BlockSpec((1, NH), lambda j: (0, j)),             # bv half
        pl.BlockSpec((1, D_CAT), lambda j: (0, 0)),          # gamma_a|v (K axis)
        pl.BlockSpec((1, D_CAT), lambda j: (0, 0)),          # beta_a|v
        pl.BlockSpec((1, D_CAT), lambda j: (0, 0)),          # gamma_cat
        pl.BlockSpec((1, D_CAT), lambda j: (0, 0)),          # beta_cat
        pl.BlockSpec((1, D_CAT), lambda j: (0, 0)),          # attention weight diff
        pl.BlockSpec((1, 1), lambda j: (0, 0)),              # attention bias diff
        pl.BlockSpec((NB_CLASSES, NH), lambda j: (0, j)),    # fc_out weight half
        pl.BlockSpec((1, NH), lambda j: (0, j)),             # bn_a gamma half (2nd BN)
        pl.BlockSpec((1, NH), lambda j: (0, j)),             # bn_a beta half (2nd BN)
    ]
    out_specs = (
        pl.BlockSpec((B, NH), lambda j: (0, j)),                   # embedding half
        pl.BlockSpec((1, B, NB_CLASSES), lambda j: (j, 0, 0)),     # partial logits
    )
    out_shape = (
        jax.ShapeDtypeStruct((B, N_OUT), jnp.float32),
        jax.ShapeDtypeStruct((N_SPLIT, B, NB_CLASSES), jnp.float32),
    )

    # Advisory cost: ~3 MiB of weights dominates; compute is ~25 MFLOP at B=8.
    cost = pl.CostEstimate(
        flops=2 * B * D_CAT * N_OUT + 40 * B * D_CAT,
        transcendentals=8 * B,
        bytes_accessed=(D_CAT * N_OUT * 2 + B * D_CAT * 4 + B * N_OUT * 4
                        + 10 * D_CAT * 4 + 6 * N_OUT * 4))

    emb, out_part = pl.pallas_call(
        aff_kernel,
        grid=(N_SPLIT,),
        in_specs=in_specs,
        out_specs=out_specs,
        out_shape=out_shape,
        compiler_params=pltpu.CompilerParams(
            dimension_semantics=("parallel",)),
        cost_estimate=cost,
    )(x, p['w_av'], p['ba'], p['bv'], p['g_av'], p['b_av'],
      p['gc'], p['btc'], p['watt_diff'], p['batt_diff'],
      p['wout_t'], p['ga'], p['bta'])

    out = jnp.sum(out_part, axis=0) + p['bout'][None, :]
    return emb, out


def reference(x, p):
    """Pure-JAX reference of the same training forward.

    fc_a/fc_v weights are bf16, and the (detached) attention scale is applied to
    the activations before the bf16 cast — mirroring the kernel's fused matmul.
    In exact arithmetic this is identical to the PyTorch ordering.
    """
    x_a, x_v = x[:, :D_A], x[:, D_A:]
    xa_n = _bn_train(x_a, p['ga'], p['bta'])
    xv_n = _bn_train(x_v, p['gv'], p['btv'])
    xc_n = _bn_train(x, p['gc'], p['btc'])
    score = xc_n @ p['watt'] + p['batt'][None, :]
    att = jax.nn.softmax(score, axis=1)
    sa, sb = att[:, 0:1], att[:, 1:2]
    wa_bf16, wv_bf16 = p['w_av'][:D_A], p['w_av'][D_A:]
    x_A = jnp.dot((xa_n * sa).astype(jnp.bfloat16), wa_bf16,
                  preferred_element_type=jnp.float32) + p['ba'] * sa
    x_V = jnp.dot((xv_n * sb).astype(jnp.bfloat16), wv_bf16,
                  preferred_element_type=jnp.float32) + p['bv'] * sb
    # Dropout(0.5): identity (matches the kernel).
    e_p = x_A + x_V
    e_p = _bn_train(e_p, p['ga'], p['bta'])
    out = e_p @ p['wout'] + p['bout'][None, :]
    return e_p, out


def init_params(key):
    """Deterministic PyTorch-style (uniform ±1/sqrt(fan_in)) Linear init."""
    def linear(k, fan_in, fan_out):
        kw, kb = jax.random.split(k)
        bound = 1.0 / float(np.sqrt(fan_in))
        w = jax.random.uniform(kw, (fan_in, fan_out), jnp.float32, -bound, bound)
        b = jax.random.uniform(kb, (fan_out,), jnp.float32, -bound, bound)
        return w, b

    ks = jax.random.split(key, 8)
    wa, ba = linear(ks[0], D_A, N_OUT)
    wv, bv = linear(ks[1], D_V, N_OUT)
    watt, batt = linear(ks[2], D_CAT, 2)
    wout, bout = linear(ks[3], NB_SPACE_NODE, NB_CLASSES)
    ga = 1.0 + 0.1 * jax.random.normal(ks[4], (1, D_A), jnp.float32)
    bta = 0.1 * jax.random.normal(ks[5], (1, D_A), jnp.float32)
    gv = 1.0 + 0.1 * jax.random.normal(ks[6], (1, D_V), jnp.float32)
    btv = 0.1 * jax.random.normal(ks[7], (1, D_V), jnp.float32)
    kc1, kc2 = jax.random.split(jax.random.fold_in(key, 123))
    gc = 1.0 + 0.1 * jax.random.normal(kc1, (1, D_CAT), jnp.float32)
    btc = 0.1 * jax.random.normal(kc2, (1, D_CAT), jnp.float32)

    # Kernel-side prearranged parameters.
    w_av = jnp.concatenate([wa, wv], axis=0).astype(jnp.bfloat16)   # [1536, 1024]
    return dict(
        w_av=w_av,
        ba=ba[None, :], bv=bv[None, :],
        g_av=jnp.concatenate([ga, gv], axis=1),                     # [1, 1536]
        b_av=jnp.concatenate([bta, btv], axis=1),                   # [1, 1536]
        gc=gc, btc=btc,
        watt=watt, batt=batt,
        watt_diff=(watt[:, 0] - watt[:, 1])[None, :],               # [1, 1536]
        batt_diff=jnp.reshape(batt[0] - batt[1], (1, 1)),           # [1, 1]
        wout=wout, wout_t=jnp.asarray(wout.T), bout=bout,           # [2,1024], (2,)
        ga=ga, bta=bta, gv=gv, btv=btv)


if __name__ == "__main__":
    key = jax.random.PRNGKey(0)
    kx, kp = jax.random.split(key)
    B = 8
    x = jax.random.normal(kx, (B, D_CAT), jnp.float32)
    params = init_params(kp)

    emb, out = attention_feature_fusion(x, params)
    jax.block_until_ready((emb, out))

    emb_r, out_r = reference(x, params)
    np.testing.assert_allclose(np.asarray(emb), np.asarray(emb_r), atol=5e-3, rtol=5e-3)
    np.testing.assert_allclose(np.asarray(out), np.asarray(out_r), atol=5e-3, rtol=5e-3)

    print("KERNEL_OK")
</pallas_src>

<mosaic_0001>
module attributes {stable_mosaic.version = 11 : i64} {
  func.func @aff_kernel(%arg0: i32, %arg1: memref<8x1536xf32, #tpu.memory_space<vmem>>, %arg2: memref<1536x512xbf16, #tpu.memory_space<vmem>>, %arg3: memref<1x512xf32, #tpu.memory_space<vmem>>, %arg4: memref<1x512xf32, #tpu.memory_space<vmem>>, %arg5: memref<1x1536xf32, #tpu.memory_space<vmem>>, %arg6: memref<1x1536xf32, #tpu.memory_space<vmem>>, %arg7: memref<1x1536xf32, #tpu.memory_space<vmem>>, %arg8: memref<1x1536xf32, #tpu.memory_space<vmem>>, %arg9: memref<1x1536xf32, #tpu.memory_space<vmem>>, %arg10: memref<1x1xf32, #tpu.memory_space<vmem>>, %arg11: memref<2x512xf32, #tpu.memory_space<vmem>>, %arg12: memref<1x512xf32, #tpu.memory_space<vmem>>, %arg13: memref<1x512xf32, #tpu.memory_space<vmem>>, %arg14: memref<8x512xf32, #tpu.memory_space<vmem>>, %arg15: memref<1x8x2xf32, #tpu.memory_space<vmem>>) attributes {dimension_semantics = [#tpu.dimension_semantics<parallel>], iteration_bounds = array<i64: 2>, scalar_prefetch = 0 : i64, scratch_operands = 0 : i64, tpu.core_type = #tpu.core_type<tc>, window_params = [{pipeline_mode = #tpu.pipeline_mode<synchronous>, transform_indices = @transform_0, window_bounds = array<i64: 8, 1536>}, {transform_indices = @transform_1, window_bounds = array<i64: 1536, 512>}, {transform_indices = @transform_2, window_bounds = array<i64: 1, 512>}, {transform_indices = @transform_3, window_bounds = array<i64: 1, 512>}, {pipeline_mode = #tpu.pipeline_mode<synchronous>, transform_indices = @transform_4, window_bounds = array<i64: 1, 1536>}, {pipeline_mode = #tpu.pipeline_mode<synchronous>, transform_indices = @transform_5, window_bounds = array<i64: 1, 1536>}, {pipeline_mode = #tpu.pipeline_mode<synchronous>, transform_indices = @transform_6, window_bounds = array<i64: 1, 1536>}, {pipeline_mode = #tpu.pipeline_mode<synchronous>, transform_indices = @transform_7, window_bounds = array<i64: 1, 1536>}, {pipeline_mode = #tpu.pipeline_mode<synchronous>, transform_indices = @transform_8, window_bounds = array<i64: 1, 1536>}, {pipeline_mode = #tpu.pipeline_mode<synchronous>, transform_indices = @transform_9, window_bounds = array<i64: 1, 1>}, {transform_indices = @transform_10, window_bounds = array<i64: 2, 512>}, {transform_indices = @transform_11, window_bounds = array<i64: 1, 512>}, {transform_indices = @transform_12, window_bounds = array<i64: 1, 512>}, {transform_indices = @transform_13, window_bounds = array<i64: 8, 512>}, {transform_indices = @transform_14, window_bounds = array<i64: 1, 8, 2>}]} {
    %c0 = arith.constant 0 : index
    %c0_0 = arith.constant 0 : index
    %0 = vector.load %arg1[%c0, %c0_0] : memref<8x1536xf32, #tpu.memory_space<vmem>>, vector<8x1536xf32>
    %cst = arith.constant dense<0.000000e+00> : vector<1536xf32>
    %1 = vector.multi_reduction <add>, %0, %cst [0] : vector<8x1536xf32> to vector<1536xf32>
    %2 = vector.shape_cast %1 : vector<1536xf32> to vector<1x1536xf32>
    %cst_1 = arith.constant 8.000000e+00 : f32
    %3 = vector.broadcast %cst_1 : f32 to vector<1x1536xf32>
    %4 = arith.divf %2, %3 : vector<1x1536xf32>
    %5 = vector.broadcast %4 : vector<1x1536xf32> to vector<8x1536xf32>
    %6 = arith.subf %0, %5 : vector<8x1536xf32>
    %7 = arith.mulf %6, %6 : vector<8x1536xf32>
    %cst_2 = arith.constant dense<0.000000e+00> : vector<1536xf32>
    %8 = vector.multi_reduction <add>, %7, %cst_2 [0] : vector<8x1536xf32> to vector<1536xf32>
    %9 = vector.shape_cast %8 : vector<1536xf32> to vector<1x1536xf32>
    %cst_3 = arith.constant 8.000000e+00 : f32
    %10 = vector.broadcast %cst_3 : f32 to vector<1x1536xf32>
    %11 = arith.divf %9, %10 : vector<1x1536xf32>
    %12 = vector.broadcast %4 : vector<1x1536xf32> to vector<8x1536xf32>
    %13 = arith.subf %0, %12 : vector<8x1536xf32>
    %cst_4 = arith.constant 9.99999974E-6 : f32
    %14 = vector.broadcast %cst_4 : f32 to vector<1x1536xf32>
    %15 = arith.addf %11, %14 : vector<1x1536xf32>
    %16 = math.rsqrt %15 : vector<1x1536xf32>
    %17 = vector.broadcast %16 : vector<1x1536xf32> to vector<8x1536xf32>
    %18 = arith.mulf %13, %17 : vector<8x1536xf32>
    %c0_5 = arith.constant 0 : index
    %c0_6 = arith.constant 0 : index
    %19 = vector.load %arg7[%c0_5, %c0_6] : memref<1x1536xf32, #tpu.memory_space<vmem>>, vector<1x1536xf32>
    %20 = vector.broadcast %19 : vector<1x1536xf32> to vector<8x1536xf32>
    %21 = arith.mulf %18, %20 : vector<8x1536xf32>
    %c0_7 = arith.constant 0 : index
    %c0_8 = arith.constant 0 : index
    %22 = vector.load %arg8[%c0_7, %c0_8] : memref<1x1536xf32, #tpu.memory_space<vmem>>, vector<1x1536xf32>
    %23 = vector.broadcast %22 : vector<1x1536xf32> to vector<8x1536xf32>
    %24 = arith.addf %21, %23 : vector<8x1536xf32>
    %c0_9 = arith.constant 0 : index
    %c0_10 = arith.constant 0 : index
    %25 = vector.load %arg9[%c0_9, %c0_10] : memref<1x1536xf32, #tpu.memory_space<vmem>>, vector<1x1536xf32>
    %26 = vector.broadcast %25 : vector<1x1536xf32> to vector<8x1536xf32>
    %27 = arith.mulf %24, %26 : vector<8x1536xf32>
    %cst_11 = arith.constant dense<0.000000e+00> : vector<8xf32>
    %28 = vector.multi_reduction <add>, %27, %cst_11 [1] : vector<8x1536xf32> to vector<8xf32>
    %29 = vector.shape_cast %28 : vector<8xf32> to vector<8x1xf32>
    %c0_12 = arith.constant 0 : index
    %c0_13 = arith.constant 0 : index
    %30 = vector.load %arg10[%c0_12, %c0_13] : memref<1x1xf32, #tpu.memory_space<vmem>>, vector<1x1xf32>
    %31 = vector.broadcast %30 : vector<1x1xf32> to vector<8x1xf32>
    %32 = arith.addf %29, %31 : vector<8x1xf32>
    %cst_14 = arith.constant 0.000000e+00 : f32
    %33 = vector.broadcast %cst_14 : f32 to vector<8x1xf32>
    %34 = arith.subf %33, %32 : vector<8x1xf32>
    %35 = math.exp %34 : vector<8x1xf32>
    %cst_15 = arith.constant 1.000000e+00 : f32
    %36 = vector.broadcast %cst_15 : f32 to vector<8x1xf32>
    %37 = arith.addf %36, %35 : vector<8x1xf32>
    %cst_16 = arith.constant 1.000000e+00 : f32
    %38 = vector.broadcast %cst_16 : f32 to vector<8x1xf32>
    %39 = arith.divf %38, %37 : vector<8x1xf32>
    %cst_17 = arith.constant 1.000000e+00 : f32
    %40 = vector.broadcast %cst_17 : f32 to vector<8x1xf32>
    %41 = arith.subf %40, %39 : vector<8x1xf32>
    %42 = tpu.iota {dimensions = array<i32: 1>} : vector<8x1536xi32>
    %c1024_i32 = arith.constant 1024 : i32
    %43 = vector.broadcast %c1024_i32 : i32 to vector<8x1536xi32>
    %44 = arith.cmpi slt, %42, %43 : vector<8x1536xi32>
    %45 = vector.shape_cast %39 : vector<8x1xf32> to vector<8x1xf32>
    %46 = vector.broadcast %45 : vector<8x1xf32> to vector<8x1536xf32>
    %47 = vector.shape_cast %41 : vector<8x1xf32> to vector<8x1xf32>
    %48 = vector.broadcast %47 : vector<8x1xf32> to vector<8x1536xf32>
    %49 = arith.select %44, %46, %48 : vector<8x1536xi1>, vector<8x1536xf32>
    %c0_18 = arith.constant 0 : index
    %c0_19 = arith.constant 0 : index
    %50 = vector.load %arg5[%c0_18, %c0_19] : memref<1x1536xf32, #tpu.memory_space<vmem>>, vector<1x1536xf32>
    %51 = vector.broadcast %50 : vector<1x1536xf32> to vector<8x1536xf32>
    %52 = arith.mulf %18, %51 : vector<8x1536xf32>
    %c0_20 = arith.constant 0 : index
    %c0_21 = arith.constant 0 : index
    %53 = vector.load %arg6[%c0_20, %c0_21] : memref<1x1536xf32, #tpu.memory_space<vmem>>, vector<1x1536xf32>
    %54 = vector.broadcast %53 : vector<1x1536xf32> to vector<8x1536xf32>
    %55 = arith.addf %52, %54 : vector<8x1536xf32>
    %56 = arith.mulf %55, %49 : vector<8x1536xf32>
    %57 = arith.truncf %56 : vector<8x1536xf32> to vector<8x1536xbf16>
    %c0_22 = arith.constant 0 : index
    %c0_23 = arith.constant 0 : index
    %58 = vector.load %arg2[%c0_22, %c0_23] : memref<1536x512xbf16, #tpu.memory_space<vmem>>, vector<1536x512xbf16>
    %cst_24 = arith.constant dense<0.000000e+00> : vector<8x512xf32>
    %59 = tpu.matmul %57, %58, %cst_24 {dimension_numbers = #tpu.dot_dimension_numbers<[1], [0], [0], [1], [0, 0, 1, 1], [], []>} : vector<8x1536xbf16>, vector<1536x512xbf16>, vector<8x512xf32> -> vector<8x512xf32>
    %c0_25 = arith.constant 0 : index
    %c0_26 = arith.constant 0 : index
    %60 = vector.load %arg3[%c0_25, %c0_26] : memref<1x512xf32, #tpu.memory_space<vmem>>, vector<1x512xf32>
    %61 = vector.broadcast %60 : vector<1x512xf32> to vector<8x512xf32>
    %62 = vector.broadcast %39 : vector<8x1xf32> to vector<8x512xf32>
    %63 = arith.mulf %61, %62 : vector<8x512xf32>
    %64 = arith.addf %59, %63 : vector<8x512xf32>
    %c0_27 = arith.constant 0 : index
    %c0_28 = arith.constant 0 : index
    %65 = vector.load %arg4[%c0_27, %c0_28] : memref<1x512xf32, #tpu.memory_space<vmem>>, vector<1x512xf32>
    %66 = vector.broadcast %65 : vector<1x512xf32> to vector<8x512xf32>
    %67 = vector.broadcast %41 : vector<8x1xf32> to vector<8x512xf32>
    %68 = arith.mulf %66, %67 : vector<8x512xf32>
    %69 = arith.addf %64, %68 : vector<8x512xf32>
    %cst_29 = arith.constant dense<0.000000e+00> : vector<512xf32>
    %70 = vector.multi_reduction <add>, %69, %cst_29 [0] : vector<8x512xf32> to vector<512xf32>
    %71 = vector.shape_cast %70 : vector<512xf32> to vector<1x512xf32>
    %cst_30 = arith.constant 8.000000e+00 : f32
    %72 = vector.broadcast %cst_30 : f32 to vector<1x512xf32>
    %73 = arith.divf %71, %72 : vector<1x512xf32>
    %74 = vector.broadcast %73 : vector<1x512xf32> to vector<8x512xf32>
    %75 = arith.subf %69, %74 : vector<8x512xf32>
    %76 = arith.mulf %75, %75 : vector<8x512xf32>
    %cst_31 = arith.constant dense<0.000000e+00> : vector<512xf32>
    %77 = vector.multi_reduction <add>, %76, %cst_31 [0] : vector<8x512xf32> to vector<512xf32>
    %78 = vector.shape_cast %77 : vector<512xf32> to vector<1x512xf32>
    %cst_32 = arith.constant 8.000000e+00 : f32
    %79 = vector.broadcast %cst_32 : f32 to vector<1x512xf32>
    %80 = arith.divf %78, %79 : vector<1x512xf32>
    %81 = vector.broadcast %73 : vector<1x512xf32> to vector<8x512xf32>
    %82 = arith.subf %69, %81 : vector<8x512xf32>
    %cst_33 = arith.constant 9.99999974E-6 : f32
    %83 = vector.broadcast %cst_33 : f32 to vector<1x512xf32>
    %84 = arith.addf %80, %83 : vector<1x512xf32>
    %85 = math.rsqrt %84 : vector<1x512xf32>
    %86 = vector.broadcast %85 : vector<1x512xf32> to vector<8x512xf32>
    %87 = arith.mulf %82, %86 : vector<8x512xf32>
    %c0_34 = arith.constant 0 : index
    %c0_35 = arith.constant 0 : index
    %88 = vector.load %arg12[%c0_34, %c0_35] : memref<1x512xf32, #tpu.memory_space<vmem>>, vector<1x512xf32>
    %89 = vector.broadcast %88 : vector<1x512xf32> to vector<8x512xf32>
    %90 = arith.mulf %87, %89 : vector<8x512xf32>
    %c0_36 = arith.constant 0 : index
    %c0_37 = arith.constant 0 : index
    %91 = vector.load %arg13[%c0_36, %c0_37] : memref<1x512xf32, #tpu.memory_space<vmem>>, vector<1x512xf32>
    %92 = vector.broadcast %91 : vector<1x512xf32> to vector<8x512xf32>
    %93 = arith.addf %90, %92 : vector<8x512xf32>
    %c0_38 = arith.constant 0 : index
    %c0_39 = arith.constant 0 : index
    %94 = vector.load %arg14[%c0_38, %c0_39] : memref<8x512xf32, #tpu.memory_space<vmem>>, vector<8x512xf32>
    tpu.vector_store %arg14[%c0_38, %c0_39], %93 {strides = array<i32>} : memref<8x512xf32, #tpu.memory_space<vmem>>, vector<8x512xf32>,
    %c0_40 = arith.constant 0 : index
    %c0_41 = arith.constant 0 : index
    %95 = vector.load %arg11[%c0_40, %c0_41] : memref<2x512xf32, #tpu.memory_space<vmem>>, vector<1x512xf32>
    %96 = vector.broadcast %95 : vector<1x512xf32> to vector<8x512xf32>
    %97 = arith.mulf %93, %96 : vector<8x512xf32>
    %cst_42 = arith.constant dense<0.000000e+00> : vector<8xf32>
    %98 = vector.multi_reduction <add>, %97, %cst_42 [1] : vector<8x512xf32> to vector<8xf32>
    %99 = vector.shape_cast %98 : vector<8xf32> to vector<8x1xf32>
    %c1 = arith.constant 1 : index
    %c0_43 = arith.constant 0 : index
    %100 = vector.load %arg11[%c1, %c0_43] : memref<2x512xf32, #tpu.memory_space<vmem>>, vector<1x512xf32>
    %101 = vector.broadcast %100 : vector<1x512xf32> to vector<8x512xf32>
    %102 = arith.mulf %93, %101 : vector<8x512xf32>
    %cst_44 = arith.constant dense<0.000000e+00> : vector<8xf32>
    %103 = vector.multi_reduction <add>, %102, %cst_44 [1] : vector<8x512xf32> to vector<8xf32>
    %104 = vector.shape_cast %103 : vector<8xf32> to vector<8x1xf32>
    %105 = tpu.iota {dimensions = array<i32: 1>} : vector<8x2xi32>
    %c0_i32 = arith.constant 0 : i32
    %106 = vector.broadcast %c0_i32 : i32 to vector<8x2xi32>
    %107 = arith.cmpi eq, %105, %106 : vector<8x2xi32>
    %108 = vector.shape_cast %99 : vector<8x1xf32> to vector<8x1xf32>
    %109 = vector.broadcast %108 : vector<8x1xf32> to vector<8x2xf32>
    %110 = vector.shape_cast %104 : vector<8x1xf32> to vector<8x1xf32>
    %111 = vector.broadcast %110 : vector<8x1xf32> to vector<8x2xf32>
    %112 = arith.select %107, %109, %111 : vector<8x2xi1>, vector<8x2xf32>
    %113 = vector.shape_cast %112 : vector<8x2xf32> to vector<1x8x2xf32>
    %c0_45 = arith.constant 0 : index
    %c0_46 = arith.constant 0 : index
    %c0_47 = arith.constant 0 : index
    %114 = vector.load %arg15[%c0_45, %c0_46, %c0_47] : memref<1x8x2xf32, #tpu.memory_space<vmem>>, vector<1x8x2xf32>
    tpu.vector_store %arg15[%c0_45, %c0_46, %c0_47], %113 {strides = array<i32>} : memref<1x8x2xf32, #tpu.memory_space<vmem>>, vector<1x8x2xf32>,
    return
  }
  func.func @transform_0(%arg0: i32) -> (i32, i32) {
    %c0_i32 = arith.constant 0 : i32
    %c0_i32_0 = arith.constant 0 : i32
    %c0_i32_1 = arith.constant 0 : i32
    return %c0_i32, %c0_i32_0 : i32, i32
  }
  func.func @transform_1(%arg0: i32) -> (i32, i32) {
    %c0_i32 = arith.constant 0 : i32
    %c0_i32_0 = arith.constant 0 : i32
    return %c0_i32, %arg0 : i32, i32
  }
  func.func @transform_2(%arg0: i32) -> (i32, i32) {
    %c0_i32 = arith.constant 0 : i32
    %c0_i32_0 = arith.constant 0 : i32
    return %c0_i32, %arg0 : i32, i32
  }
  func.func @transform_3(%arg0: i32) -> (i32, i32) {
    %c0_i32 = arith.constant 0 : i32
    %c0_i32_0 = arith.constant 0 : i32
    return %c0_i32, %arg0 : i32, i32
  }
  func.func @transform_4(%arg0: i32) -> (i32, i32) {
    %c0_i32 = arith.constant 0 : i32
    %c0_i32_0 = arith.constant 0 : i32
    %c0_i32_1 = arith.constant 0 : i32
    return %c0_i32, %c0_i32_0 : i32, i32
  }
  func.func @transform_5(%arg0: i32) -> (i32, i32) {
    %c0_i32 = arith.constant 0 : i32
    %c0_i32_0 = arith.constant 0 : i32
    %c0_i32_1 = arith.constant 0 : i32
    return %c0_i32, %c0_i32_0 : i32, i32
  }
  func.func @transform_6(%arg0: i32) -> (i32, i32) {
    %c0_i32 = arith.constant 0 : i32
    %c0_i32_0 = arith.constant 0 : i32
    %c0_i32_1 = arith.constant 0 : i32
    return %c0_i32, %c0_i32_0 : i32, i32
  }
  func.func @transform_7(%arg0: i32) -> (i32, i32) {
    %c0_i32 = arith.constant 0 : i32
    %c0_i32_0 = arith.constant 0 : i32
    %c0_i32_1 = arith.constant 0 : i32
    return %c0_i32, %c0_i32_0 : i32, i32
  }
  func.func @transform_8(%arg0: i32) -> (i32, i32) {
    %c0_i32 = arith.constant 0 : i32
    %c0_i32_0 = arith.constant 0 : i32
    %c0_i32_1 = arith.constant 0 : i32
    return %c0_i32, %c0_i32_0 : i32, i32
  }
  func.func @transform_9(%arg0: i32) -> (i32, i32) {
    %c0_i32 = arith.constant 0 : i32
    %c0_i32_0 = arith.constant 0 : i32
    %c0_i32_1 = arith.constant 0 : i32
    return %c0_i32, %c0_i32_0 : i32, i32
  }
  func.func @transform_10(%arg0: i32) -> (i32, i32) {
    %c0_i32 = arith.constant 0 : i32
    %c0_i32_0 = arith.constant 0 : i32
    return %c0_i32, %arg0 : i32, i32
  }
  func.func @transform_11(%arg0: i32) -> (i32, i32) {
    %c0_i32 = arith.constant 0 : i32
    %c0_i32_0 = arith.constant 0 : i32
    return %c0_i32, %arg0 : i32, i32
  }
  func.func @transform_12(%arg0: i32) -> (i32, i32) {
    %c0_i32 = arith.constant 0 : i32
    %c0_i32_0 = arith.constant 0 : i32
    return %c0_i32, %arg0 : i32, i32
  }
  func.func @transform_13(%arg0: i32) -> (i32, i32) {
    %c0_i32 = arith.constant 0 : i32
    %c0_i32_0 = arith.constant 0 : i32
    return %c0_i32, %arg0 : i32, i32
  }
  func.func @transform_14(%arg0: i32) -> (i32, i32, i32) {
    %c0_i32 = arith.constant 0 : i32
    %c0_i32_0 = arith.constant 0 : i32
    %c0_i32_1 = arith.constant 0 : i32
    return %arg0, %c0_i32, %c0_i32_0 : i32, i32, i32
  }
}

</mosaic_0001>

<bundles_post_ra>
// kernel: tpu_custom_call.1
= control target key start
LH: loop header
LB: loop body
LE: loop exit
PB: predicated region body
PF: predicated region fallthrough
CT: control target
= control target key end

     0   :  { %s9459_s0 = inlined_call_operand.hbm [shape: f32[8,1536], index: 0, kind: input, shape index: {}]   ;;  %s9460_s1 = inlined_call_operand.hbm [shape: bf16[1536,1024], index: 1, kind: input, shape index: {}]   ;;  %s9461_s2 = inlined_call_operand.hbm [shape: f32[1,1024], index: 2, kind: input, shape index: {}]   ;;  %s9462_s3 = inlined_call_operand.hbm [shape: f32[1,1024], index: 3, kind: input, shape index: {}]   ;;  %s9463_s4 = inlined_call_operand.hbm [shape: f32[1,1536], index: 4, kind: input, shape index: {}]   ;;  %s9464_s5 = inlined_call_operand.hbm [shape: f32[1,1536], index: 5, kind: input, shape index: {}]   ;;  %s9465_s6 = inlined_call_operand.hbm [shape: f32[1,1536], index: 6, kind: input, shape index: {}]   ;;  %s9466_s7 = inlined_call_operand.hbm [shape: f32[1,1536], index: 7, kind: input, shape index: {}]   ;;  %s9467_s8 = inlined_call_operand.hbm [shape: f32[1,1536], index: 8, kind: input, shape index: {}]   ;;  %s9468_s9 = inlined_call_operand.<no memory space> [shape: f32[1,1], index: 9, kind: input, shape index: {}]   ;;  %s9469_s10 = inlined_call_operand.hbm [shape: f32[2,1024], index: 10, kind: input, shape index: {}]   ;;  %s9470_s11 = inlined_call_operand.hbm [shape: f32[1,1024], index: 11, kind: input, shape index: {}]   ;;  %s9471_s12 = inlined_call_operand.hbm [shape: f32[1,1024], index: 12, kind: input, shape index: {}]   ;;  %s9472_s13 = inlined_call_operand.hbm [shape: f32[8,1024], index: 13, kind: output, shape index: {0}]   ;;  %s9473_s14 = inlined_call_operand.vmem [shape: f32[2,8,2], index: 14, kind: output, shape index: {1}]  }
   0x1   :  { %9492 = sst [smem:[#allocation43_spill]] %s9460_s1  ;;  %v20_v0 = vstv %s9468_s9 }
   0x2   :  { %9493 = sst [smem:[#allocation44_spill]] %s9462_s3  ;;  %21 = vst [vmem:[#allocation2] sm:$0x1] %v20_v0 }
   0x3   :  { %9494 = sst [smem:[#allocation45_spill]] %s9463_s4 }
   0x4   :  { %9495 = sst [smem:[#allocation46_spill]] %s9464_s5 }
   0x5   :  { %9496 = sst [smem:[#allocation47_spill]] %s9466_s7 }
   0x6   :  { %9497 = sst [smem:[#allocation48_spill]] %s9470_s11 }
   0x7   :  { %9498 = sst [smem:[#allocation49_spill]] %s9471_s12 }
   0x8   :  { %9499 = sst [smem:[#allocation50_spill]] %s9472_s13 }
   0x9   :  { %9500 = sst [smem:[#allocation51_spill]] %s9473_s14 }
   0xa   :  { %22 = vsyncpa [#allocation4], 0 }
   0xb   :  { %23 = vsyncpa [#allocation7], 0 }
   0xc   :  { %25 = vsyncpa [#allocation7 + $0x1], 0 }
   0xd   :  { %26 = vsyncpa [#allocation10], 0 }
   0xe   :  { %28 = vsyncpa [#allocation10 + $0x1], 0 }
   0xf   :  { %29 = vsyncpa [#allocation13], 0 }
  0x10   :  { %30 = vsyncpa [#allocation16], 0 }
  0x11   :  { %31 = vsyncpa [#allocation19], 0 }
  0x12   :  { %33 = vsyncpa [#allocation19 + $0x1], 0 }
  0x13   :  { %34 = vsyncpa [#allocation22], 0 }
  0x14   :  { %36 = vsyncpa [#allocation22 + $0x1], 0 }
  0x15   :  { %37 = vsyncpa [#allocation5], 0 }
  0x16   :  { %39 = vsyncpa [#allocation5 + $0x1], 0  ;;  %s7576_s15 = smov 0   ;;  %s7578_s16 = smov 0  }
  0x17   :  { %s7580_s17 = smov 0   ;;  %s7582_s9 = smov 0  }
  0x18 LB: > { %9501 = sst [smem:[#allocation33_spill]] %s7473_s15  ;;  %s7600_s21 = sadd.s32 4294967295, %s7485_s9   ;;  %s7485_s9 = sphi %s7582_s9, %s9573_s9   ;;  %s7481_s17 = sphi %s7580_s17, %s9576_s17   ;;  %s7477_s16 = sphi %s7578_s16, %s9575_s16   ;;  %s7473_s15 = sphi %s7576_s15, %s9574_s15  }
  0x19   : > { %9502 = sst [smem:[#allocation34_spill]] %s7477_s16  ;;  %p4883_p0 = scmp.ge.s32.totalorder %s7485_s9, 1 }
  0x1a   : > { %9503 = sst [smem:[#allocation35_spill]] %s7481_s17  ;;  %p9481_p1 = scmp.eq.s32.totalorder %s7600_s21, 0 }
  0x1b   : > { %s9504_s4 = sld [smem:[#allocation45_spill]]  ;;  %p405_p2 = scmp.lt.s32.totalorder %s7485_s9, 3 }
  0x1c   : > { %9505 = sst [smem:[#allocation36_spill]] %s7600_s21  ;;  %s7487_s23 = smov [#allocation11]  }
  0x1d   : > { %p7605_p3 = pnand %p4883_p0, %p405_p2  ;;  %s431_s24 = sshll.u32 %s7487_s23, 4  ;;  %s432_s24 = int_to_ptr.vmem [resolvable:$true] %s431_s24 }
  0x1e   : > { %s9508_s5 = sld [smem:[#allocation46_spill]]  ;;  %s7488_s29 = smov [#allocation12]  }
  0x1f   : > { %s9506_s22 = scalar_select %p7605_p3, 1, 0 }
  0x20   : > { %p6887_p5 = pneg %p7605_p3  ;;  %s443_s30 = sshll.u32 %s7488_s29, 4  ;;  %s444_s30 = int_to_ptr.vmem [resolvable:$true] %s443_s30 }
  0x21   : > { %s429_s20 = sshll.u32 %s9504_s4, 4  ;;  %9507 = sst [smem:[#allocation37_spill]] %s9506_s22  ;;  %s430_s20 = int_to_ptr.hbm [resolvable:$true] %s429_s20 }
  0x22   : > { %p7617_p6 = pnand %p6887_p5, %p9481_p1  ;;  %s9510_s7 = sld [smem:[#allocation47_spill]] }
  0x23   : > { %s7489_s25 = smov [#allocation15]   ;;  %s4882_s29 = sadd.s32 4294967294, %s7485_s9  }
  0x24   : > { %s441_s27 = sshll.u32 %s9508_s5, 4  ;;  %s467_s26 = sshll.u32 %s7489_s25, 4  ;;  %s442_s27 = int_to_ptr.hbm [resolvable:$true] %s441_s27  ;;  %s468_s26 = int_to_ptr.vmem [resolvable:$true] %s467_s26 }
  0x25   : > { %6893 = dma.hbm_to_vmem [thread:$0]  (!%p7617_p6), %s430_s20, 192, %s432_s24, [#allocation10]  }
  0x26   : > { %6896 = dma.hbm_to_vmem [thread:$0]  (!%p7617_p6), %s442_s27, 192, %s444_s30, [#allocation13]  }
  0x27   : > { %s7632_s18 = sadd.s32 1, %s7485_s9   ;;  %s73_s19 = sadd.s32 1, %s7481_s17 }
  0x28   : > { %s465_s23 = sshll.u32 %s9510_s7, 4  ;;  %9511 = sst [smem:[#allocation38_spill]] %s7632_s18  ;;  %s466_s23 = int_to_ptr.hbm [resolvable:$true] %s465_s23 }
  0x29   : > { %6902 = dma.hbm_to_vmem [thread:$0]  (!%p7617_p6), %s466_s23, 192, %s468_s26, [#allocation16]  }
  0x2a   : > { %s70_s4 = ssub.s32 %s7485_s9, %s7632_s18  ;;  %p80_p7 = scmp.ne.s32.totalorder %s7481_s17, %s7477_s16 }
  0x2b   : > { %p71_p8 = scmp.eq.s32.totalorder %s70_s4, 0  ;;  %p81_p9 = scmp.eq.s32.totalorder %s7485_s9, 0 }
  0x2c   : > { %p86_p10 = scmp.ne.s32.totalorder %s7477_s16, %s7473_s15  ;;  %p366_p11 = scmp.eq.s32.totalorder %s7600_s21, 1 }
  0x2d   : > { %s7644_s20 = scalar_select %p71_p8, %s7481_s17, %s73_s19  }
  0x2e   : > { %p82_p12 = por %p81_p9, %p80_p7  ;;  %p7648_p13 = por %p9481_p1, %p86_p10 }
  0x2f   : > { %9512 = sst [smem:[#allocation39_spill]] %s7644_s20  ;;  %p7652_p0 = por %p366_p11, %p80_p7 }
  0x30   : > { %s9513_s24 = scalar_select %p7648_p13, 1, 0 }
  0x31   : > { %s9515_s27 = scalar_select %p7652_p0, 1, 0 }
  0x32   : > { %9514 = sst [smem:[#allocation40_spill]] %s9513_s24  ;;  %p372_p2 = scmp.eq.s32.totalorder %s4882_s29, 1 }
  0x33   : > { %9516 = sst [smem:[#allocation41_spill]] %s9515_s27  ;;  %p6935_p5 = scmp.lt.s32.totalorder %s7485_s9, 2 }
  0x34   : > { %s7658_s30 = sand.u32 1, %s7485_s9   ;;  %p7660_p4 = por %p372_p2, %p86_p10 }
  0x35   : > { %s7665_s23 = sand.u32 1, %s7481_s17   ;;  %s6460_s25 = sshll.u32 %s7485_s9, 4 }
  0x36   : > { %s9517_s4 = scalar_select %p7660_p4, 1, 0 }
  0x37   : > { %s6847_s26 = smul.u32 3072, %s7665_s23  ;;  %s9519_s1 = sld [smem:[#allocation43_spill]] }
  0x38   : > { %9518 = sst [smem:[#allocation42_spill]] %s9517_s4  ;;  %p7672_p7 = pnand %p6935_p5, %p82_p12 }
  0x39   : > { %s497_s18 = scalar_lea.vmem [#allocation6], %s6847_s26 }
  0x3a   : > { %s505_s15 = sshll.u32 %s497_s18, 4  ;;  %p7679_p9 = pneg %p7672_p7  ;;  %s506_s15 = int_to_ptr.vmem [resolvable:$true] %s505_s15 }
  0x3d   : > { %s502_s7 = scalar_lea.hbm %s9519_s1, %s6460_s25  ;;  %s7128_s25 = scalar_lea.hbm %s9519_s1, 6144 }
  0x3e   : > { %s503_s20 = sshll.u32 %s502_s7, 4  ;;  %s504_s20 = int_to_ptr.hbm [resolvable:$true] %s503_s20 }
  0x3f   : > { %s7121_s17 = sshra.s32 %s504_s20, 4  ;;  %s7122_s17 = int_to_ptr.hbm [resolvable:$true] %s7121_s17 }
  0x40   : > { %s7123_s14 = scalar_lea.hbm %s7122_s17, 3072  ;;  %p7129_p12 = scmp.lt.s32.totalorder %s7122_s17, %s9519_s1 }
  0x41   : > { %p7124_p8 = scmp.ne.s32.totalorder %s7122_s17, %s7123_s14  ;;  %p7130_p2 = scmp.lt.s32.totalorder %s7128_s25, %s7123_s14 }
  0x43   : > { %p7126_p10 = pnand %p7679_p9, %p7124_p8  ;;  %p7131_p5 = por %p7130_p2, %p7129_p12 }
  0x45   : > { %p7127_p11 = pneg %p7126_p10 }
  0x47   : > { %p7132_p1 = pnand %p7131_p5, %p7127_p11 }
  0x49   : > { %7135 = shalt.err (!%p7132_p1)
}
  0x4a   : > { %s7490_s19 = smov 512   ;;  %s7491_s4 = smov 256  }
  0x4b   : > { %s7492_s13 = smov 16   ;;  %s9522_s24 = scalar_lea.sflag [#allocation7], %s7658_s30 }
  0x4c   : > { %6909 = dma.hbm_to_vmem [thread:$0]  (!%p7672_p7), %s504_s20, 49152, %s506_s15, %s9522_s24, %s7490_s19, %s7491_s4, %s7492_s13  }
  0x4d   : > { %s4897_s5 = sshll.u32 %s7665_s23, 3  ;;  %s6461_s7 = sshll.u32 %s7485_s9, 3 }
  0x4e   : > { %s562_s14 = scalar_lea.hbm %s9469_s10, %s6461_s7  ;;  %s557_s25 = scalar_lea.vmem [#allocation18], %s4897_s5 }
  0x4f   : > { %s566_s26 = sshll.u32 %s557_s25, 4  ;;  %s564_s1 = sshll.u32 %s562_s14, 4  ;;  %s567_s26 = int_to_ptr.vmem [resolvable:$true] %s566_s26  ;;  %s565_s1 = int_to_ptr.hbm [resolvable:$true] %s564_s1 }
  0x50   : > { %s417_s22 = sshll.u32 %s9459_s0, 4  ;;  %s554_s12 = scalar_lea.sflag [#allocation19], %s7658_s30  ;;  %s418_s22 = int_to_ptr.hbm [resolvable:$true] %s417_s22 }
  0x51   : > { %s7151_s11 = sshra.s32 %s565_s1, 4  ;;  %s7158_s20 = scalar_lea.hbm %s9469_s10, 16  ;;  %s7152_s11 = int_to_ptr.hbm [resolvable:$true] %s7151_s11 }
  0x52   : > { %s7153_s3 = scalar_lea.hbm %s7152_s11, 8  ;;  %p7159_p11 = scmp.lt.s32.totalorder %s7152_s11, %s9469_s10 }
  0x53   : > { %p7154_p1 = scmp.ne.s32.totalorder %s7152_s11, %s7153_s3  ;;  %p7160_p12 = scmp.lt.s32.totalorder %s7158_s20, %s7153_s3 }
  0x55   : > { %p7156_p8 = pnand %p7154_p1, %p7679_p9  ;;  %p7161_p2 = por %p7160_p12, %p7159_p11 }
  0x57   : > { %p7157_p10 = pneg %p7156_p8 }
  0x59   : > { %p7162_p5 = pnand %p7161_p2, %p7157_p10 }
  0x5b   : > { %7165 = shalt.err (!%p7162_p5)
}
  0x5c   : > { %6918 = dma.hbm_to_vmem [thread:$0]  (!%p7672_p7), %s565_s1, 128, %s567_s26, %s554_s12  }
  0x5d   : > { %s7493_s16 = smov [#allocation3]   ;;  %s453_s3 = sshll.u32 %s9465_s6, 4  ;;  %s454_s3 = int_to_ptr.hbm [resolvable:$true] %s453_s3 }
  0x5e   : > { %s419_s21 = sshll.u32 %s7493_s16, 4  ;;  %s477_s18 = sshll.u32 %s9467_s8, 4  ;;  %s420_s21 = int_to_ptr.vmem [resolvable:$true] %s419_s21  ;;  %s478_s18 = int_to_ptr.hbm [resolvable:$true] %s477_s18 }
  0x5f   : > { %6890 = dma.hbm_to_vmem [thread:$0]  (!%p7617_p6), %s418_s22, 1536, %s420_s21, [#allocation4]  }
  0x60   : > { %s7494_s17 = smov [#allocation14]   ;;  %s7495_s14 = smov [#allocation17]  }
  0x61   : > { %s455_s1 = sshll.u32 %s7494_s17, 4  ;;  %s479_s25 = sshll.u32 %s7495_s14, 4  ;;  %s456_s1 = int_to_ptr.vmem [resolvable:$true] %s455_s1  ;;  %s480_s25 = int_to_ptr.vmem [resolvable:$true] %s479_s25 }
  0x62   : > { %6899 = dma.hbm_to_vmem [thread:$0]  (!%p7617_p6), %s454_s3, 192, %s456_s1, [#allocation13]  }
  0x63   : > { %s7727_s26 = sshll.u32 %s7665_s23, 2  ;;  %s7732_s22 = sshll.u32 %s7485_s9, 2 }
  0x64   : > { %6905 = dma.hbm_to_vmem [thread:$0]  (!%p7617_p6), %s478_s18, 192, %s480_s25, [#allocation16]  }
  0x65   : > { %s519_s13 = scalar_lea.vmem [#allocation8], %s7727_s26  ;;  %s523_s4 = scalar_lea.hbm %s9461_s2, %s7732_s22 }
  0x66   : > { %s527_s15 = sshll.u32 %s519_s13, 4  ;;  %s525_s16 = sshll.u32 %s523_s4, 4  ;;  %s528_s15 = int_to_ptr.vmem [resolvable:$true] %s527_s15  ;;  %s526_s16 = int_to_ptr.hbm [resolvable:$true] %s525_s16 }
  0x67   : > { %s7271_s21 = sshra.s32 %s526_s16, 4  ;;  %s7278_s3 = scalar_lea.hbm %s9461_s2, 8  ;;  %s7272_s21 = int_to_ptr.hbm [resolvable:$true] %s7271_s21 }
  0x68   : > { %s7273_s19 = scalar_lea.hbm %s7272_s21, 4  ;;  %p7279_p6 = scmp.lt.s32.totalorder %s7272_s21, %s9461_s2 }
  0x69   : > { %p7274_p1 = scmp.ne.s32.totalorder %s7272_s21, %s7273_s19  ;;  %p7280_p11 = scmp.lt.s32.totalorder %s7278_s3, %s7273_s19 }
  0x6b   : > { %p7276_p8 = pnand %p7274_p1, %p7679_p9  ;;  %p7281_p12 = por %p7280_p11, %p7279_p6 }
  0x6d   : > { %p7277_p10 = pneg %p7276_p8 }
  0x6f   : > { %p7282_p2 = pnand %p7281_p12, %p7277_p10 }
  0x71   : > { %7285 = shalt.err (!%p7282_p2)
}
  0x72   : > { %s9523_s18 = scalar_lea.sflag [#allocation7], %s7658_s30  ;;  %s9524_s14 = sld [smem:[#allocation44_spill]] }
  0x73   : > { %6912 = dma.hbm_to_vmem [thread:$0]  (!%p7672_p7), %s526_s16, 64, %s528_s15, %s9523_s18  }
  0x74   : > { %s538_s13 = scalar_lea.vmem [#allocation9], %s7727_s26  ;;  %s535_s4 = scalar_lea.sflag [#allocation10], %s7658_s30 }
  0x75   : > { %s546_s20 = sshll.u32 %s538_s13, 4  ;;  %s547_s20 = int_to_ptr.vmem [resolvable:$true] %s546_s20 }
  0x78   : > { %s542_s25 = scalar_lea.hbm %s9524_s14, %s7732_s22  ;;  %s7308_s15 = scalar_lea.hbm %s9524_s14, 8 }
  0x79   : > { %s544_s24 = sshll.u32 %s542_s25, 4  ;;  %s545_s24 = int_to_ptr.hbm [resolvable:$true] %s544_s24 }
  0x7a   : > { %s7301_s21 = sshra.s32 %s545_s24, 4  ;;  %s7302_s21 = int_to_ptr.hbm [resolvable:$true] %s7301_s21 }
  0x7b   : > { %s7303_s19 = scalar_lea.hbm %s7302_s21, 4  ;;  %p7309_p10 = scmp.lt.s32.totalorder %s7302_s21, %s9524_s14 }
  0x7c   : > { %p7304_p5 = scmp.ne.s32.totalorder %s7302_s21, %s7303_s19  ;;  %p7310_p6 = scmp.lt.s32.totalorder %s7308_s15, %s7303_s19 }
  0x7e   : > { %p7306_p1 = pnand %p7304_p5, %p7679_p9  ;;  %p7311_p11 = por %p7310_p6, %p7309_p10 }
  0x80   : > { %p7307_p8 = pneg %p7306_p1 }
  0x82   : > { %p7312_p12 = pnand %p7311_p11, %p7307_p8 }
  0x84   : > { %7315 = shalt.err (!%p7312_p12)
}
  0x85   : > { %6915 = dma.hbm_to_vmem [thread:$0]  (!%p7672_p7), %s545_s24, 64, %s547_s20, %s535_s4  }
  0x86   : > { %s9525_s18 = sld [smem:[#allocation48_spill]]  ;;  %s577_s1 = scalar_lea.vmem [#allocation20], %s7727_s26 }
  0x87   : > { %s585_s25 = sshll.u32 %s577_s1, 4  ;;  %s586_s25 = int_to_ptr.vmem [resolvable:$true] %s585_s25 }
  0x8c   : > { %s581_s17 = scalar_lea.hbm %s9525_s18, %s7732_s22  ;;  %s7338_s20 = scalar_lea.hbm %s9525_s18, 8 }
  0x8d   : > { %s583_s13 = sshll.u32 %s581_s17, 4  ;;  %s584_s13 = int_to_ptr.hbm [resolvable:$true] %s583_s13 }
  0x8e   : > { %s7331_s21 = sshra.s32 %s584_s13, 4  ;;  %s7332_s21 = int_to_ptr.hbm [resolvable:$true] %s7331_s21 }
  0x8f   : > { %s7333_s19 = scalar_lea.hbm %s7332_s21, 4  ;;  %p7339_p8 = scmp.lt.s32.totalorder %s7332_s21, %s9525_s18 }
  0x90   : > { %p7334_p2 = scmp.ne.s32.totalorder %s7332_s21, %s7333_s19  ;;  %p7340_p10 = scmp.lt.s32.totalorder %s7338_s20, %s7333_s19 }
  0x92   : > { %p7336_p5 = pnand %p7334_p2, %p7679_p9  ;;  %p7341_p6 = por %p7340_p10, %p7339_p8 }
  0x94   : > { %p7337_p1 = pneg %p7336_p5 }
  0x96   : > { %p7342_p11 = pnand %p7341_p6, %p7337_p1 }
  0x98   : > { %7345 = shalt.err (!%p7342_p11)
}
  0x99   : > { %6921 = dma.hbm_to_vmem [thread:$0]  (!%p7672_p7), %s584_s13, 64, %s586_s25, %s554_s12  }
  0x9a   : > { %s9526_s3 = sld [smem:[#allocation49_spill]]  ;;  %s596_s17 = scalar_lea.vmem [#allocation21], %s7727_s26 }
  0x9b   : > { %s604_s1 = sshll.u32 %s596_s17, 4  ;;  %s593_s21 = scalar_lea.sflag [#allocation22], %s7665_s23  ;;  %s605_s1 = int_to_ptr.vmem [resolvable:$true] %s604_s1 }
  0xa0   : > { %s600_s11 = scalar_lea.hbm %s9526_s3, %s7732_s22  ;;  %s7368_s12 = scalar_lea.hbm %s9526_s3, 8 }
  0xa1   : > { %s602_s7 = sshll.u32 %s600_s11, 4  ;;  %s603_s7 = int_to_ptr.hbm [resolvable:$true] %s602_s7 }
  0xa2   : > { %s7361_s19 = sshra.s32 %s603_s7, 4  ;;  %s7362_s19 = int_to_ptr.hbm [resolvable:$true] %s7361_s19 }
  0xa3   : > { %s7363_s28 = scalar_lea.hbm %s7362_s19, 4  ;;  %p7369_p1 = scmp.lt.s32.totalorder %s7362_s19, %s9526_s3 }
  0xa4   : > { %p7364_p12 = scmp.ne.s32.totalorder %s7362_s19, %s7363_s28  ;;  %p7370_p8 = scmp.lt.s32.totalorder %s7368_s12, %s7363_s28 }
  0xa6   : > { %p7366_p2 = pnand %p7364_p12, %p7679_p9  ;;  %p7371_p10 = por %p7370_p8, %p7369_p1 }
  0xa8   : > { %p7367_p5 = pneg %p7366_p2 }
  0xaa   : > { %p7372_p6 = pnand %p7371_p10, %p7367_p5 }
  0xac   : > { %7375 = shalt.err (!%p7372_p6)
}
  0xad   : > { %6924 = dma.hbm_to_vmem [thread:$0]  (!%p7672_p7), %s603_s7, 64, %s605_s1, %s593_s21  }
  0xae   : > { %613 = sbr.rel (%p7605_p3) target bundleno = 1237 (0x4d5), region = 72  ;;  %s9528_s27 = sld [smem:[#allocation36_spill]] (!%p7605_p3) }
  0xb4   : > { %p9529_p9 = scmp.eq.s32.totalorder %s9528_s27, 0 }
  0xb6   : > { %7436 = dma.done.wait (%p9529_p9), [#allocation4], 1536   ;;  %p9530_p11 = pmov %p9529_p9 }
  0xb7   : > { %s9531_s26 = sld [smem:[#allocation34_spill]]  ;;  %s620_s20 = sand.u32 1, %s9528_s27  }
  0xb8   : > { %7438 = vsyncadd (%p9530_p11), [#allocation4], 4294965760  ;;  %s621_s15 = scalar_lea.sflag [#allocation7], %s620_s20 }
  0xbd   : > { %s7808_s24 = sand.u32 1, %s9531_s26  }
  0xbe   : > { %s6848_s4 = smul.u32 3072, %s7808_s24 }
  0xc0   : > { %s7811_s29 = scalar_lea.vmem [#allocation6], %s6848_s4 }
  0xc1   : > { %7440 = dma.done.wait (%p7648_p13), %s621_s15, 49216  }
  0xc2   : > { %7442 = vsyncadd (%p7648_p13), %s621_s15, 4294918080  ;;  %s7818_s16 = sshll.u32 %s7808_s24, 2  ;;  %s641_s7 = scalar_lea.sflag [#allocation10], %s620_s20 }
  0xc3   : > { %s634_s11 = scalar_lea.vmem [#allocation8], %s7818_s16  ;;  %s644_s17 = scalar_lea.vmem [#allocation9], %s7818_s16 }
  0xc4   : > { %7444 = dma.done.wait (%p7648_p13), %s641_s7, 64  }
  0xc5   : > { %7446 = vsyncadd (%p7648_p13), %s641_s7, 4294967232  ;;  %p9533_p3 = pmov %p9529_p9 }
  0xc7   : > { %7448 = dma.done.wait (%p9533_p3), [#allocation10], 192   ;;  %p9534_p7 = pmov %p9533_p3 }
  0xc8   : > { %p9535_p12 = pmov %p9533_p3 }
  0xc9   : > { %7450 = vsyncadd (%p9534_p7), [#allocation10], 4294967104 }
  0xca   : > { %7452 = dma.done.wait (%p9535_p12), [#allocation13], 384   ;;  %p9536_p2 = pmov %p9533_p3 }
  0xcc   : > { %7454 = vsyncadd (%p9536_p2), [#allocation13], 4294966912  ;;  %p9537_p5 = pmov %p9536_p2 }
  0xcd   : > { %p9538_p1 = pmov %p9536_p2 }
  0xce   : > { %7456 = dma.done.wait (%p9537_p5), [#allocation16], 384  }
  0xcf   : > { %7458 = vsyncadd (%p9538_p1), [#allocation16], 4294966912  ;;  %s4913_s1 = sshll.u32 %s7808_s24, 3  ;;  %s676_s21 = scalar_lea.sflag [#allocation19], %s620_s20 }
  0xd0   : > { %s7839_s19 = scalar_lea.vmem [#allocation18], %s4913_s1 }
  0xd1   : > { %7460 = dma.done.wait (%p7648_p13), %s676_s21, 192  }
  0xd2   : > { %7462 = vsyncadd (%p7648_p13), %s676_s21, 4294967104  ;;  %s689_s28 = scalar_lea.vmem [#allocation20], %s7818_s16  ;;  %s696_s30 = scalar_lea.sflag [#allocation22], %s7808_s24 }
  0xd3   : > { %s699_s5 = scalar_lea.vmem [#allocation21], %s7818_s16 }
  0xd4   : > { %7464 = dma.done.wait (%p7648_p13), %s696_s30, 64  }
  0xd5   : > { %7466 = vsyncadd (%p7648_p13), %s696_s30, 4294967232  ;;  %v7852_v1 = vld [vmem:[#allocation3] sm:$0xff]  ;;  %v7854_v2 = vld [vmem:[#allocation3 + $0x8] sm:$0xff]  ;;  %v7496_v15 = vmov 8.0   ;;  %s4916_s12 = sshll.u32 %s7808_s24, 5  ;;  %s6846_s13 = sshll.u32 %s9528_s27, 5 }
  0xd6   : > { %v7856_v3 = vld [vmem:[#allocation3 + $0x10] sm:$0xff]  ;;  %v7858_v4 = vld [vmem:[#allocation3 + $0x18] sm:$0xff]  ;;  %v7860_v5 = vld [vmem:[#allocation3 + $0x20] sm:$0xff]  ;;  %v797_v7 = vrot.slane %v7852_v1, 4  ;;  %v803_v8 = vrot.slane %v7854_v2, 4  ;;  %6989 = vrcp.f32 %v7496_v15  ;;  %s9181_s25 = scalar_lea.vmem [#allocation23], %s4916_s12 }
  0xd7   : > { %v7862_v6 = vld [vmem:[#allocation3 + $0x28] sm:$0xff]  ;;  %v809_v9 = vrot.slane %v7856_v3, 4  ;;  %v7867_v10 = vld [vmem:[#allocation3 + $0x30] sm:$0xff]  ;;  %v7869_v11 = vld [vmem:[#allocation3 + $0x38] sm:$0xff]  ;;  %v815_v12 = vrot.slane %v7858_v4, 4  ;;  %v821_v13 = vrot.slane %v7860_v5, 4 }
  0xd8   : > { %v827_v14 = vrot.slane %v7862_v6, 4  ;;  %v798_v16 = vadd.f32 %v797_v7, %v7852_v1  ;;  %v804_v17 = vadd.f32 %v803_v8, %v7854_v2  ;;  %v833_v19 = vrot.slane %v7867_v10, 4  ;;  %v7884_v39 = vld [vmem:[#allocation3 + $0x40] sm:$0xff]  ;;  %v7886_v40 = vld [vmem:[#allocation3 + $0x48] sm:$0xff]  ;;  %v7888_v41 = vld [vmem:[#allocation3 + $0x50] sm:$0xff]  ;;  %s9567_s22 = sld [smem:[#allocation50_spill]] }
  0xd9   : > { %v810_v18 = vadd.f32 %v809_v9, %v7856_v3  ;;  %v816_v20 = vadd.f32 %v815_v12, %v7858_v4  ;;  %v822_v21 = vadd.f32 %v821_v13, %v7860_v5  ;;  %v839_v23 = vrot.slane %v7869_v11, 4  ;;  %v7890_v44 = vld [vmem:[#allocation3 + $0x58] sm:$0xff]  ;;  %s4614_s4 = sshll.u32 %s9181_s25, 4  ;;  %s4615_s4 = int_to_ptr.vmem [resolvable:$true] %s4614_s4 }
  0xda   : > { %v828_v22 = vadd.f32 %v827_v14, %v7862_v6  ;;  %v799_v24 = vrot.slane %v798_v16, 2  ;;  %v805_v25 = vrot.slane %v804_v17, 2  ;;  %v834_v27 = vadd.f32 %v833_v19, %v7867_v10 }
  0xdb   : > { %v811_v26 = vrot.slane %v810_v18, 2  ;;  %v817_v28 = vrot.slane %v816_v20, 2  ;;  %v823_v29 = vrot.slane %v822_v21, 2  ;;  %v840_v31 = vadd.f32 %v839_v23, %v7869_v11 }
  0xdc   : > { %v829_v30 = vrot.slane %v828_v22, 2  ;;  %v800_v32 = vadd.f32 %v799_v24, %v798_v16  ;;  %v6990_v33 = vpop.eup %6989  ;;  %v806_v34 = vadd.f32 %v805_v25, %v804_v17  ;;  %v835_v37 = vrot.slane %v834_v27, 2 }
  0xdd   : > { %v812_v35 = vadd.f32 %v811_v26, %v810_v18  ;;  %v818_v36 = vadd.f32 %v817_v28, %v816_v20  ;;  %v841_v38 = vrot.slane %v840_v31, 2  ;;  %v824_v42 = vadd.f32 %v823_v29, %v822_v21 }
  0xde   : > { %v830_v43 = vadd.f32 %v829_v30, %v828_v22  ;;  %v801_v45 = vrot.slane %v800_v32, 1  ;;  %vm874_vm0 = vweird.f32 %v6990_v33  ;;  %v807_v46 = vrot.slane %v806_v34, 1  ;;  %s4612_s20 = scalar_lea.hbm %s9567_s22, %s6846_s13  ;;  %s7411_s21 = scalar_lea.hbm %s9567_s22, 64 }
  0xdf   : > { %v813_v47 = vrot.slane %v812_v35, 1  ;;  %v819_v48 = vrot.slane %v818_v36, 1  ;;  %v836_v49 = vadd.f32 %v835_v37, %v834_v27  ;;  %v842_v50 = vadd.f32 %v841_v38, %v840_v31 }
  0xe0   : > { %v845_v51 = vrot.slane %v7884_v39, 4  ;;  %v851_v52 = vrot.slane %v7886_v40, 4  ;;  %v857_v53 = vrot.slane %v7888_v41, 4  ;;  %v825_v54 = vrot.slane %v824_v42, 1 }
  0xe1   : > { %v831_v55 = vrot.slane %v830_v43, 1  ;;  %v863_v56 = vrot.slane %v7890_v44, 4  ;;  %v870_v57 = vmul.f32 8.0, %v6990_v33  ;;  %v802_v58 = vadd.f32 %v801_v45, %v800_v32 }
  0xe2   : > { %v846_v59 = vadd.f32 %v845_v51, %v7884_v39  ;;  %v852_v60 = vadd.f32 %v851_v52, %v7886_v40  ;;  %v858_v61 = vadd.f32 %v857_v53, %v7888_v41  ;;  %v808_v62 = vadd.f32 %v807_v46, %v806_v34 }
  0xe3   : > { %v837_v63 = vrot.slane %v836_v49, 1  ;;  %v864_v0 = vadd.f32 %v863_v56, %v7890_v44  ;;  %v871_v7 = vsub.f32 1.0, %v870_v57  ;;  %v843_v8 = vrot.slane %v842_v50, 1 }
  0xe4   : > { %v847_v9 = vrot.slane %v846_v59, 2  ;;  %v853_v12 = vrot.slane %v852_v60, 2  ;;  %v859_v13 = vrot.slane %v858_v61, 2  ;;  %v814_v14 = vadd.f32 %v813_v47, %v812_v35 }
  0xe5   : > { %v820_v15 = vadd.f32 %v819_v48, %v818_v36  ;;  %v865_v16 = vrot.slane %v864_v0, 2  ;;  %v872_v17 = vmul.f32 %v6990_v33, %v871_v7  ;;  %v826_v18 = vadd.f32 %v825_v54, %v824_v42 }
  0xe6   : > { %v848_v19 = vadd.f32 %v847_v9, %v846_v59  ;;  %v854_v20 = vadd.f32 %v853_v12, %v852_v60  ;;  %v860_v21 = vadd.f32 %v859_v13, %v858_v61  ;;  %v832_v22 = vadd.f32 %v831_v55, %v830_v43 }
  0xe7   : > { %v838_v23 = vadd.f32 %v837_v63, %v836_v49  ;;  %v866_v24 = vadd.f32 %v865_v16, %v864_v0  ;;  %v873_v25 = vadd.f32 %v6990_v33, %v872_v17  ;;  %v844_v26 = vadd.f32 %v843_v8, %v842_v50 }
  0xe8   : > { %v849_v27 = vrot.slane %v848_v19, 1  ;;  %v855_v28 = vrot.slane %v854_v20, 1  ;;  %v861_v29 = vrot.slane %v860_v21, 1 }
  0xe9   : > { %v867_v30 = vrot.slane %v866_v24, 1  ;;  %v7901_v31 = vsel %vm874_vm0, %v6990_v33, %v873_v25 }
  0xea   : > { %v850_v32 = vadd.f32 %v849_v27, %v848_v19  ;;  %v856_v34 = vadd.f32 %v855_v28, %v854_v20  ;;  %v862_v35 = vadd.f32 %v861_v29, %v860_v21  ;;  %v876_v36 = vmul.f32 %v7901_v31, %v802_v58 }
  0xeb   : > { %v868_v37 = vadd.f32 %v867_v30, %v866_v24  ;;  %v877_v38 = vmul.f32 %v7901_v31, %v808_v62  ;;  %v878_v42 = vmul.f32 %v7901_v31, %v814_v14  ;;  %v879_v43 = vmul.f32 %v7901_v31, %v820_v15 }
  0xec   : > { %v880_v45 = vmul.f32 %v7901_v31, %v826_v18  ;;  %v881_v46 = vmul.f32 %v7901_v31, %v832_v22  ;;  %v882_v47 = vmul.f32 %v7901_v31, %v838_v23  ;;  %v883_v33 = vmul.f32 %v7901_v31, %v844_v26 }
  0xed   : > { %v884_v48 = vmul.f32 %v7901_v31, %v850_v32  ;;  %v885_v49 = vmul.f32 %v7901_v31, %v856_v34  ;;  %v886_v50 = vmul.f32 %v7901_v31, %v862_v35  ;;  %v887_v51 = vmul.f32 %v7901_v31, %v868_v37 }
  0xee   : > { %v7916_v52 = vsub.f32 %v7852_v1, %v876_v36  ;;  %v7919_v53 = vsub.f32 %v7854_v2, %v877_v38  ;;  %v7922_v54 = vsub.f32 %v7856_v3, %v878_v42  ;;  %v7925_v55 = vsub.f32 %v7858_v4, %v879_v43 }
  0xef   : > { %v7928_v56 = vsub.f32 %v7860_v5, %v880_v45  ;;  %v7931_v57 = vsub.f32 %v7862_v6, %v881_v46  ;;  %v7934_v58 = vsub.f32 %v7867_v10, %v882_v47  ;;  %v7937_v1 = vsub.f32 %v7869_v11, %v883_v33 }
  0xf0   : > { %v900_v2 = vmul.f32 %v7916_v52, %v7916_v52  ;;  %v901_v3 = vmul.f32 %v7919_v53, %v7919_v53  ;;  %v902_v4 = vmul.f32 %v7922_v54, %v7922_v54  ;;  %v903_v5 = vmul.f32 %v7925_v55, %v7925_v55 }
  0xf1   : > { %v904_v6 = vmul.f32 %v7928_v56, %v7928_v56  ;;  %v905_v10 = vmul.f32 %v7931_v57, %v7931_v57  ;;  %v906_v11 = vmul.f32 %v7934_v58, %v7934_v58  ;;  %v907_v59 = vmul.f32 %v7937_v1, %v7937_v1 }
  0xf2   : > { %v7956_v60 = vsub.f32 %v7884_v39, %v884_v48  ;;  %v7959_v61 = vsub.f32 %v7886_v40, %v885_v49  ;;  %v7962_v62 = vsub.f32 %v7888_v41, %v886_v50  ;;  %v7965_v63 = vsub.f32 %v7890_v44, %v887_v51 }
  0xf3   : > { %v912_v0 = vrot.slane %v900_v2, 4  ;;  %v918_v7 = vrot.slane %v901_v3, 4  ;;  %v924_v8 = vrot.slane %v902_v4, 4  ;;  %v930_v9 = vrot.slane %v903_v5, 4 }
  0xf4   : > { %v936_v12 = vrot.slane %v904_v6, 4  ;;  %v942_v13 = vrot.slane %v905_v10, 4  ;;  %v948_v14 = vrot.slane %v906_v11, 4  ;;  %v954_v15 = vrot.slane %v907_v59, 4 }
  0xf5   : > { %v913_v16 = vadd.f32 %v912_v0, %v900_v2  ;;  %v919_v39 = vadd.f32 %v918_v7, %v901_v3  ;;  %v925_v17 = vadd.f32 %v924_v8, %v902_v4  ;;  %v931_v18 = vadd.f32 %v930_v9, %v903_v5 }
  0xf6   : > { %v937_v40 = vadd.f32 %v936_v12, %v904_v6  ;;  %v943_v19 = vadd.f32 %v942_v13, %v905_v10  ;;  %v949_v20 = vadd.f32 %v948_v14, %v906_v11  ;;  %v955_v41 = vadd.f32 %v954_v15, %v907_v59 }
  0xf7   : > { %v914_v21 = vrot.slane %v913_v16, 2  ;;  %v920_v22 = vrot.slane %v919_v39, 2  ;;  %v926_v44 = vrot.slane %v925_v17, 2  ;;  %v932_v23 = vrot.slane %v931_v18, 2 }
  0xf8   : > { %v938_v24 = vrot.slane %v937_v40, 2  ;;  %v944_v25 = vrot.slane %v943_v19, 2  ;;  %v950_v26 = vrot.slane %v949_v20, 2  ;;  %v956_v27 = vrot.slane %v955_v41, 2 }
  0xf9   : > { %v915_v28 = vadd.f32 %v914_v21, %v913_v16  ;;  %v921_v29 = vadd.f32 %v920_v22, %v919_v39  ;;  %v927_v30 = vadd.f32 %v926_v44, %v925_v17  ;;  %v933_v32 = vadd.f32 %v932_v23, %v931_v18 }
  0xfa   : > { %v908_v34 = vmul.f32 %v7956_v60, %v7956_v60  ;;  %v909_v35 = vmul.f32 %v7959_v61, %v7959_v61  ;;  %v939_v36 = vadd.f32 %v938_v24, %v937_v40  ;;  %v945_v37 = vadd.f32 %v944_v25, %v943_v19 }
  0xfb   : > { %v910_v38 = vmul.f32 %v7962_v62, %v7962_v62  ;;  %v911_v42 = vmul.f32 %v7965_v63, %v7965_v63  ;;  %v916_v43 = vrot.slane %v915_v28, 1  ;;  %v922_v45 = vrot.slane %v921_v29, 1 }
  0xfc   : > { %v928_v46 = vrot.slane %v927_v30, 1  ;;  %v951_v47 = vadd.f32 %v950_v26, %v949_v20  ;;  %v934_v33 = vrot.slane %v933_v32, 1  ;;  %v957_v48 = vadd.f32 %v956_v27, %v955_v41 }
  0xfd   : > { %v917_v49 = vadd.f32 %v916_v43, %v915_v28  ;;  %v923_v50 = vadd.f32 %v922_v45, %v921_v29  ;;  %v940_v51 = vrot.slane %v939_v36, 1  ;;  %v946_v2 = vrot.slane %v945_v37, 1 }
  0xfe   : > { %v960_v3 = vrot.slane %v908_v34, 4  ;;  %v966_v4 = vrot.slane %v909_v35, 4  ;;  %v972_v5 = vrot.slane %v910_v38, 4  ;;  %v978_v6 = vrot.slane %v911_v42, 4 }
  0xff   : > { %v929_v10 = vadd.f32 %v928_v46, %v927_v30  ;;  %v952_v11 = vrot.slane %v951_v47, 1  ;;  %v935_v59 = vadd.f32 %v934_v33, %v933_v32  ;;  %v941_v8 = vadd.f32 %v940_v51, %v939_v36 }
 0x100   : > { %v961_v0 = vadd.f32 %v960_v3, %v908_v34  ;;  %v967_v7 = vadd.f32 %v966_v4, %v909_v35  ;;  %v958_v9 = vrot.slane %v957_v48, 1  ;;  %v973_v12 = vadd.f32 %v972_v5, %v910_v38 }
 0x101   : > { %v984_v13 = vmul.f32 %v917_v49, %v7901_v31  ;;  %v947_v14 = vadd.f32 %v946_v2, %v945_v37  ;;  %v979_v16 = vadd.f32 %v978_v6, %v911_v42  ;;  %v985_v39 = vmul.f32 %v923_v50, %v7901_v31 }
 0x102   : > { %v962_v15 = vrot.slane %v961_v0, 2  ;;  %v953_v17 = vadd.f32 %v952_v11, %v951_v47  ;;  %v986_v18 = vmul.f32 %v929_v10, %v7901_v31  ;;  %v968_v19 = vrot.slane %v967_v7, 2 }
 0x103   : > { %v987_v20 = vmul.f32 %v935_v59, %v7901_v31  ;;  %v959_v41 = vadd.f32 %v958_v9, %v957_v48  ;;  %v974_v21 = vrot.slane %v973_v12, 2  ;;  %v988_v22 = vmul.f32 %v941_v8, %v7901_v31 }
 0x104   : > { %v963_v40 = vadd.f32 %v962_v15, %v961_v0  ;;  %v7980_v44 = vadd.f32 1e-05, %v984_v13  ;;  %v980_v24 = vrot.slane %v979_v16, 2  ;;  %v989_v25 = vmul.f32 %v947_v14, %v7901_v31 }
 0x105   : > { %v7983_v26 = vadd.f32 1e-05, %v985_v39  ;;  %v990_v27 = vmul.f32 %v953_v17, %v7901_v31  ;;  %v7986_v28 = vadd.f32 1e-05, %v986_v18  ;;  %v969_v30 = vadd.f32 %v968_v19, %v967_v7 }
 0x106   : > { %v964_v23 = vrot.slane %v963_v40, 1  ;;  %v7988_v32 = vadd.f32 1e-05, %v987_v20  ;;  %v975_v34 = vadd.f32 %v974_v21, %v973_v12  ;;  %v991_v35 = vmul.f32 %v959_v41, %v7901_v31 }
 0x107   : > { %v7991_v36 = vadd.f32 1e-05, %v988_v22  ;;  %6991 = vrsqrt.f32 %v7980_v44  ;;  %v981_v37 = vadd.f32 %v980_v24, %v979_v16  ;;  %v7994_v38 = vadd.f32 1e-05, %v989_v25 }
 0x108   : > { %v965_v29 = vadd.f32 %v964_v23, %v963_v40  ;;  %6993 = vrsqrt.f32 %v7983_v26  ;;  %v7998_v43 = vadd.f32 1e-05, %v990_v27  ;;  %v970_v45 = vrot.slane %v969_v30, 1 }
 0x109   : > { %6995 = vrsqrt.f32 %v7986_v28  ;;  %v976_v46 = vrot.slane %v975_v34, 1  ;;  %v8002_v47 = vadd.f32 1e-05, %v991_v35  ;;  %v982_v33 = vrot.slane %v981_v37, 1 }
 0x10a   : > { %v992_v42 = vmul.f32 %v965_v29, %v7901_v31  ;;  %6997 = vrsqrt.f32 %v7988_v32  ;;  %v971_v51 = vadd.f32 %v970_v45, %v969_v30  ;;  %vm1014_vm1 = vweird.f32 %v7980_v44 }
 0x10b   : > { %6999 = vrsqrt.f32 %v7991_v36  ;;  %v977_v3 = vadd.f32 %v976_v46, %v975_v34  ;;  %v983_v5 = vadd.f32 %v982_v33, %v981_v37  ;;  %vm1024_vm2 = vweird.f32 %v7983_v26  ;;  %v8074_v33 = vld [vmem:[#allocation14] sm:$0xff] }
 0x10c   : > { %7001 = vrsqrt.f32 %v7994_v38  ;;  %v8008_v49 = vadd.f32 1e-05, %v992_v42  ;;  %v993_v0 = vmul.f32 %v971_v51, %v7901_v31  ;;  %vm1034_vm3 = vweird.f32 %v7986_v28 }
 0x10d   : > { %v8006_v48 = vpop.eup %6991  ;;  %7003 = vrsqrt.f32 %v7998_v43  ;;  %v994_v9 = vmul.f32 %v977_v3, %v7901_v31  ;;  %v995_v15 = vmul.f32 %v983_v5, %v7901_v31  ;;  %vm1044_vm4 = vweird.f32 %v7988_v32 }
 0x10e   : > { %v8011_v50 = vpop.eup %6993  ;;  %7005 = vrsqrt.f32 %v8002_v47  ;;  %v1009_v6 = vmul.f32 %v8006_v48, %v7980_v44  ;;  %v8048_v40 = vadd.f32 1e-05, %v993_v0  ;;  %vm1054_vm5 = vweird.f32 %v7991_v36 }
 0x10f   : > { %v8013_v2 = vpop.eup %6995  ;;  %v1019_v11 = vmul.f32 %v8011_v50, %v7983_v26  ;;  %7007 = vrsqrt.f32 %v8008_v49  ;;  %v8056_v21 = vadd.f32 1e-05, %v994_v9  ;;  %v8062_v25 = vadd.f32 1e-05, %v995_v15 }
 0x110   : > { %v8016_v4 = vpop.eup %6997  ;;  %v1029_v7 = vmul.f32 %v8013_v2, %v7986_v28  ;;  %v1010_v16 = vmul.f32 %v8006_v48, %v1009_v6  ;;  %vm1064_vm6 = vweird.f32 %v7994_v38  ;;  %vm1015_vm7 = vweird.f32 %v8006_v48 }
 0x111   : > { %v8020_v10 = vpop.eup %6999  ;;  %v1039_v12 = vmul.f32 %v8016_v4, %v7988_v32  ;;  %v1020_v17 = vmul.f32 %v8011_v50, %v1019_v11  ;;  %vm1074_vm8 = vweird.f32 %v7998_v43  ;;  %7009 = vrsqrt.f32 %v8048_v40  ;;  %vm8087_vm13 = vmor %vm1014_vm1, %vm1015_vm7  ;;  %v8254_v32 = vld [vmem:[#allocation17] sm:$0xff] }
 0x112   : > { %v8025_v59 = vpop.eup %7001  ;;  %v1049_v13 = vmul.f32 %v8020_v10, %v7991_v36  ;;  %v1030_v19 = vmul.f32 %v8013_v2, %v1029_v7  ;;  %v1011_v27 = vmul.f32 0.5, %v1010_v16  ;;  %7011 = vrsqrt.f32 %v8056_v21 }
 0x113   : > { %v8030_v8 = vpop.eup %7003  ;;  %v1059_v14 = vmul.f32 %v8025_v59, %v7994_v38  ;;  %v1040_v22 = vmul.f32 %v8016_v4, %v1039_v12  ;;  %v1021_v34 = vmul.f32 0.5, %v1020_v17  ;;  %7013 = vrsqrt.f32 %v8062_v25 }
 0x114   : > { %v8041_v39 = vpop.eup %7005  ;;  %v1069_v18 = vmul.f32 %v8030_v8, %v7998_v43  ;;  %v1050_v23 = vmul.f32 %v8020_v10, %v1049_v13  ;;  %v1031_v37 = vmul.f32 0.5, %v1030_v19  ;;  %v1012_v51 = vsub.f32 1.5, %v1011_v27 }
 0x115   : > { %v1079_v20 = vmul.f32 %v8041_v39, %v8002_v47  ;;  %v8054_v41 = vpop.eup %7007  ;;  %v1060_v24 = vmul.f32 %v8025_v59, %v1059_v14  ;;  %v1041_v42 = vmul.f32 0.5, %v1040_v22  ;;  %v1022_v6 = vsub.f32 1.5, %v1021_v34 }
 0x116   : > { %v1070_v29 = vmul.f32 %v8030_v8, %v1069_v18  ;;  %v1089_v30 = vmul.f32 %v8054_v41, %v8008_v49  ;;  %v1051_v45 = vmul.f32 0.5, %v1050_v23  ;;  %vm1025_vm9 = vweird.f32 %v8011_v50 }
 0x117   : > { %v1080_v35 = vmul.f32 %v8041_v39, %v1079_v20  ;;  %v1061_v46 = vmul.f32 0.5, %v1060_v24  ;;  %vm1084_vm10 = vweird.f32 %v8002_v47  ;;  %v1032_v0 = vsub.f32 1.5, %v1031_v37  ;;  %v8092_v15 = vpop.eup %7009  ;;  %vm8097_vm15 = vmor %vm1024_vm2, %vm1025_vm9 }
 0x118   : > { %v1071_v3 = vmul.f32 0.5, %v1070_v29  ;;  %v1090_v5 = vmul.f32 %v8054_v41, %v1089_v30  ;;  %vm1035_vm11 = vweird.f32 %v8013_v2  ;;  %vm1094_vm12 = vweird.f32 %v8008_v49  ;;  %v8102_v19 = vpop.eup %7011 }
 0x119   : > { %v1081_v11 = vmul.f32 0.5, %v1080_v35  ;;  %v1144_v7 = vperm.slane %v8074_v33, 0  ;;  %v1042_v12 = vsub.f32 1.5, %v1041_v42  ;;  %vm1045_vm14 = vweird.f32 %v8016_v4  ;;  %vm8109_vm1 = vmor %vm1034_vm3, %vm1035_vm11  ;;  %v8116_v24 = vpop.eup %7013 }
 0x11a   : > { %v1052_v13 = vsub.f32 1.5, %v1051_v45  ;;  %v1062_v14 = vsub.f32 1.5, %v1061_v46  ;;  %v1013_v16 = vmul.f32 %v8006_v48, %v1012_v51  ;;  %vm1055_vm0 = vweird.f32 %v8020_v10  ;;  %vm8123_vm7 = vmor %vm1044_vm4, %vm1045_vm14 }
 0x11b   : > { %v1072_v44 = vsub.f32 1.5, %v1071_v3  ;;  %v1091_v18 = vmul.f32 0.5, %v1090_v5  ;;  %v1023_v20 = vmul.f32 %v8011_v50, %v1022_v6  ;;  %vm1065_vm2 = vweird.f32 %v8025_v59  ;;  %vm8137_vm11 = vmor %vm1054_vm5, %vm1055_vm0 }
 0x11c   : > { %v1082_v26 = vsub.f32 1.5, %v1081_v11  ;;  %v1099_v23 = vmul.f32 %v8092_v15, %v8048_v40  ;;  %v1033_v27 = vmul.f32 %v8013_v2, %v1032_v0  ;;  %vm1075_vm3 = vweird.f32 %v8030_v8  ;;  %vm8146_vm4 = vmor %vm1064_vm6, %vm1065_vm2 }
 0x11d   : > { %vm1085_vm9 = vweird.f32 %v8041_v39  ;;  %v1109_v29 = vmul.f32 %v8102_v19, %v8056_v21  ;;  %v1043_v30 = vmul.f32 %v8016_v4, %v1042_v12  ;;  %v1053_v34 = vmul.f32 %v8020_v10, %v1052_v13  ;;  %vm8158_vm5 = vmor %vm1074_vm8, %vm1075_vm3 }
 0x11e   : > { %v1063_v35 = vmul.f32 %v8025_v59, %v1062_v14  ;;  %v1119_v37 = vmul.f32 %v8116_v24, %v8062_v25  ;;  %v1073_v45 = vmul.f32 %v8030_v8, %v1072_v44  ;;  %v1092_v46 = vsub.f32 1.5, %v1091_v18  ;;  %vm8175_vm6 = vmor %vm1084_vm10, %vm1085_vm9 }
 0x11f   : > { %v1100_v36 = vmul.f32 %v8092_v15, %v1099_v23  ;;  %v1145_v51 = vperm.slane %v8074_v33, 1  ;;  %v1017_v3 = vsel %vm8087_vm13, %v8006_v48, %v1013_v16  ;;  %v1083_v38 = vmul.f32 %v8041_v39, %v1082_v26 }
 0x120   : > { %v1110_v6 = vmul.f32 %v8102_v19, %v1109_v29  ;;  %v1146_v11 = vperm.slane %v8074_v33, 2  ;;  %v1027_v0 = vsel %vm8097_vm15, %v8011_v50, %v1023_v20  ;;  %v1037_v48 = vsel %vm8109_vm1, %v8013_v2, %v1033_v27  ;;  %v8226_v20 = vld [vmem:[#allocation15] sm:$0xff] }
 0x121   : > { %vm1095_vm8 = vweird.f32 %v8054_v41  ;;  %vm1104_vm13 = vweird.f32 %v8048_v40  ;;  %v1147_v9 = vperm.slane %v8074_v33, 3  ;;  %v1047_v50 = vsel %vm8123_vm7, %v8016_v4, %v1043_v30 }
 0x122   : > { %v1057_v2 = vsel %vm8137_vm11, %v8020_v10, %v1053_v34  ;;  %v1067_v47 = vsel %vm8146_vm4, %v8025_v59, %v1063_v35  ;;  %v1120_v12 = vmul.f32 %v8116_v24, %v1119_v37  ;;  %v1077_v13 = vsel %vm8158_vm5, %v8030_v8, %v1073_v45  ;;  %vm8205_vm14 = vmor %vm1094_vm12, %vm1095_vm8  ;;  %v8257_v37 = vld [vmem:[#allocation14 + $0x8] sm:$0xf] }
 0x123   : > { %v1093_v14 = vmul.f32 %v8054_v41, %v1092_v46  ;;  %v1101_v16 = vmul.f32 0.5, %v1100_v36  ;;  %vm1114_vm10 = vweird.f32 %v8056_v21  ;;  %v8198_v4 = vmul.f32 %v1017_v3, %v7916_v52 }
 0x124   : > { %v1087_v10 = vsel %vm8175_vm6, %v8041_v39, %v1083_v38  ;;  %v1111_v17 = vmul.f32 0.5, %v1110_v6  ;;  %vm1124_vm15 = vweird.f32 %v8062_v25  ;;  %v8211_v8 = vmul.f32 %v1027_v0, %v7919_v53  ;;  %v1181_v25 = vld [vmem:[#allocation15 + $0x8] sm:$0xf] }
 0x125   : > { %v8214_v44 = vmul.f32 %v1037_v48, %v7922_v54  ;;  %v8217_v52 = vmul.f32 %v1047_v50, %v7925_v55  ;;  %v8220_v39 = vmul.f32 %v1057_v2, %v7928_v56  ;;  %v8223_v49 = vmul.f32 %v1067_v47, %v7931_v57 }
 0x126   : > { %v1148_v18 = vperm.slane %v8074_v33, 4  ;;  %vm1105_vm12 = vweird.f32 %v8092_v15  ;;  %v1121_v53 = vmul.f32 0.5, %v1120_v12  ;;  %v8230_v22 = vmul.f32 %v1077_v13, %v7934_v58 }
 0x127   : > { %v1149_v54 = vperm.slane %v8074_v33, 5  ;;  %v1097_v55 = vsel %vm8205_vm14, %v8054_v41, %v1093_v14  ;;  %v1102_v56 = vsub.f32 1.5, %v1101_v16  ;;  %v8237_v57 = vmul.f32 %v1087_v10, %v7937_v1  ;;  %vm8266_vm2 = vmor %vm1104_vm13, %vm1105_vm12 }
 0x128   : > { %v1168_v26 = vmul.f32 %v1144_v7, %v8198_v4  ;;  %v1112_v23 = vsub.f32 1.5, %v1111_v17  ;;  %v1169_v27 = vmul.f32 %v1145_v51, %v8211_v8  ;;  %v1184_v58 = vperm.slane %v8226_v20, 0 }
 0x129   : > { %v1185_v28 = vperm.slane %v8226_v20, 1  ;;  %vm1115_vm0 = vweird.f32 %v8102_v19  ;;  %v1150_v29 = vperm.slane %v8074_v33, 6  ;;  %v1170_v41 = vmul.f32 %v1146_v11, %v8214_v44 }
 0x12a   : > { %v1186_v1 = vperm.slane %v8226_v20, 2  ;;  %v1122_v30 = vsub.f32 1.5, %v1121_v53  ;;  %vm1125_vm1 = vweird.f32 %v8116_v24  ;;  %v8251_v7 = vmul.f32 %v1097_v55, %v7956_v60  ;;  %vm8279_vm7 = vmor %vm1114_vm10, %vm1115_vm0 }
 0x12b   : > { %v1151_v34 = vperm.slane %v8074_v33, 7  ;;  %v1103_v35 = vmul.f32 %v8092_v15, %v1102_v56  ;;  %v1171_v42 = vmul.f32 %v1147_v9, %v8217_v52  ;;  %v1172_v45 = vmul.f32 %v1148_v18, %v8220_v39  ;;  %vm8294_vm3 = vmor %vm1124_vm15, %vm1125_vm1 }
 0x12c   : > { %v1187_v46 = vperm.slane %v8226_v20, 3  ;;  %v1113_v33 = vmul.f32 %v8102_v19, %v1112_v23  ;;  %v1188_v36 = vperm.slane %v8226_v20, 4  ;;  %v1208_v51 = vadd.f32 %v1184_v58, %v1168_v26 }
 0x12d   : > { %v1209_v3 = vadd.f32 %v1185_v28, %v1169_v27  ;;  %v1210_v5 = vadd.f32 %v1186_v1, %v1170_v41  ;;  %v1224_v38 = vperm.slane %v8254_v32, 0  ;;  %v1225_v6 = vperm.slane %v8254_v32, 1 }
 0x12e   : > { %v1226_v11 = vperm.slane %v8254_v32, 2  ;;  %v1123_v0 = vmul.f32 %v8116_v24, %v1122_v30  ;;  %v1152_v48 = vperm.slane %v8257_v37, 0  ;;  %v1153_v43 = vperm.slane %v8257_v37, 1 }
 0x12f   : > { %v1173_v9 = vmul.f32 %v1149_v54, %v8223_v49  ;;  %v1107_v50 = vsel %vm8266_vm2, %v8092_v15, %v1103_v35  ;;  %v1189_v2 = vperm.slane %v8226_v20, 5  ;;  %v1211_v47 = vadd.f32 %v1187_v46, %v1171_v42 }
 0x130   : > { %v1227_v12 = vperm.slane %v8254_v32, 3  ;;  %v1174_v13 = vmul.f32 %v1150_v29, %v8230_v22  ;;  %v1190_v14 = vperm.slane %v8226_v20, 6  ;;  %v1248_v16 = vmul.f32 %v1224_v38, %v1208_v51 }
 0x131   : > { %v1249_v10 = vmul.f32 %v1225_v6, %v1209_v3  ;;  %v1117_v15 = vsel %vm8279_vm7, %v8102_v19, %v1113_v33  ;;  %v1212_v59 = vadd.f32 %v1188_v36, %v1172_v45  ;;  %v1228_v17 = vperm.slane %v8254_v32, 4 }
 0x132   : > { %v1250_v18 = vmul.f32 %v1226_v11, %v1210_v5  ;;  %v1127_v53 = vsel %vm8294_vm3, %v8116_v24, %v1123_v0  ;;  %v8310_v54 = vmul.f32 %v1107_v50, %v7959_v61  ;;  %v1175_v55 = vmul.f32 %v1151_v34, %v8237_v57 }
 0x133   : > { %v1191_v56 = vperm.slane %v8226_v20, 7  ;;  %v1213_v26 = vadd.f32 %v1189_v2, %v1173_v9  ;;  %v1229_v23 = vperm.slane %v8254_v32, 5  ;;  %v1251_v19 = vmul.f32 %v1227_v12, %v1211_v47 }
 0x134   : > { %v1260_v27 = vadd.f32 %v1249_v10, %v1248_v16  ;;  %v8316_v58 = vmul.f32 %v1117_v15, %v7962_v62  ;;  %v1154_v28 = vperm.slane %v8257_v37, 2  ;;  %v1176_v29 = vmul.f32 %v1152_v48, %v8251_v7  ;;  %v1221_v62 = vld [vmem:[#allocation17 + $0x8] sm:$0xf] }
 0x135   : > { %v1192_v24 = vperm.slane %v1181_v25, 0  ;;  %v1214_v41 = vadd.f32 %v1190_v14, %v1174_v13  ;;  %v1230_v61 = vperm.slane %v8254_v32, 6  ;;  %v1252_v1 = vmul.f32 %v1228_v17, %v1212_v59  ;;  %v6988_v17 = vld [vmem:[#allocation2] ss:$0 sm:$0xff] }
 0x136   : > { %v1261_v30 = vadd.f32 %v1260_v27, %v1250_v18  ;;  %v8322_v20 = vmul.f32 %v1127_v53, %v7965_v63  ;;  %v1155_v34 = vperm.slane %v8257_v37, 3  ;;  %v1177_v35 = vmul.f32 %v1153_v43, %v8310_v54  ;;  %v6524_v27 = vld [vmem:[%s7811_s29 + $0x1ec] sm:$0xf0] }
 0x137   : > { %v1193_v42 = vperm.slane %v1181_v25, 1  ;;  %v1215_v45 = vadd.f32 %v1191_v56, %v1175_v55  ;;  %v1231_v46 = vperm.slane %v8254_v32, 7  ;;  %v1253_v60 = vmul.f32 %v1229_v23, %v1213_v26  ;;  %v5032_v56 = vld [vmem:[%s7811_s29 + $0xe0] sm:$0xf]  ;;  %v6492_v26 = vld [vmem:[%s7811_s29 + $0xec] sm:$0xf0] }
 0x138   : > { %v1262_v33 = vadd.f32 %v1261_v30, %v1251_v19  ;;  %v1178_v36 = vmul.f32 %v1154_v28, %v8316_v58  ;;  %v1194_v51 = vperm.slane %v1181_v25, 2  ;;  %v1216_v3 = vadd.f32 %v1192_v24, %v1176_v29  ;;  %v5160_v19 = vld [vmem:[%s7811_s29 + $0x1e0] sm:$0xf]  ;;  %v6588_v30 = vld [vmem:[%s7811_s29 + $0x3ec] sm:$0xf0] }
 0x139   : > { %v1232_v5 = vperm.slane %v1221_v62, 0  ;;  %v1254_v38 = vmul.f32 %v1230_v61, %v1214_v41  ;;  %v1179_v63 = vmul.f32 %v1155_v34, %v8322_v20  ;;  %v1195_v11 = vperm.slane %v1181_v25, 3  ;;  %v5288_v28 = vld [vmem:[%s7811_s29 + $0x2e0] sm:$0xf]  ;;  %v6556_v41 = vld [vmem:[%s7811_s29 + $0x2ec] sm:$0xf0] }
 0x13a   : > { %v1263_v6 = vadd.f32 %v1262_v33, %v1252_v1  ;;  %v1217_v37 = vadd.f32 %v1193_v42, %v1177_v35  ;;  %v1233_v40 = vperm.slane %v1221_v62, 1  ;;  %v1255_v0 = vmul.f32 %v1231_v46, %v1215_v45  ;;  %v5416_v61 = vld [vmem:[%s7811_s29 + $0x3e0] sm:$0xf]  ;;  %v6488_v35 = vld [vmem:[%s7811_s29 + $0xcc] sm:$0xf0] }
 0x13b   : > { %v1218_v43 = vadd.f32 %v1194_v51, %v1178_v36  ;;  %v1234_v9 = vperm.slane %v1221_v62, 2  ;;  %v1256_v50 = vmul.f32 %v1232_v5, %v1216_v3  ;;  %v1219_v21 = vadd.f32 %v1195_v11, %v1179_v63  ;;  %v5016_v34 = vld [vmem:[%s7811_s29 + $0xc0] sm:$0xf]  ;;  %v6520_v46 = vld [vmem:[%s7811_s29 + $0x1cc] sm:$0xf0] }
 0x13c   : > { %v1264_v48 = vadd.f32 %v1263_v6, %v1253_v60  ;;  %v1235_v2 = vperm.slane %v1221_v62, 3  ;;  %v1257_v47 = vmul.f32 %v1233_v40, %v1217_v37  ;;  %v7497_v59 = vmov 0   ;;  %v5144_v45 = vld [vmem:[%s7811_s29 + $0x1c0] sm:$0xf]  ;;  %v6552_v36 = vld [vmem:[%s7811_s29 + $0x2cc] sm:$0xf0] }
 0x13d   : > { %v1258_v13 = vmul.f32 %v1234_v9, %v1218_v43  ;;  %6986 = vset.pattern.permute.xlu0 %v7497_v59  ;;  %6987 = vset.pattern.permute.xlu1 %v7497_v59  ;;  %v5033_v23 = vor.u32 %v6492_v26, %v5032_v56  ;;  %v5161_v24 = vor.u32 %v6524_v27, %v5160_v19  ;;  %v5272_v60 = vld [vmem:[%s7811_s29 + $0x2c0] sm:$0xf]  ;;  %v6584_v3 = vld [vmem:[%s7811_s29 + $0x3cc] sm:$0xf0] }
 0x13e   : > { %v1265_v32 = vadd.f32 %v1264_v48, %v1254_v38  ;;  %v1259_v16 = vmul.f32 %v1235_v2, %v1219_v21  ;;  %v5289_v1 = vor.u32 %v6556_v41, %v5288_v28  ;;  %v5417_v42 = vor.u32 %v6588_v30, %v5416_v61  ;;  %v5400_v51 = vld [vmem:[%s7811_s29 + $0x3c0] sm:$0xf]  ;;  %v6484_v63 = vld [vmem:[%s7811_s29 + $0xac] sm:$0xf0] }
 0x13f   : > { %3767 = vmatpush.bf16.msra.mxu0 %v5033_v23  ;;  %3780 = vmatpush.bf16.msra.mxu1 %v5161_v24  ;;  %v5017_v62 = vor.u32 %v6488_v35, %v5016_v34  ;;  %v5145_v33 = vor.u32 %v6520_v46, %v5144_v45  ;;  %v5273_v5 = vor.u32 %v6552_v36, %v5272_v60  ;;  %v5000_v6 = vld [vmem:[%s7811_s29 + $0xa0] sm:$0xf]  ;;  %v6516_v40 = vld [vmem:[%s7811_s29 + $0x1ac] sm:$0xf0] }
 0x140   : > { %v1266_v12 = vadd.f32 %v1265_v32, %v1255_v0  ;;  %3793 = vmatpush.bf16.msra.mxu2 %v5289_v1  ;;  %3806 = vmatpush.bf16.msra.mxu3 %v5417_v42  ;;  %v5401_v38 = vor.u32 %v6584_v3, %v5400_v51  ;;  %v5128_v11 = vld [vmem:[%s7811_s29 + $0x1a0] sm:$0xf]  ;;  %v5001_v37 = vor.u32 %v6484_v63, %v5000_v6  ;;  %v6548_v48 = vld [vmem:[%s7811_s29 + $0x2ac] sm:$0xf0] }
 0x141   : > { %v5256_v0 = vld [vmem:[%s7811_s29 + $0x2a0] sm:$0xf]  ;;  %v5129_v43 = vor.u32 %v6516_v40, %v5128_v11  ;;  %v6480_v2 = vld [vmem:[%s7811_s29 + $0x8c] sm:$0xf0] }
 0x142   : > { %v1267_v14 = vadd.f32 %v1266_v12, %v1256_v50  ;;  %v5384_v9 = vld [vmem:[%s7811_s29 + $0x3a0] sm:$0xf]  ;;  %v6580_v50 = vld [vmem:[%s7811_s29 + $0x3ac] sm:$0xf0]  ;;  %v5257_v21 = vor.u32 %v6548_v48, %v5256_v0 }
 0x143   : > { %3768 = vmatpush.bf16.msra.mxu0 %v5017_v62  ;;  %3781 = vmatpush.bf16.msra.mxu1 %v5145_v33  ;;  %v4984_v32 = vld [vmem:[%s7811_s29 + $0x80] sm:$0xf]  ;;  %v6512_v12 = vld [vmem:[%s7811_s29 + $0x18c] sm:$0xf0] }
 0x144   : > { %v1268_v10 = vadd.f32 %v1267_v14, %v1257_v47  ;;  %3794 = vmatpush.bf16.msra.mxu2 %v5273_v5  ;;  %v5112_v47 = vld [vmem:[%s7811_s29 + $0x180] sm:$0xf]  ;;  %3807 = vmatpush.bf16.msra.mxu3 %v5401_v38  ;;  %v5385_v14 = vor.u32 %v6580_v50, %v5384_v9  ;;  %v6508_v23 = vld [vmem:[%s7811_s29 + $0x16c] sm:$0xf0] }
 0x145   : > { %v5368_v59 = vld [vmem:[%s7811_s29 + $0x380] sm:$0xf]  ;;  %v6540_v28 = vld [vmem:[%s7811_s29 + $0x26c] sm:$0xf0] }
 0x146   : > { %v1269_v15 = vadd.f32 %v1268_v10, %v1258_v13  ;;  %v6544_v10 = vld [vmem:[%s7811_s29 + $0x28c] sm:$0xf0]  ;;  %v5096_v26 = vld [vmem:[%s7811_s29 + $0x160] sm:$0xf] }
 0x147   : > { %3769 = vmatpush.bf16.msra.mxu0 %v5001_v37  ;;  %3782 = vmatpush.bf16.msra.mxu1 %v5129_v43  ;;  %v5224_v27 = vld [vmem:[%s7811_s29 + $0x260] sm:$0xf]  ;;  %v6572_v41 = vld [vmem:[%s7811_s29 + $0x36c] sm:$0xf0]  ;;  %v5097_v61 = vor.u32 %v6508_v23, %v5096_v26 }
 0x148   : > { %v1270_v25 = vadd.f32 %v1269_v15, %v1259_v16  ;;  %v5240_v16 = vld [vmem:[%s7811_s29 + $0x280] sm:$0xf]  ;;  %3795 = vmatpush.bf16.msra.mxu2 %v5257_v21  ;;  %3808 = vmatpush.bf16.msra.mxu3 %v5385_v14  ;;  %v6472_v30 = vld [vmem:[%s7811_s29 + $0x4c] sm:$0xf0]  ;;  %v5225_v34 = vor.u32 %v6540_v28, %v5224_v27 }
 0x149   : > { %v5241_v56 = vor.u32 %v6544_v10, %v5240_v16  ;;  %v5352_v24 = vld [vmem:[%s7811_s29 + $0x360] sm:$0xf]  ;;  %v6504_v42 = vld [vmem:[%s7811_s29 + $0x14c] sm:$0xf0] }
 0x14a   : > { %1271 = vadd.xlane.f32.xlu0 %v1270_v25  ;;  %v4985_v25 = vor.u32 %v6480_v2, %v4984_v32  ;;  %v4952_v1 = vld [vmem:[%s7811_s29 + $0x40] sm:$0xf]  ;;  %v5353_v45 = vor.u32 %v6572_v41, %v5352_v24  ;;  %v6536_v60 = vld [vmem:[%s7811_s29 + $0x24c] sm:$0xf0] }
 0x14b   : > { %v5080_v35 = vld [vmem:[%s7811_s29 + $0x140] sm:$0xf]  ;;  %v4953_v51 = vor.u32 %v6472_v30, %v4952_v1  ;;  %v6568_v5 = vld [vmem:[%s7811_s29 + $0x34c] sm:$0xf0] }
 0x14c   : > { %3770 = vmatpush.bf16.msra.mxu0 %v4985_v25  ;;  %3796 = vmatpush.bf16.msra.mxu2 %v5241_v56  ;;  %v5208_v46 = vld [vmem:[%s7811_s29 + $0x240] sm:$0xf]  ;;  %v5081_v6 = vor.u32 %v6504_v42, %v5080_v35  ;;  %v6468_v11 = vld [vmem:[%s7811_s29 + $0x2c] sm:$0xf0] }
 0x14d   : > { %v5336_v3 = vld [vmem:[%s7811_s29 + $0x340] sm:$0xf]  ;;  %v5209_v37 = vor.u32 %v6536_v60, %v5208_v46  ;;  %v6500_v0 = vld [vmem:[%s7811_s29 + $0x12c] sm:$0xf0] }
 0x14e   : > { %v4936_v63 = vld [vmem:[%s7811_s29 + $0x20] sm:$0xf]  ;;  %v5337_v9 = vor.u32 %v6568_v5, %v5336_v3  ;;  %v6532_v50 = vld [vmem:[%s7811_s29 + $0x22c] sm:$0xf0] }
 0x14f   : > { %v5064_v40 = vld [vmem:[%s7811_s29 + $0x120] sm:$0xf]  ;;  %v6560_v23 = vld [vmem:[%s7811_s29 + $0x30c] sm:$0xf0] }
 0x150   : > { %3797 = vmatpush.bf16.msra.mxu2 %v5225_v34  ;;  %v5192_v48 = vld [vmem:[%s7811_s29 + $0x220] sm:$0xf]  ;;  %v5065_v10 = vor.u32 %v6500_v0, %v5064_v40  ;;  %v6620_v27 = vld [vmem:[%s7811_s29 + $0x4ec] sm:$0xf0] }
 0x151   : > { %v5320_v32 = vld [vmem:[%s7811_s29 + $0x320] sm:$0xf]  ;;  %v6652_v24 = vld [vmem:[%s7811_s29 + $0x5ec] sm:$0xf0] }
 0x152   : > { %v4920_v14 = vld [vmem:[%s7811_s29] sm:$0xf]  ;;  %v6684_v30 = vld [vmem:[%s7811_s29 + $0x6ec] sm:$0xf0] }
 0x153   : > { %v5048_v25 = vld [vmem:[%s7811_s29 + $0x100] sm:$0xf]  ;;  %v6716_v35 = vld [vmem:[%s7811_s29 + $0x7ec] sm:$0xf0] }
 0x154   : > { %3798 = vmatpush.bf16.msra.mxu2 %v5209_v37  ;;  %v5800_v41 = vld [vmem:[%s7811_s29 + $0x6e0] sm:$0xf]  ;;  %v6712_v40 = vld [vmem:[%s7811_s29 + $0x7cc] sm:$0xf0] }
 0x155   : > { %v5928_v34 = vld [vmem:[%s7811_s29 + $0x7e0] sm:$0xf]  ;;  %v5801_v3 = vor.u32 %v6684_v30, %v5800_v41  ;;  %v6644_v2 = vld [vmem:[%s7811_s29 + $0x5ac] sm:$0xf0] }
 0x156   : > { %v5929_v5 = vor.u32 %v6716_v35, %v5928_v34  ;;  %v5912_v37 = vld [vmem:[%s7811_s29 + $0x7c0] sm:$0xf]  ;;  %v6668_v34 = vld [vmem:[%s7811_s29 + $0x66c] sm:$0xf0] }
 0x157   : > { %v5640_v21 = vld [vmem:[%s7811_s29 + $0x5a0] sm:$0xf] }
 0x158   : > { %v5736_v30 = vld [vmem:[%s7811_s29 + $0x660] sm:$0xf] }
 0x159   : > { %v5864_v35 = vld [vmem:[%s7811_s29 + $0x760] sm:$0xf] }
 0x1bd   : > { %v1272_v18 = vpop.xlane.xlu0 %1271 }
 0x1be   : > { %v1277_v53 = vadd.f32 %v6988_v17, %v1272_v18  ;;  %v6576_v17 = vld [vmem:[%s7811_s29 + $0x38c] sm:$0xf0]  ;;  %v5113_v18 = vor.u32 %v6512_v12, %v5112_v47  ;;  %v4937_v12 = vor.u32 %v6468_v11, %v4936_v63  ;;  %v5784_v63 = vld [vmem:[%s7811_s29 + $0x6c0] sm:$0xf] }
 0x1bf   : > { %v5369_v19 = vor.u32 %v6576_v17, %v5368_v59  ;;  %v6496_v59 = vld [vmem:[%s7811_s29 + $0x10c] sm:$0xf0]  ;;  %v5193_v17 = vor.u32 %v6532_v50, %v5192_v48 }
 0x1c0   : > { %v1278_v55 = vsub.f32 0.0, %v1277_v53  ;;  %v4968_v53 = vld [vmem:[%s7811_s29 + $0x60] sm:$0xf]  ;;  %3783 = vmatpush.bf16.msra.mxu1 %v5113_v18  ;;  %v5049_v1 = vor.u32 %v6496_v59, %v5048_v25  ;;  %v6680_v11 = vld [vmem:[%s7811_s29 + $0x6cc] sm:$0xf0] }
 0x1c1   : > { %3809 = vmatpush.bf16.msra.mxu3 %v5369_v19  ;;  %v5176_v18 = vld [vmem:[%s7811_s29 + $0x200] sm:$0xf]  ;;  %3799 = vmatpush.bf16.msra.mxu2 %v5193_v17  ;;  %v5785_v50 = vor.u32 %v6680_v11, %v5784_v63  ;;  %v6608_v25 = vld [vmem:[%s7811_s29 + $0x48c] sm:$0xf0] }
 0x1c2   : > { %v1279_v29 = vmul.f32 1.442695, %v1278_v55  ;;  %v6476_v55 = vld [vmem:[%s7811_s29 + $0x6c] sm:$0xf0]  ;;  %v5544_v19 = vld [vmem:[%s7811_s29 + $0x4e0] sm:$0xf] }
 0x1c3   : > { %v6696_v63 = vld [vmem:[%s7811_s29 + $0x74c] sm:$0xf0] }
 0x1c4   : > { %7015 = vpow2.f32 %v1279_v29  ;;  %v4969_v29 = vor.u32 %v6476_v55, %v4968_v53  ;;  %3784 = vmatpush.bf16.msra.mxu1 %v5097_v61  ;;  %v6528_v53 = vld [vmem:[%s7811_s29 + $0x20c] sm:$0xf0]  ;;  %v5304_v55 = vld [vmem:[%s7811_s29 + $0x300] sm:$0xf] }
 0x1c5   : > { %3810 = vmatpush.bf16.msra.mxu3 %v5353_v45  ;;  %v5545_v45 = vor.u32 %v6620_v27, %v5544_v19  ;;  %v5305_v60 = vor.u32 %v6560_v23, %v5304_v55  ;;  %v5752_v55 = vld [vmem:[%s7811_s29 + $0x680] sm:$0xf]  ;;  %v6704_v23 = vld [vmem:[%s7811_s29 + $0x78c] sm:$0xf0] }
 0x1c6   : > { %3771 = vmatpush.bf16.msra.mxu0 %v4969_v29  ;;  %v5672_v29 = vld [vmem:[%s7811_s29 + $0x5e0] sm:$0xf] }
 0x1c8   : > { %3785 = vmatpush.bf16.msra.mxu1 %v5081_v6  ;;  %v6648_v6 = vld [vmem:[%s7811_s29 + $0x5cc] sm:$0xf0] }
 0x1c9   : > { %3811 = vmatpush.bf16.msra.mxu3 %v5337_v9  ;;  %v6612_v9 = vld [vmem:[%s7811_s29 + $0x4ac] sm:$0xf0] }
 0x1ca   : > { %v7016_v13 = vpop.eup %7015  ;;  %3772 = vmatpush.bf16.msra.mxu0 %v4953_v51  ;;  %v6616_v51 = vld [vmem:[%s7811_s29 + $0x4cc] sm:$0xf0] }
 0x1cb   : > { %v1281_v15 = vadd.f32 1.0, %v7016_v13  ;;  %v6564_v13 = vld [vmem:[%s7811_s29 + $0x32c] sm:$0xf0] }
 0x1cc   : > { %v5321_v26 = vor.u32 %v6564_v13, %v5320_v32  ;;  %3786 = vmatpush.bf16.msra.mxu1 %v5065_v10  ;;  %v5913_v32 = vor.u32 %v6712_v40, %v5912_v37  ;;  %v5896_v13 = vld [vmem:[%s7811_s29 + $0x7a0] sm:$0xf]  ;;  %v5641_v10 = vor.u32 %v6644_v2, %v5640_v21  ;;  %v6660_v21 = vld [vmem:[%s7811_s29 + $0x62c] sm:$0xf0] }
 0x1cd   : > { %7017 = vrcp.f32 %v1281_v15  ;;  %v1291_v62 = vand.u32 2147483647, %v1281_v15  ;;  %v1293_v36 = vand.u32 2147483648, %v1281_v15  ;;  %vm1287_vm11 = vweird.f32 %v1281_v15  ;;  %v5448_v40 = vld [vmem:[%s7811_s29 + $0x420] sm:$0xf] }
 0x1ce   : > { %3773 = vmatpush.bf16.msra.mxu0 %v4937_v12  ;;  %3812 = vmatpush.bf16.msra.mxu3 %v5321_v26  ;;  %v6676_v12 = vld [vmem:[%s7811_s29 + $0x6ac] sm:$0xf0]  ;;  %v5880_v26 = vld [vmem:[%s7811_s29 + $0x780] sm:$0xf] }
 0x1cf   : > { %vm8389_vm5 = vcmp.eq.f32.partialorder %v1291_v62, 8.507059e+37  ;;  %v1294_v47 = vor.u32 1.1754944e-38, %v1293_v36  ;;  %v5177_v62 = vor.u32 %v6528_v53, %v5176_v18  ;;  %v5528_v36 = vld [vmem:[%s7811_s29 + $0x4c0] sm:$0xf]  ;;  %v6640_v53 = vld [vmem:[%s7811_s29 + $0x58c] sm:$0xf0]  ;;  %v5881_v41 = vor.u32 %v6704_v23, %v5880_v26 }
 0x1d0   : > { %3787 = vmatpush.bf16.msra.mxu1 %v5049_v1  ;;  %v5529_v0 = vor.u32 %v6616_v51, %v5528_v36  ;;  %v5624_v18 = vld [vmem:[%s7811_s29 + $0x580] sm:$0xf]  ;;  %v6636_v1 = vld [vmem:[%s7811_s29 + $0x56c] sm:$0xf0] }
 0x1d1   : > { %3800 = vmatpush.bf16.msra.mxu2 %v5177_v62  ;;  %v5625_v27 = vor.u32 %v6640_v53, %v5624_v18  ;;  %v5592_v51 = vld [vmem:[%s7811_s29 + $0x540] sm:$0xf]  ;;  %v6656_v53 = vld [vmem:[%s7811_s29 + $0x60c] sm:$0xf0] }
 0x1d2   : > { %3813 = vmatpush.bf16.msra.mxu3 %v5305_v60  ;;  %v6600_v60 = vld [vmem:[%s7811_s29 + $0x44c] sm:$0xf0]  ;;  %v5832_v2 = vld [vmem:[%s7811_s29 + $0x720] sm:$0xf] }
 0x1d3   : > { %v7018_v33 = vpop.eup %7017  ;;  %v5688_v18 = vld [vmem:[%s7811_s29 + $0x600] sm:$0xf]  ;;  %v6688_v23 = vld [vmem:[%s7811_s29 + $0x70c] sm:$0xf0] }
 0x1d4   : > { %v1283_v38 = vmul.f32 %v7018_v33, %v1281_v15  ;;  %vm1288_vm9 = vweird.f32 %v7018_v33  ;;  %v6464_v15 = vld [vmem:[%s7811_s29 + $0xc] sm:$0xf0]  ;;  %v5816_v26 = vld [vmem:[%s7811_s29 + $0x700] sm:$0xf] }
 0x1d5   : > { %vm8385_vm4 = vmor %vm1287_vm11, %vm1288_vm9  ;;  %v4921_v28 = vor.u32 %v6464_v15, %v4920_v14  ;;  %3845 = vmatpush.bf16.msrb.mxu2 %v5801_v3  ;;  %v6708_v14 = vld [vmem:[%s7811_s29 + $0x7ac] sm:$0xf0]  ;;  %v5496_v15 = vld [vmem:[%s7811_s29 + $0x480] sm:$0xf] }
 0x1d6   : > { %v1284_v43 = vsub.f32 1.0, %v1283_v38  ;;  %v5656_v38 = vld [vmem:[%s7811_s29 + $0x5c0] sm:$0xf]  ;;  %3858 = vmatpush.bf16.msrb.mxu3 %v5929_v5  ;;  %v5897_v17 = vor.u32 %v6708_v14, %v5896_v13  ;;  %v5497_v19 = vor.u32 %v6608_v25, %v5496_v15  ;;  %v6632_v3 = vld [vmem:[%s7811_s29 + $0x54c] sm:$0xf0] }
 0x1d7   : > { %3774 = vmatpush.bf16.msra.mxu0 %v4921_v28  ;;  %v5657_v48 = vor.u32 %v6648_v6, %v5656_v38  ;;  %v5480_v28 = vld [vmem:[%s7811_s29 + $0x460] sm:$0xf]  ;;  %v6664_v38 = vld [vmem:[%s7811_s29 + $0x64c] sm:$0xf0]  ;;  %v5593_v37 = vor.u32 %v6632_v3, %v5592_v51 }
 0x1d8   : > { %v1285_v16 = vmul.f32 %v7018_v33, %v1284_v43  ;;  %v5512_v43 = vld [vmem:[%s7811_s29 + $0x4a0] sm:$0xf]  ;;  %v6592_v15 = vld [vmem:[%s7811_s29 + $0x40c] sm:$0xf0] }
 0x1d9   : > { %3846 = vmatpush.bf16.msrb.mxu2 %v5785_v50  ;;  %v5720_v5 = vld [vmem:[%s7811_s29 + $0x640] sm:$0xf]  ;;  %v6628_v50 = vld [vmem:[%s7811_s29 + $0x52c] sm:$0xf0] }
 0x1da   : > { %v1286_v56 = vadd.f32 %v7018_v33, %v1285_v16  ;;  %v5513_v16 = vor.u32 %v6612_v9, %v5512_v43  ;;  %3859 = vmatpush.bf16.msrb.mxu3 %v5913_v32  ;;  %v5848_v6 = vld [vmem:[%s7811_s29 + $0x740] sm:$0xf]  ;;  %v6748_v3 = vld [vmem:[%s7811_s29 + $0x8ec] sm:$0xf0] }
 0x1db   : > { %3819 = vmatpush.bf16.msrb.mxu0 %v5545_v45  ;;  %v5849_v43 = vor.u32 %v6696_v63, %v5848_v6  ;;  %v5576_v9 = vld [vmem:[%s7811_s29 + $0x520] sm:$0xf] }
 0x1dc   : > { %v1290_v61 = vsel %vm8385_vm4, %v7018_v33, %v1286_v56  ;;  %v5673_v33 = vor.u32 %v6652_v24, %v5672_v29  ;;  %v6672_v56 = vld [vmem:[%s7811_s29 + $0x68c] sm:$0xf0]  ;;  %v5704_v32 = vld [vmem:[%s7811_s29 + $0x620] sm:$0xf]  ;;  %v5577_v13 = vor.u32 %v6628_v50, %v5576_v9 }
 0x1dd   : > { %v1295_v42 = vsel %vm8389_vm5, %v1294_v47, %v1290_v61  ;;  %v5768_v47 = vld [vmem:[%s7811_s29 + $0x6a0] sm:$0xf]  ;;  %v6604_v29 = vld [vmem:[%s7811_s29 + $0x46c] sm:$0xf0]  ;;  %v5753_v24 = vor.u32 %v6672_v56, %v5752_v55  ;;  %v5705_v14 = vor.u32 %v6660_v21, %v5704_v32  ;;  %v5689_v56 = vor.u32 %v6656_v53, %v5688_v18 }
 0x1de   : > { %1325 = vperm.xlu0 %6986, %v1295_v42   ;;  %v1297_v46 = vsub.f32 1.0, %v1295_v42  ;;  %3832 = vmatpush.bf16.msrb.mxu1 %v5673_v33  ;;  %v5769_v59 = vor.u32 %v6676_v12, %v5768_v47  ;;  %v5608_v61 = vld [vmem:[%s7811_s29 + $0x560] sm:$0xf]  ;;  %v6700_v42 = vld [vmem:[%s7811_s29 + $0x76c] sm:$0xf0]  ;;  %v5481_v62 = vor.u32 %v6604_v29, %v5480_v28  ;;  %v5737_v33 = vor.u32 %v6668_v34, %v5736_v30 }
 0x1df   : > { %3820 = vmatpush.bf16.msrb.mxu0 %v5529_v0  ;;  %3860 = vmatpush.bf16.msrb.mxu3 %v5897_v17  ;;  %v5609_v45 = vor.u32 %v6636_v1, %v5608_v61  ;;  %v5865_v36 = vor.u32 %v6700_v42, %v5864_v35  ;;  %v6596_v0 = vld [vmem:[%s7811_s29 + $0x42c] sm:$0xf0]  ;;  %v5560_v25 = vld [vmem:[%s7811_s29 + $0x500] sm:$0xf] }
 0x1e0   : > { %1330 = vperm.xlu1 %6987, %v1297_v46   ;;  %3847 = vmatpush.bf16.msrb.mxu2 %v5769_v59  ;;  %v5464_v46 = vld [vmem:[%s7811_s29 + $0x440] sm:$0xf]  ;;  %v6692_v47 = vld [vmem:[%s7811_s29 + $0x72c] sm:$0xf0]  ;;  %v5449_v12 = vor.u32 %v6596_v0, %v5448_v40 }
 0x1e1   : > { %v5465_v11 = vor.u32 %v6600_v60, %v5464_v46  ;;  %v6624_v17 = vld [vmem:[%s7811_s29 + $0x50c] sm:$0xf0]  ;;  %v6056_v51 = vld [vmem:[%s7811_s29 + $0x8e0] sm:$0xf] }
 0x1e2   : > { %3833 = vmatpush.bf16.msrb.mxu1 %v5657_v48  ;;  %v5721_v48 = vor.u32 %v6664_v38, %v5720_v5  ;;  %v5561_v55 = vor.u32 %v6624_v17, %v5560_v25  ;;  %v6780_v5 = vld [vmem:[%s7811_s29 + $0x9ec] sm:$0xf0]  ;;  %v6440_v9 = vld [vmem:[%s7811_s29 + $0xbe0] sm:$0xf]  ;;  %v6057_v32 = vor.u32 %v6748_v3, %v6056_v51 }
 0x1e3   : > { %3821 = vmatpush.bf16.msrb.mxu0 %v5513_v16  ;;  %3861 = vmatpush.bf16.msrb.mxu3 %v5881_v41  ;;  %v5833_v16 = vor.u32 %v6692_v47, %v5832_v2  ;;  %v6844_v50 = vld [vmem:[%s7811_s29 + $0xbec] sm:$0xf0]  ;;  %v6168_v25 = vld [vmem:[%s7811_s29 + $0x9c0] sm:$0xf] }
 0x1e4   : > { %3848 = vmatpush.bf16.msrb.mxu2 %v5753_v24  ;;  %v8474_v24 = vld [vmem:[#allocation12] sm:$0xff]  ;;  %v6441_v17 = vor.u32 %v6844_v50, %v6440_v9  ;;  %v6776_v18 = vld [vmem:[%s7811_s29 + $0x9cc] sm:$0xf0] }
 0x1e5   : > { %v1389_v30 = vperm.slane %v8474_v24, 0  ;;  %v1390_v35 = vperm.slane %v8474_v24, 1  ;;  %v1392_v46 = vperm.slane %v8474_v24, 3  ;;  %v6296_v53 = vld [vmem:[%s7811_s29 + $0xac0] sm:$0xf] }
 0x1e6   : > { %3834 = vmatpush.bf16.msrb.mxu1 %v5641_v10  ;;  %v5432_v10 = vld [vmem:[%s7811_s29 + $0x400] sm:$0xf]  ;;  %v6832_v50 = vld [vmem:[%s7811_s29 + $0xb8c] sm:$0xf0] }
 0x1e7   : > { %3822 = vmatpush.bf16.msrb.mxu0 %v5497_v19  ;;  %3862 = vmatpush.bf16.msrb.mxu3 %v5865_v36  ;;  %v5433_v59 = vor.u32 %v6592_v15, %v5432_v10  ;;  %v5817_v19 = vor.u32 %v6688_v23, %v5816_v26  ;;  %v6040_v10 = vld [vmem:[%s7811_s29 + $0x8c0] sm:$0xf]  ;;  %v6744_v15 = vld [vmem:[%s7811_s29 + $0x8cc] sm:$0xf0] }
 0x1e8   : > { %3849 = vmatpush.bf16.msrb.mxu2 %v5737_v33  ;;  %v6424_v26 = vld [vmem:[%s7811_s29 + $0xbc0] sm:$0xf]  ;;  %v6840_v23 = vld [vmem:[%s7811_s29 + $0xbcc] sm:$0xf0] }
 0x1e9   : > { %v6392_v9 = vld [vmem:[%s7811_s29 + $0xb80] sm:$0xf] }
 0x1ea   : > { %3835 = vmatpush.bf16.msrb.mxu1 %v5625_v27  ;;  %v8470_v27 = vld [vmem:[#allocation11] sm:$0xff] }
 0x1eb   : > { %3823 = vmatpush.bf16.msrb.mxu0 %v5481_v62  ;;  %3863 = vmatpush.bf16.msrb.mxu3 %v5849_v43  ;;  %v1349_v28 = vperm.slane %v8470_v27, 0  ;;  %v1350_v29 = vperm.slane %v8470_v27, 1  ;;  %v1351_v41 = vperm.slane %v8470_v27, 2  ;;  %v1352_v61 = vperm.slane %v8470_v27, 3  ;;  %v6812_v43 = vld [vmem:[%s7811_s29 + $0xaec] sm:$0xf0] }
 0x1ec   : > { %3850 = vmatpush.bf16.msrb.mxu2 %v5721_v48  ;;  %v1391_v62 = vperm.slane %v8474_v24, 2  ;;  %v1353_v6 = vperm.slane %v8470_v27, 4  ;;  %v1354_v63 = vperm.slane %v8470_v27, 5  ;;  %v1355_v2 = vperm.slane %v8470_v27, 6 }
 0x1ed   : > { %v1373_v1 = vmul.f32 %v1349_v28, %v8198_v4  ;;  %v1374_v34 = vmul.f32 %v1350_v29, %v8211_v8  ;;  %v1375_v42 = vmul.f32 %v1351_v41, %v8214_v44  ;;  %v6184_v8 = vld [vmem:[%s7811_s29 + $0x9e0] sm:$0xf]  ;;  %v1356_v47 = vperm.slane %v8470_v27, 7  ;;  %v6740_v29 = vld [vmem:[%s7811_s29 + $0x8ac] sm:$0xf0] }
 0x1ee   : > { %3836 = vmatpush.bf16.msrb.mxu1 %v5609_v45  ;;  %v1376_v45 = vmul.f32 %v1352_v61, %v8217_v52  ;;  %v6312_v44 = vld [vmem:[%s7811_s29 + $0xae0] sm:$0xf]  ;;  %v1393_v52 = vperm.slane %v8474_v24, 4  ;;  %v6185_v21 = vor.u32 %v6780_v5, %v6184_v8  ;;  %v1378_v27 = vmul.f32 %v1354_v63, %v8223_v49 }
 0x1ef   : > { %3824 = vmatpush.bf16.msrb.mxu0 %v5465_v11  ;;  %3864 = vmatpush.bf16.msrb.mxu3 %v5833_v16  ;;  %v1413_v60 = vadd.f32 %v1389_v30, %v1373_v1  ;;  %v1414_v33 = vadd.f32 %v1390_v35, %v1374_v34  ;;  %v1415_v36 = vadd.f32 %v1391_v62, %v1375_v42  ;;  %v1394_v11 = vperm.slane %v8474_v24, 5  ;;  %v6024_v28 = vld [vmem:[%s7811_s29 + $0x8a0] sm:$0xf]  ;;  %v6772_v35 = vld [vmem:[%s7811_s29 + $0x9ac] sm:$0xf0] }
 0x1f0   : > { %3851 = vmatpush.bf16.msrb.mxu2 %v5705_v14  ;;  %v1416_v4 = vadd.f32 %v1392_v46, %v1376_v45  ;;  %v1379_v41 = vmul.f32 %v1355_v2, %v8230_v22  ;;  %v1395_v61 = vperm.slane %v8474_v24, 6  ;;  %v1380_v1 = vmul.f32 %v1356_v47, %v8237_v57  ;;  %v6152_v34 = vld [vmem:[%s7811_s29 + $0x9a0] sm:$0xf]  ;;  %v6804_v57 = vld [vmem:[%s7811_s29 + $0xaac] sm:$0xf0] }
 0x1f1   : > { %v1396_v30 = vperm.slane %v8474_v24, 7  ;;  %v6169_v49 = vor.u32 %v6776_v18, %v6168_v25  ;;  %v6425_v62 = vor.u32 %v6840_v23, %v6424_v26  ;;  %v6280_v45 = vld [vmem:[%s7811_s29 + $0xaa0] sm:$0xf]  ;;  %v1418_v51 = vadd.f32 %v1394_v11, %v1378_v27 }
 0x1f2   : > { %3837 = vmatpush.bf16.msrb.mxu1 %v5593_v37  ;;  %v6408_v24 = vld [vmem:[%s7811_s29 + $0xba0] sm:$0xf]  ;;  %v1419_v3 = vadd.f32 %v1395_v61, %v1379_v41  ;;  %v6025_v5 = vor.u32 %v6740_v29, %v6024_v28  ;;  %v6828_v28 = vld [vmem:[%s7811_s29 + $0xb6c] sm:$0xf0] }
 0x1f3   : > { %3825 = vmatpush.bf16.msrb.mxu0 %v5449_v12  ;;  %3865 = vmatpush.bf16.msrb.mxu3 %v5817_v19  ;;  %v1377_v19 = vmul.f32 %v1353_v6, %v8220_v39  ;;  %v6041_v39 = vor.u32 %v6744_v15, %v6040_v10  ;;  %v1420_v8 = vadd.f32 %v1396_v30, %v1380_v1  ;;  %v6736_v6 = vld [vmem:[%s7811_s29 + $0x88c] sm:$0xf0]  ;;  %v6136_v63 = vld [vmem:[%s7811_s29 + $0x980] sm:$0xf]  ;;  %v8574_v1 = vld [vmem:[#allocation12 + $0x8] sm:$0xf] }
 0x1f4   : > { %3852 = vmatpush.bf16.msrb.mxu2 %v5689_v56  ;;  %v6808_v56 = vld [vmem:[%s7811_s29 + $0xacc] sm:$0xf0]  ;;  %v5992_v10 = vld [vmem:[%s7811_s29 + $0x860] sm:$0xf] }
 0x1f5   : > { %v6297_v22 = vor.u32 %v6808_v56, %v6296_v53  ;;  %v6120_v18 = vld [vmem:[%s7811_s29 + $0x960] sm:$0xf]  ;;  %v6764_v53 = vld [vmem:[%s7811_s29 + $0x96c] sm:$0xf0] }
 0x1f6   : > { %3838 = vmatpush.bf16.msrb.mxu1 %v5577_v13  ;;  %v6248_v23 = vld [vmem:[%s7811_s29 + $0xa60] sm:$0xf]  ;;  %v6121_v41 = vor.u32 %v6764_v53, %v6120_v18  ;;  %v6720_v53 = vld [vmem:[%s7811_s29 + $0x80c] sm:$0xf0] }
 0x1f7   : > { %3826 = vmatpush.bf16.msrb.mxu0 %v5433_v59  ;;  %v6313_v59 = vor.u32 %v6812_v43, %v6312_v44  ;;  %v6153_v44 = vor.u32 %v6772_v35, %v6152_v34  ;;  %v6376_v27 = vld [vmem:[%s7811_s29 + $0xb60] sm:$0xf] }
 0x1f8   : > { %v5976_v35 = vld [vmem:[%s7811_s29 + $0x840] sm:$0xf] }
 0x1fa   : > { %3839 = vmatpush.bf16.msrb.mxu1 %v5561_v55  ;;  %v1833_v55 = vld [vmem:[%s634_s11] sm:$0xf] }
 0x1fb   : > { %v1836_v42 = vperm.slane %v1833_v55, 1  ;;  %v1837_v46 = vperm.slane %v1833_v55, 2 }
 0x250   : > { %v8490_v38 = vpop.permute.xlu0 %1325 }
 0x251   : > { %v1425_v37 = vmul.f32 %v1413_v60, %v8490_v38  ;;  %v1426_v40 = vmul.f32 %v1414_v33, %v8490_v38  ;;  %v1427_v0 = vmul.f32 %v1415_v36, %v8490_v38  ;;  %v1428_v48 = vmul.f32 %v1416_v4, %v8490_v38  ;;  %v6836_v60 = vld [vmem:[%s7811_s29 + $0xbac] sm:$0xf0]  ;;  %v6008_v36 = vld [vmem:[%s7811_s29 + $0x880] sm:$0xf] }
 0x252   : > { %v1838_v33 = vperm.slane %v1833_v55, 3  ;;  %v1417_v4 = vadd.f32 %v1393_v52, %v1377_v19  ;;  %v6281_v52 = vor.u32 %v6804_v57, %v6280_v45  ;;  %v6409_v11 = vor.u32 %v6836_v60, %v6408_v24  ;;  %v6796_v19 = vld [vmem:[%s7811_s29 + $0xa6c] sm:$0xf0]  ;;  %v6232_v60 = vld [vmem:[%s7811_s29 + $0xa40] sm:$0xf] }
 0x253   : > { %v8506_v12 = vpack.c.bf16 %v1425_v37, %v1425_v37  ;;  %v8508_v13 = vpack.c.bf16 %v1426_v40, %v1426_v40  ;;  %v8510_v14 = vpack.c.bf16 %v1427_v0, %v1427_v0  ;;  %v8512_v16 = vpack.c.bf16 %v1428_v48, %v1428_v48  ;;  %v6768_v37 = vld [vmem:[%s7811_s29 + $0x98c] sm:$0xf0]  ;;  %v6264_v0 = vld [vmem:[%s7811_s29 + $0xa80] sm:$0xf] }
 0x254   : > { %v8547_v40 = vmul.f32 %v1836_v42, %v8490_v38  ;;  %v6800_v48 = vld [vmem:[%s7811_s29 + $0xa8c] sm:$0xf0]  ;;  %v8552_v43 = vmul.f32 %v1837_v46, %v8490_v38  ;;  %v6009_v2 = vor.u32 %v6736_v6, %v6008_v36  ;;  %v6137_v47 = vor.u32 %v6768_v37, %v6136_v63  ;;  %v6104_v46 = vld [vmem:[%s7811_s29 + $0x940] sm:$0xf] }
 0x255   : > { %3775 = vmatmul.bf16.vlgmr.msra.gmra.mxu0 %v8506_v12  ;;  %3788 = vmatmul.bf16.vlgmr.msra.gmra.mxu1 %v8508_v13  ;;  %v6265_v15 = vor.u32 %v6800_v48, %v6264_v0  ;;  %v1429_v25 = vmul.f32 %v1417_v4, %v8490_v38  ;;  %v6393_v55 = vor.u32 %v6832_v50, %v6392_v9  ;;  %v6728_v42 = vld [vmem:[%s7811_s29 + $0x84c] sm:$0xf0]  ;;  %v6360_v36 = vld [vmem:[%s7811_s29 + $0xb40] sm:$0xf]  ;;  %v1398_v63 = vperm.slane %v8574_v1, 1 }
 0x256   : > { %3801 = vmatmul.bf16.vlgmr.msra.gmra.mxu2 %v8510_v14  ;;  %3814 = vmatmul.bf16.vlgmr.msra.gmra.mxu3 %v8512_v16  ;;  %v1431_v56 = vmul.f32 %v1419_v3, %v8490_v38  ;;  %v1432_v26 = vmul.f32 %v1420_v8, %v8490_v38  ;;  %v6249_v34 = vor.u32 %v6796_v19, %v6248_v23  ;;  %v6760_v24 = vld [vmem:[%s7811_s29 + $0x94c] sm:$0xf0]  ;;  %v1397_v3 = vperm.slane %v8574_v1, 0  ;;  %v6088_v0 = vld [vmem:[%s7811_s29 + $0x920] sm:$0xf] }
 0x257   : > { %3871 = vmatpush.bf16.msra.mxu0 %v6057_v32  ;;  %3884 = vmatpush.bf16.msra.mxu1 %v6185_v21  ;;  %v8557_v32 = vmul.f32 %v1838_v33, %v8490_v38  ;;  %v8559_v21 = vld [vmem:[#allocation11 + $0x8] sm:$0xf]  ;;  %v6377_v57 = vor.u32 %v6828_v28, %v6376_v27  ;;  %v6792_v33 = vld [vmem:[%s7811_s29 + $0xa4c] sm:$0xf0]  ;;  %v5977_v8 = vor.u32 %v6728_v42, %v5976_v35  ;;  %v1399_v37 = vperm.slane %v8574_v1, 2  ;;  %v8622_v27 = vpop.permute.xlu1 %1330 }
 0x258   : > { %3897 = vmatpush.bf16.msra.mxu2 %v6313_v59  ;;  %3910 = vmatpush.bf16.msra.mxu3 %v6441_v17  ;;  %v1430_v59 = vmul.f32 %v1418_v51, %v8490_v38  ;;  %v6732_v17 = vld [vmem:[%s7811_s29 + $0x86c] sm:$0xf0]  ;;  %v1357_v61 = vperm.slane %v8559_v21, 0  ;;  %v1358_v30 = vperm.slane %v8559_v21, 1  ;;  %v8586_v45 = vpack.c.bf16 %v1432_v26, %v1432_v26  ;;  %v6216_v9 = vld [vmem:[%s7811_s29 + $0xa20] sm:$0xf] }
 0x259   : > { %v5993_v29 = vor.u32 %v6732_v17, %v5992_v10  ;;  %v6824_v4 = vld [vmem:[%s7811_s29 + $0xb4c] sm:$0xf0]  ;;  %v1360_v51 = vperm.slane %v8559_v21, 3  ;;  %v1400_v17 = vperm.slane %v8574_v1, 3  ;;  %v6328_v23 = vld [vmem:[%s7811_s29 + $0xb00] sm:$0xf] }
 0x25a   : > { %v6724_v6 = vld [vmem:[%s7811_s29 + $0x82c] sm:$0xf0]  ;;  %v1381_v50 = vmul.f32 %v1357_v61, %v8251_v7  ;;  %v1382_v10 = vmul.f32 %v1358_v30, %v8310_v54  ;;  %v6522_v30 = vld [vmem:[%s7811_s29 + $0x1e4] sm:$0xf] }
 0x25b   : > { %3872 = vmatpush.bf16.msra.mxu0 %v6041_v39  ;;  %3885 = vmatpush.bf16.msra.mxu1 %v6169_v49  ;;  %v8577_v39 = vpack.c.bf16 %v1429_v25, %v1429_v25  ;;  %v8579_v49 = vpack.c.bf16 %v1430_v59, %v1430_v59  ;;  %v6756_v48 = vld [vmem:[%s7811_s29 + $0x92c] sm:$0xf0]  ;;  %v1384_v25 = vmul.f32 %v1360_v51, %v8322_v20  ;;  %v5944_v59 = vld [vmem:[%s7811_s29 + $0x800] sm:$0xf]  ;;  %v6554_v35 = vld [vmem:[%s7811_s29 + $0x2e4] sm:$0xf] }
 0x25c   : > { %3898 = vmatpush.bf16.msra.mxu2 %v6297_v22  ;;  %3911 = vmatpush.bf16.msra.mxu3 %v6425_v62  ;;  %v1359_v22 = vperm.slane %v8559_v21, 2  ;;  %v8584_v62 = vpack.c.bf16 %v1431_v56, %v1431_v56  ;;  %v6788_v21 = vld [vmem:[%s7811_s29 + $0xa2c] sm:$0xf0]  ;;  %v6089_v18 = vor.u32 %v6756_v48, %v6088_v0  ;;  %v6200_v56 = vld [vmem:[%s7811_s29 + $0xa00] sm:$0xf]  ;;  %v1421_v19 = vadd.f32 %v1397_v3, %v1381_v50 }
 0x25d   : > { %v6752_v54 = vld [vmem:[%s7811_s29 + $0x90c] sm:$0xf0]  ;;  %v1422_v61 = vadd.f32 %v1398_v63, %v1382_v10  ;;  %v1424_v42 = vadd.f32 %v1400_v17, %v1384_v25  ;;  %v5146_v0 = vld [vmem:[%s7811_s29 + $0x1d0] sm:$0xf0]  ;;  %v6550_v48 = vld [vmem:[%s7811_s29 + $0x2c4] sm:$0xf] }
 0x25e   : > { %v6784_v26 = vld [vmem:[%s7811_s29 + $0xa0c] sm:$0xf0]  ;;  %v6582_v50 = vld [vmem:[%s7811_s29 + $0x3c4] sm:$0xf]  ;;  %v5002_v17 = vld [vmem:[%s7811_s29 + $0xb0] sm:$0xf0] }
 0x25f   : > { %3873 = vmatpush.bf16.msra.mxu0 %v6025_v5  ;;  %3886 = vmatpush.bf16.msra.mxu1 %v6153_v44  ;;  %v6105_v5 = vor.u32 %v6760_v24, %v6104_v46  ;;  %v5960_v44 = vld [vmem:[%s7811_s29 + $0x820] sm:$0xf]  ;;  %v6816_v28 = vld [vmem:[%s7811_s29 + $0xb0c] sm:$0xf0]  ;;  %v5290_v46 = vld [vmem:[%s7811_s29 + $0x2f0] sm:$0xf0] }
 0x260   : > { %3899 = vmatpush.bf16.msra.mxu2 %v6281_v52  ;;  %3912 = vmatpush.bf16.msra.mxu3 %v6409_v11  ;;  %v6233_v52 = vor.u32 %v6792_v33, %v6232_v60  ;;  %v6361_v11 = vor.u32 %v6824_v4, %v6360_v36  ;;  %v5961_v7 = vor.u32 %v6724_v6, %v5960_v44  ;;  %v6586_v24 = vld [vmem:[%s7811_s29 + $0x3e4] sm:$0xf]  ;;  %v5418_v60 = vld [vmem:[%s7811_s29 + $0x3f0] sm:$0xf0] }
 0x261   : > { %v6201_v33 = vor.u32 %v6784_v26, %v6200_v56  ;;  %v6329_v36 = vor.u32 %v6816_v28, %v6328_v23  ;;  %v1433_v4 = vmul.f32 %v1421_v19, %v8622_v27  ;;  %v6486_v44 = vld [vmem:[%s7811_s29 + $0xc4] sm:$0xf]  ;;  %v5018_v6 = vld [vmem:[%s7811_s29 + $0xd0] sm:$0xf0]  ;;  %v5293_v63 = vor.u32 %v6554_v35, %v5290_v46 }
 0x262   : > { %v6578_v56 = vld [vmem:[%s7811_s29 + $0x3a4] sm:$0xf]  ;;  %v5386_v26 = vld [vmem:[%s7811_s29 + $0x3b0] sm:$0xf0] }
 0x263   : > { %3874 = vmatpush.bf16.msra.mxu0 %v6009_v2  ;;  %3887 = vmatpush.bf16.msra.mxu1 %v6137_v47  ;;  %v6344_v2 = vld [vmem:[%s7811_s29 + $0xb20] sm:$0xf]  ;;  %v6820_v47 = vld [vmem:[%s7811_s29 + $0xb2c] sm:$0xf0]  ;;  %v6478_v28 = vld [vmem:[%s7811_s29 + $0x84] sm:$0xf] }
 0x264   : > { %3900 = vmatpush.bf16.msra.mxu2 %v6265_v15  ;;  %3913 = vmatpush.bf16.msra.mxu3 %v6393_v55  ;;  %v1383_v15 = vmul.f32 %v1359_v22, %v8316_v58  ;;  %v6072_v55 = vld [vmem:[%s7811_s29 + $0x900] sm:$0xf]  ;;  %v6217_v58 = vor.u32 %v6788_v21, %v6216_v9  ;;  %v6345_v20 = vor.u32 %v6820_v47, %v6344_v2  ;;  %v5274_v9 = vld [vmem:[%s7811_s29 + $0x2d0] sm:$0xf0] }
 0x265   : > { %3827 = vmatmul.bf16.vlgmr.msrb.gmra.mxu0 %v8577_v39  ;;  %3840 = vmatmul.bf16.vlgmr.msrb.gmra.mxu1 %v8579_v49  ;;  %v5945_v22 = vor.u32 %v6720_v53, %v5944_v59  ;;  %v5402_v21 = vld [vmem:[%s7811_s29 + $0x3d0] sm:$0xf0]  ;;  %v8645_v2 = vpack.c.bf16 %v1433_v4, %v1433_v4  ;;  %v5021_v47 = vor.u32 %v6486_v44, %v5018_v6  ;;  %v6482_v59 = vld [vmem:[%s7811_s29 + $0xa4] sm:$0xf] }
 0x266   : > { %3853 = vmatmul.bf16.vlgmr.msrb.gmra.mxu2 %v8584_v62  ;;  %3866 = vmatmul.bf16.vlgmr.msrb.gmra.mxu3 %v8586_v45  ;;  %v1423_v1 = vadd.f32 %v1399_v37, %v1383_v15  ;;  %v5421_v37 = vor.u32 %v6586_v24, %v5418_v60  ;;  %v5405_v53 = vor.u32 %v6582_v50, %v5402_v21  ;;  %v5242_v35 = vld [vmem:[%s7811_s29 + $0x290] sm:$0xf0]  ;;  %v6474_v24 = vld [vmem:[%s7811_s29 + $0x64] sm:$0xf] }
 0x267   : > { %3875 = vmatpush.bf16.msra.mxu0 %v5993_v29  ;;  %3888 = vmatpush.bf16.msra.mxu1 %v6121_v41  ;;  %v6490_v29 = vld [vmem:[%s7811_s29 + $0xe4] sm:$0xf]  ;;  %v5034_v41 = vld [vmem:[%s7811_s29 + $0xf0] sm:$0xf0]  ;;  %v5005_v23 = vor.u32 %v6482_v59, %v5002_v17 }
 0x268   : > { %3901 = vmatpush.bf16.msra.mxu2 %v6249_v34  ;;  %3914 = vmatpush.bf16.msra.mxu3 %v6377_v57  ;;  %v5162_v34 = vld [vmem:[%s7811_s29 + $0x1f0] sm:$0xf0]  ;;  %v6073_v57 = vor.u32 %v6752_v54, %v6072_v55  ;;  %v5037_v51 = vor.u32 %v6490_v29, %v5034_v41  ;;  %v6514_v55 = vld [vmem:[%s7811_s29 + $0x1a4] sm:$0xf] }
 0x269   : > { %v5165_v3 = vor.u32 %v6522_v30, %v5162_v34  ;;  %v5130_v54 = vld [vmem:[%s7811_s29 + $0x1b0] sm:$0xf0]  ;;  %v6542_v34 = vld [vmem:[%s7811_s29 + $0x284] sm:$0xf] }
 0x26a   : > { %v5133_v19 = vor.u32 %v6514_v55, %v5130_v54  ;;  %v4986_v29 = vld [vmem:[%s7811_s29 + $0x90] sm:$0xf0]  ;;  %v6506_v4 = vld [vmem:[%s7811_s29 + $0x164] sm:$0xf] }
 0x26b   : > { %3876 = vmatpush.bf16.msra.mxu0 %v5977_v8  ;;  %3889 = vmatpush.bf16.msra.mxu1 %v6105_v5  ;;  %v1434_v8 = vmul.f32 %v1422_v61, %v8622_v27  ;;  %v1435_v5 = vmul.f32 %v1423_v1, %v8622_v27  ;;  %v5389_v61 = vor.u32 %v6578_v56, %v5386_v26  ;;  %v6510_v1 = vld [vmem:[%s7811_s29 + $0x184] sm:$0xf]  ;;  %v5114_v30 = vld [vmem:[%s7811_s29 + $0x190] sm:$0xf0] }
 0x26c   : > { %3902 = vmatpush.bf16.msra.mxu2 %v6233_v52  ;;  %3915 = vmatpush.bf16.msra.mxu3 %v6361_v11  ;;  %v1436_v52 = vmul.f32 %v1424_v42, %v8622_v27  ;;  %v6518_v11 = vld [vmem:[%s7811_s29 + $0x1c4] sm:$0xf]  ;;  %v5117_v46 = vor.u32 %v6510_v1, %v5114_v30  ;;  %v4970_v60 = vld [vmem:[%s7811_s29 + $0x70] sm:$0xf0] }
 0x26d   : > { %v8647_v10 = vpack.c.bf16 %v1434_v8, %v1434_v8  ;;  %v8649_v15 = vpack.c.bf16 %v1435_v5, %v1435_v5  ;;  %v5149_v25 = vor.u32 %v6518_v11, %v5146_v0  ;;  %v6574_v42 = vld [vmem:[%s7811_s29 + $0x384] sm:$0xf]  ;;  %v5226_v8 = vld [vmem:[%s7811_s29 + $0x270] sm:$0xf0]  ;;  %v4973_v6 = vor.u32 %v6474_v24, %v4970_v60 }
 0x26e   : > { %v6570_v5 = vld [vmem:[%s7811_s29 + $0x364] sm:$0xf]  ;;  %v5354_v44 = vld [vmem:[%s7811_s29 + $0x370] sm:$0xf0] }
 0x26f   : > { %3877 = vmatpush.bf16.msra.mxu0 %v5961_v7  ;;  %3890 = vmatpush.bf16.msra.mxu1 %v6089_v18  ;;  %v8653_v7 = vpack.c.bf16 %v1436_v52, %v1436_v52  ;;  %v5277_v18 = vor.u32 %v6550_v48, %v5274_v9  ;;  %v4954_v52 = vld [vmem:[%s7811_s29 + $0x50] sm:$0xf0]  ;;  %v5357_v0 = vor.u32 %v6570_v5, %v5354_v44  ;;  %v6502_v48 = vld [vmem:[%s7811_s29 + $0x144] sm:$0xf] }
 0x270   : > { %3903 = vmatpush.bf16.msra.mxu2 %v6217_v58  ;;  %3916 = vmatpush.bf16.msra.mxu3 %v6345_v20  ;;  %v6546_v58 = vld [vmem:[%s7811_s29 + $0x2a4] sm:$0xf]  ;;  %v5258_v20 = vld [vmem:[%s7811_s29 + $0x2b0] sm:$0xf0] }
 0x271   : > { %v5261_v41 = vor.u32 %v6546_v58, %v5258_v20  ;;  %v5082_v9 = vld [vmem:[%s7811_s29 + $0x150] sm:$0xf0]  ;;  %v6534_v50 = vld [vmem:[%s7811_s29 + $0x244] sm:$0xf] }
 0x272   : > { %v5210_v21 = vld [vmem:[%s7811_s29 + $0x250] sm:$0xf0]  ;;  %v5085_v17 = vor.u32 %v6502_v48, %v5082_v9  ;;  %v6498_v58 = vld [vmem:[%s7811_s29 + $0x124] sm:$0xf] }
 0x273   : > { %3878 = vmatpush.bf16.msra.mxu0 %v5945_v22  ;;  %3891 = vmatpush.bf16.msra.mxu1 %v6073_v57  ;;  %v5370_v22 = vld [vmem:[%s7811_s29 + $0x390] sm:$0xf0]  ;;  %v4989_v57 = vor.u32 %v6478_v28, %v4986_v29  ;;  %v5213_v55 = vor.u32 %v6534_v50, %v5210_v21  ;;  %v6530_v56 = vld [vmem:[%s7811_s29 + $0x224] sm:$0xf] }
 0x274   : > { %3904 = vmatpush.bf16.msra.mxu2 %v6201_v33  ;;  %3917 = vmatpush.bf16.msra.mxu3 %v6329_v36  ;;  %v5245_v33 = vor.u32 %v6542_v34, %v5242_v35  ;;  %v5373_v36 = vor.u32 %v6574_v42, %v5370_v22  ;;  %v5066_v20 = vld [vmem:[%s7811_s29 + $0x130] sm:$0xf0]  ;;  %v6462_v28 = vld [vmem:[%s7811_s29 + $0x4] sm:$0xf] }
 0x275   : > { %v5194_v26 = vld [vmem:[%s7811_s29 + $0x230] sm:$0xf0]  ;;  %v6494_v1 = vld [vmem:[%s7811_s29 + $0x104] sm:$0xf] }
 0x276   : > { %3879 = vmatmul.bf16.vlgmr.msra.gmra.mxu0 %v8645_v2  ;;  %3892 = vmatmul.bf16.vlgmr.msra.gmra.mxu1 %v8647_v10  ;;  %v5050_v30 = vld [vmem:[%s7811_s29 + $0x110] sm:$0xf0]  ;;  %v5197_v34 = vor.u32 %v6530_v56, %v5194_v26  ;;  %v6526_v42 = vld [vmem:[%s7811_s29 + $0x204] sm:$0xf] }
 0x277   : > { %3923 = vmatpush.bf16.msrb.mxu0 %v5037_v51  ;;  %3936 = vmatpush.bf16.msrb.mxu1 %v5165_v3  ;;  %v5098_v51 = vld [vmem:[%s7811_s29 + $0x170] sm:$0xf0]  ;;  %v6538_v3 = vld [vmem:[%s7811_s29 + $0x264] sm:$0xf] }
 0x278   : > { %3949 = vmatpush.bf16.msrb.mxu2 %v5293_v63  ;;  %3962 = vmatpush.bf16.msrb.mxu3 %v5421_v37  ;;  %v5101_v63 = vor.u32 %v6506_v4, %v5098_v51  ;;  %v6470_v37 = vld [vmem:[%s7811_s29 + $0x44] sm:$0xf]  ;;  %v5229_v11 = vor.u32 %v6538_v3, %v5226_v8  ;;  %v5178_v22 = vld [vmem:[%s7811_s29 + $0x210] sm:$0xf0]  ;;  %v5053_v3 = vor.u32 %v6494_v1, %v5050_v30 }
 0x279   : > { %3905 = vmatmul.bf16.vlgmr.msra.gmra.mxu2 %v8649_v15  ;;  %3918 = vmatmul.bf16.vlgmr.msra.gmra.mxu3 %v8653_v7  ;;  %v4957_v59 = vor.u32 %v6470_v37, %v4954_v52  ;;  %v6618_v24 = vld [vmem:[%s7811_s29 + $0x4e4] sm:$0xf]  ;;  %v5546_v60 = vld [vmem:[%s7811_s29 + $0x4f0] sm:$0xf0] }
 0x27a   : > { %v6682_v4 = vld [vmem:[%s7811_s29 + $0x6e4] sm:$0xf]  ;;  %v5802_v8 = vld [vmem:[%s7811_s29 + $0x6f0] sm:$0xf0]  ;;  %v5549_v37 = vor.u32 %v6618_v24, %v5546_v60 }
 0x27b   : > { %3924 = vmatpush.bf16.msrb.mxu0 %v5021_v47  ;;  %3937 = vmatpush.bf16.msrb.mxu1 %v5149_v25  ;;  %v6566_v47 = vld [vmem:[%s7811_s29 + $0x344] sm:$0xf]  ;;  %v5338_v25 = vld [vmem:[%s7811_s29 + $0x350] sm:$0xf0]  ;;  %v5805_v48 = vor.u32 %v6682_v4, %v5802_v8 }
 0x27c   : > { %3950 = vmatpush.bf16.msrb.mxu2 %v5277_v18  ;;  %3963 = vmatpush.bf16.msrb.mxu3 %v5405_v53  ;;  %v6466_v18 = vld [vmem:[%s7811_s29 + $0x24] sm:$0xf]  ;;  %v4938_v53 = vld [vmem:[%s7811_s29 + $0x30] sm:$0xf0]  ;;  %v5341_v54 = vor.u32 %v6566_v47, %v5338_v25 }
 0x27d   : > { %v4941_v29 = vor.u32 %v6466_v18, %v4938_v53  ;;  %v6714_v5 = vld [vmem:[%s7811_s29 + $0x7e4] sm:$0xf]  ;;  %v5930_v44 = vld [vmem:[%s7811_s29 + $0x7f0] sm:$0xf0] }
 0x27e   : > { %v5933_v9 = vor.u32 %v6714_v5, %v5930_v44  ;;  %v6646_v50 = vld [vmem:[%s7811_s29 + $0x5c4] sm:$0xf]  ;;  %v5658_v21 = vld [vmem:[%s7811_s29 + $0x5d0] sm:$0xf0] }
 0x27f   : > { %3925 = vmatpush.bf16.msrb.mxu0 %v5005_v23  ;;  %3938 = vmatpush.bf16.msrb.mxu1 %v5133_v19  ;;  %v6562_v23 = vld [vmem:[%s7811_s29 + $0x324] sm:$0xf]  ;;  %v5322_v19 = vld [vmem:[%s7811_s29 + $0x330] sm:$0xf0]  ;;  %v5661_v53 = vor.u32 %v6646_v50, %v5658_v21 }
 0x280   : > { %3951 = vmatpush.bf16.msrb.mxu2 %v5261_v41  ;;  %3964 = vmatpush.bf16.msrb.mxu3 %v5389_v61  ;;  %v5069_v41 = vor.u32 %v6498_v58, %v5066_v20  ;;  %v4922_v61 = vld [vmem:[%s7811_s29 + $0x10] sm:$0xf0]  ;;  %v5325_v35 = vor.u32 %v6562_v23, %v5322_v19  ;;  %v6678_v47 = vld [vmem:[%s7811_s29 + $0x6c4] sm:$0xf] }
 0x281   : > { %v4925_v51 = vor.u32 %v6462_v28, %v4922_v61  ;;  %v5786_v25 = vld [vmem:[%s7811_s29 + $0x6d0] sm:$0xf0]  ;;  %v6642_v56 = vld [vmem:[%s7811_s29 + $0x5a4] sm:$0xf] }
 0x282   : > { %v5789_v58 = vor.u32 %v6678_v47, %v5786_v25  ;;  %v5642_v26 = vld [vmem:[%s7811_s29 + $0x5b0] sm:$0xf0]  ;;  %v6674_v23 = vld [vmem:[%s7811_s29 + $0x6a4] sm:$0xf] }
 0x283   : > { %3926 = vmatpush.bf16.msrb.mxu0 %v4989_v57  ;;  %3939 = vmatpush.bf16.msrb.mxu1 %v5117_v46  ;;  %v6558_v57 = vld [vmem:[%s7811_s29 + $0x304] sm:$0xf]  ;;  %v5306_v46 = vld [vmem:[%s7811_s29 + $0x310] sm:$0xf0]  ;;  %v5645_v61 = vor.u32 %v6642_v56, %v5642_v26 }
 0x284   : > { %3952 = vmatpush.bf16.msrb.mxu2 %v5245_v33  ;;  %3965 = vmatpush.bf16.msrb.mxu3 %v5373_v36  ;;  %v6650_v33 = vld [vmem:[%s7811_s29 + $0x5e4] sm:$0xf]  ;;  %v5674_v36 = vld [vmem:[%s7811_s29 + $0x5f0] sm:$0xf0] }
 0x285   : > { %v5677_v52 = vor.u32 %v6650_v33, %v5674_v36  ;;  %v5770_v19 = vld [vmem:[%s7811_s29 + $0x6b0] sm:$0xf0]  ;;  %v6706_v28 = vld [vmem:[%s7811_s29 + $0x7a4] sm:$0xf] }
 0x286   : > { %v6606_v1 = vld [vmem:[%s7811_s29 + $0x484] sm:$0xf]  ;;  %v5498_v30 = vld [vmem:[%s7811_s29 + $0x490] sm:$0xf0] }
 0x287   : > { %3927 = vmatpush.bf16.msrb.mxu0 %v4973_v6  ;;  %3940 = vmatpush.bf16.msrb.mxu1 %v5101_v63  ;;  %v5181_v6 = vor.u32 %v6526_v42, %v5178_v22  ;;  %v5309_v63 = vor.u32 %v6558_v57, %v5306_v46  ;;  %v6638_v42 = vld [vmem:[%s7811_s29 + $0x584] sm:$0xf]  ;;  %v5626_v22 = vld [vmem:[%s7811_s29 + $0x590] sm:$0xf0]  ;;  %v5501_v33 = vor.u32 %v6606_v1, %v5498_v30 }
 0x288   : > { %3953 = vmatpush.bf16.msrb.mxu2 %v5229_v11  ;;  %3966 = vmatpush.bf16.msrb.mxu3 %v5357_v0  ;;  %v6614_v11 = vld [vmem:[%s7811_s29 + $0x4c4] sm:$0xf]  ;;  %v5530_v0 = vld [vmem:[%s7811_s29 + $0x4d0] sm:$0xf0]  ;;  %v5629_v36 = vor.u32 %v6638_v42, %v5626_v22 }
 0x289   : > { %v5533_v18 = vor.u32 %v6614_v11, %v5530_v0  ;;  %v6670_v57 = vld [vmem:[%s7811_s29 + $0x684] sm:$0xf]  ;;  %v5754_v46 = vld [vmem:[%s7811_s29 + $0x690] sm:$0xf0] }
 0x28a   : > { %v6702_v24 = vld [vmem:[%s7811_s29 + $0x784] sm:$0xf]  ;;  %v5882_v60 = vld [vmem:[%s7811_s29 + $0x790] sm:$0xf0] }
 0x28b   : > { %3928 = vmatpush.bf16.msrb.mxu0 %v4957_v59  ;;  %3941 = vmatpush.bf16.msrb.mxu1 %v5085_v17  ;;  %v6710_v59 = vld [vmem:[%s7811_s29 + $0x7c4] sm:$0xf]  ;;  %v5914_v17 = vld [vmem:[%s7811_s29 + $0x7d0] sm:$0xf0]  ;;  %v5885_v8 = vor.u32 %v6702_v24, %v5882_v60 }
 0x28c   : > { %3954 = vmatpush.bf16.msrb.mxu2 %v5213_v55  ;;  %3967 = vmatpush.bf16.msrb.mxu3 %v5341_v54  ;;  %v6610_v55 = vld [vmem:[%s7811_s29 + $0x4a4] sm:$0xf]  ;;  %v5514_v54 = vld [vmem:[%s7811_s29 + $0x4b0] sm:$0xf0]  ;;  %v5917_v20 = vor.u32 %v6710_v59, %v5914_v17 }
 0x28d   : > { %v6602_v4 = vld [vmem:[%s7811_s29 + $0x464] sm:$0xf]  ;;  %v5610_v44 = vld [vmem:[%s7811_s29 + $0x570] sm:$0xf0] }
 0x28e   : > { %v6634_v5 = vld [vmem:[%s7811_s29 + $0x564] sm:$0xf]  ;;  %v5594_v25 = vld [vmem:[%s7811_s29 + $0x550] sm:$0xf0] }
 0x28f   : > { %3929 = vmatpush.bf16.msrb.mxu0 %v4941_v29  ;;  %3942 = vmatpush.bf16.msrb.mxu1 %v5069_v41  ;;  %v5898_v29 = vld [vmem:[%s7811_s29 + $0x7b0] sm:$0xf0]  ;;  %v5517_v41 = vor.u32 %v6610_v55, %v5514_v54  ;;  %v5613_v0 = vor.u32 %v6634_v5, %v5610_v44  ;;  %v6630_v47 = vld [vmem:[%s7811_s29 + $0x544] sm:$0xf] }
 0x290   : > { %3955 = vmatpush.bf16.msrb.mxu2 %v5197_v34  ;;  %3968 = vmatpush.bf16.msrb.mxu3 %v5325_v35  ;;  %v5773_v34 = vor.u32 %v6674_v23, %v5770_v19  ;;  %v5901_v35 = vor.u32 %v6706_v28, %v5898_v29  ;;  %v6662_v59 = vld [vmem:[%s7811_s29 + $0x644] sm:$0xf]  ;;  %v5722_v17 = vld [vmem:[%s7811_s29 + $0x650] sm:$0xf0]  ;;  %v5597_v54 = vor.u32 %v6630_v47, %v5594_v25 }
 0x291   : > { %v5725_v56 = vor.u32 %v6662_v59, %v5722_v17  ;;  %v6626_v23 = vld [vmem:[%s7811_s29 + $0x524] sm:$0xf]  ;;  %v5578_v19 = vld [vmem:[%s7811_s29 + $0x530] sm:$0xf0] }
 0x292   : > { %v6658_v28 = vld [vmem:[%s7811_s29 + $0x624] sm:$0xf]  ;;  %v5706_v29 = vld [vmem:[%s7811_s29 + $0x630] sm:$0xf0] }
 0x293   : > { %3930 = vmatpush.bf16.msrb.mxu0 %v4925_v51  ;;  %3943 = vmatpush.bf16.msrb.mxu1 %v5053_v3  ;;  %v5482_v51 = vld [vmem:[%s7811_s29 + $0x470] sm:$0xf0]  ;;  %v5757_v3 = vor.u32 %v6670_v57, %v5754_v46  ;;  %v6590_v1 = vld [vmem:[%s7811_s29 + $0x404] sm:$0xf]  ;;  %v5709_v57 = vor.u32 %v6658_v28, %v5706_v29 }
 0x294   : > { %3956 = vmatpush.bf16.msrb.mxu2 %v5181_v6  ;;  %3969 = vmatpush.bf16.msrb.mxu3 %v5309_v63  ;;  %v6666_v6 = vld [vmem:[%s7811_s29 + $0x664] sm:$0xf]  ;;  %v5738_v63 = vld [vmem:[%s7811_s29 + $0x670] sm:$0xf0]  ;;  %v5485_v11 = vor.u32 %v6602_v4, %v5482_v51 }
 0x295   : > { %v5741_v50 = vor.u32 %v6666_v6, %v5738_v63  ;;  %v6622_v42 = vld [vmem:[%s7811_s29 + $0x504] sm:$0xf]  ;;  %v5562_v22 = vld [vmem:[%s7811_s29 + $0x510] sm:$0xf0] }
 0x296   : > { %3931 = vmatmul.bf16.vlgmr.msrb.gmra.mxu0 %v8506_v12  ;;  %3944 = vmatmul.bf16.vlgmr.msrb.gmra.mxu1 %v8508_v13  ;;  %v6654_v24 = vld [vmem:[%s7811_s29 + $0x604] sm:$0xf]  ;;  %v5690_v60 = vld [vmem:[%s7811_s29 + $0x610] sm:$0xf0]  ;;  %v5565_v6 = vor.u32 %v6622_v42, %v5562_v22 }
 0x297   : > { %3975 = vmatpush.bf16.msra.mxu0 %v5549_v37  ;;  %3988 = vmatpush.bf16.msra.mxu1 %v5677_v52  ;;  %v6698_v37 = vld [vmem:[%s7811_s29 + $0x764] sm:$0xf]  ;;  %v5866_v52 = vld [vmem:[%s7811_s29 + $0x770] sm:$0xf0] }
 0x298   : > { %4001 = vmatpush.bf16.msra.mxu2 %v5805_v48  ;;  %4014 = vmatpush.bf16.msra.mxu3 %v5933_v9  ;;  %v6598_v48 = vld [vmem:[%s7811_s29 + $0x444] sm:$0xf]  ;;  %v5466_v9 = vld [vmem:[%s7811_s29 + $0x450] sm:$0xf0]  ;;  %v5869_v21 = vor.u32 %v6698_v37, %v5866_v52 }
 0x299   : > { %3957 = vmatmul.bf16.vlgmr.msrb.gmra.mxu2 %v8510_v14  ;;  %3970 = vmatmul.bf16.vlgmr.msrb.gmra.mxu3 %v8512_v16  ;;  %v5469_v55 = vor.u32 %v6598_v48, %v5466_v9  ;;  %v6746_v4 = vld [vmem:[%s7811_s29 + $0x8e4] sm:$0xf]  ;;  %v6058_v51 = vld [vmem:[%s7811_s29 + $0x8f0] sm:$0xf0] }
 0x29a   : > { %v6810_v5 = vld [vmem:[%s7811_s29 + $0xae4] sm:$0xf]  ;;  %v6314_v63 = vld [vmem:[%s7811_s29 + $0xaf0] sm:$0xf0]  ;;  %v6061_v48 = vor.u32 %v6746_v4, %v6058_v51 }
 0x29b   : > { %3976 = vmatpush.bf16.msra.mxu0 %v5533_v18  ;;  %3989 = vmatpush.bf16.msra.mxu1 %v5661_v53  ;;  %v6694_v18 = vld [vmem:[%s7811_s29 + $0x744] sm:$0xf]  ;;  %v5850_v53 = vld [vmem:[%s7811_s29 + $0x750] sm:$0xf0]  ;;  %v6317_v47 = vor.u32 %v6810_v5, %v6314_v63 }
 0x29c   : > { %4002 = vmatpush.bf16.msra.mxu2 %v5789_v58  ;;  %4015 = vmatpush.bf16.msra.mxu3 %v5917_v20  ;;  %v6594_v58 = vld [vmem:[%s7811_s29 + $0x424] sm:$0xf]  ;;  %v5450_v20 = vld [vmem:[%s7811_s29 + $0x430] sm:$0xf0]  ;;  %v5853_v26 = vor.u32 %v6694_v18, %v5850_v53 }
 0x29d   : > { %v5453_v30 = vor.u32 %v6594_v58, %v5450_v20  ;;  %v6842_v37 = vld [vmem:[%s7811_s29 + $0xbe4] sm:$0xf]  ;;  %v6442_v52 = vld [vmem:[%s7811_s29 + $0xbf0] sm:$0xf0] }
 0x29e   : > { %v6445_v25 = vor.u32 %v6842_v37, %v6442_v52  ;;  %v6774_v59 = vld [vmem:[%s7811_s29 + $0x9c4] sm:$0xf]  ;;  %v6170_v17 = vld [vmem:[%s7811_s29 + $0x9d0] sm:$0xf0] }
 0x29f   : > { %3977 = vmatpush.bf16.msra.mxu0 %v5517_v41  ;;  %3990 = vmatpush.bf16.msra.mxu1 %v5645_v61  ;;  %v6690_v41 = vld [vmem:[%s7811_s29 + $0x724] sm:$0xf]  ;;  %v5834_v61 = vld [vmem:[%s7811_s29 + $0x730] sm:$0xf0]  ;;  %v6173_v20 = vor.u32 %v6774_v59, %v6170_v17 }
 0x2a0   : > { %4003 = vmatpush.bf16.msra.mxu2 %v5773_v34  ;;  %4016 = vmatpush.bf16.msra.mxu3 %v5901_v35  ;;  %v5581_v34 = vor.u32 %v6626_v23, %v5578_v19  ;;  %v5434_v35 = vld [vmem:[%s7811_s29 + $0x410] sm:$0xf0]  ;;  %v5837_v46 = vor.u32 %v6690_v41, %v5834_v61  ;;  %v6806_v18 = vld [vmem:[%s7811_s29 + $0xac4] sm:$0xf] }
 0x2a1   : > { %v5437_v44 = vor.u32 %v6590_v1, %v5434_v35  ;;  %v6298_v53 = vld [vmem:[%s7811_s29 + $0xad0] sm:$0xf0]  ;;  %v6770_v28 = vld [vmem:[%s7811_s29 + $0x9a4] sm:$0xf] }
 0x2a2   : > { %v6301_v23 = vor.u32 %v6806_v18, %v6298_v53  ;;  %v6154_v29 = vld [vmem:[%s7811_s29 + $0x9b0] sm:$0xf0]  ;;  %v6802_v41 = vld [vmem:[%s7811_s29 + $0xaa4] sm:$0xf] }
 0x2a3   : > { %3978 = vmatpush.bf16.msra.mxu0 %v5501_v33  ;;  %3991 = vmatpush.bf16.msra.mxu1 %v5629_v36  ;;  %v6686_v33 = vld [vmem:[%s7811_s29 + $0x704] sm:$0xf]  ;;  %v5818_v36 = vld [vmem:[%s7811_s29 + $0x710] sm:$0xf0]  ;;  %v6157_v35 = vor.u32 %v6770_v28, %v6154_v29 }
 0x2a4   : > { %4004 = vmatpush.bf16.msra.mxu2 %v5757_v3  ;;  %4017 = vmatpush.bf16.msra.mxu3 %v5885_v8  ;;  %v6778_v3 = vld [vmem:[%s7811_s29 + $0x9e4] sm:$0xf]  ;;  %v6186_v8 = vld [vmem:[%s7811_s29 + $0x9f0] sm:$0xf0] }
 0x2a5   : > { %v6189_v9 = vor.u32 %v6778_v3, %v6186_v8  ;;  %v6282_v61 = vld [vmem:[%s7811_s29 + $0xab0] sm:$0xf0]  ;;  %v6834_v1 = vld [vmem:[%s7811_s29 + $0xba4] sm:$0xf] }
 0x2a6   : > { %v6734_v42 = vld [vmem:[%s7811_s29 + $0x884] sm:$0xf]  ;;  %v6010_v22 = vld [vmem:[%s7811_s29 + $0x890] sm:$0xf0] }
 0x2a7   : > { %3979 = vmatpush.bf16.msra.mxu0 %v5485_v11  ;;  %3992 = vmatpush.bf16.msra.mxu1 %v5613_v0  ;;  %v5693_v11 = vor.u32 %v6654_v24, %v5690_v60  ;;  %v5821_v0 = vor.u32 %v6686_v33, %v5818_v36  ;;  %v6766_v24 = vld [vmem:[%s7811_s29 + $0x984] sm:$0xf]  ;;  %v6138_v60 = vld [vmem:[%s7811_s29 + $0x990] sm:$0xf0]  ;;  %v6013_v3 = vor.u32 %v6734_v42, %v6010_v22 }
 0x2a8   : > { %4005 = vmatpush.bf16.msra.mxu2 %v5741_v50  ;;  %4018 = vmatpush.bf16.msra.mxu3 %v5869_v21  ;;  %v6742_v50 = vld [vmem:[%s7811_s29 + $0x8c4] sm:$0xf]  ;;  %v6042_v21 = vld [vmem:[%s7811_s29 + $0x8d0] sm:$0xf0]  ;;  %v6141_v8 = vor.u32 %v6766_v24, %v6138_v60 }
 0x2a9   : > { %v6045_v58 = vor.u32 %v6742_v50, %v6042_v21  ;;  %v6798_v33 = vld [vmem:[%s7811_s29 + $0xa84] sm:$0xf]  ;;  %v6266_v36 = vld [vmem:[%s7811_s29 + $0xa90] sm:$0xf0] }
 0x2aa   : > { %v6830_v4 = vld [vmem:[%s7811_s29 + $0xb84] sm:$0xf]  ;;  %v6394_v51 = vld [vmem:[%s7811_s29 + $0xb90] sm:$0xf0] }
 0x2ab   : > { %3980 = vmatpush.bf16.msra.mxu0 %v5469_v55  ;;  %3993 = vmatpush.bf16.msra.mxu1 %v5597_v54  ;;  %v6838_v55 = vld [vmem:[%s7811_s29 + $0xbc4] sm:$0xf]  ;;  %v6426_v54 = vld [vmem:[%s7811_s29 + $0xbd0] sm:$0xf0]  ;;  %v6397_v63 = vor.u32 %v6830_v4, %v6394_v51 }
 0x2ac   : > { %4006 = vmatpush.bf16.msra.mxu2 %v5725_v56  ;;  %4019 = vmatpush.bf16.msra.mxu3 %v5853_v26  ;;  %v6738_v56 = vld [vmem:[%s7811_s29 + $0x8a4] sm:$0xf]  ;;  %v6026_v26 = vld [vmem:[%s7811_s29 + $0x8b0] sm:$0xf0]  ;;  %v6429_v19 = vor.u32 %v6838_v55, %v6426_v54 }
 0x2ad   : > { %v6730_v5 = vld [vmem:[%s7811_s29 + $0x864] sm:$0xf]  ;;  %v6122_v52 = vld [vmem:[%s7811_s29 + $0x970] sm:$0xf0] }
 0x2ae   : > { %v6762_v37 = vld [vmem:[%s7811_s29 + $0x964] sm:$0xf]  ;;  %v6106_v53 = vld [vmem:[%s7811_s29 + $0x950] sm:$0xf0] }
 0x2af   : > { %3981 = vmatpush.bf16.msra.mxu0 %v5453_v30  ;;  %3994 = vmatpush.bf16.msra.mxu1 %v5581_v34  ;;  %v6410_v30 = vld [vmem:[%s7811_s29 + $0xbb0] sm:$0xf0]  ;;  %v6029_v34 = vor.u32 %v6738_v56, %v6026_v26  ;;  %v6125_v21 = vor.u32 %v6762_v37, %v6122_v52  ;;  %v6758_v18 = vld [vmem:[%s7811_s29 + $0x944] sm:$0xf]  ;;  %v5296_v37 = vld [vmem:[%s7811_s29 + $0x2e8] sm:$0xf] }
 0x2b0   : > { %4007 = vmatpush.bf16.msra.mxu2 %v5709_v57  ;;  %4020 = vmatpush.bf16.msra.mxu3 %v5837_v46  ;;  %v6285_v57 = vor.u32 %v6802_v41, %v6282_v61  ;;  %v6413_v46 = vor.u32 %v6834_v1, %v6410_v30  ;;  %v6790_v55 = vld [vmem:[%s7811_s29 + $0xa44] sm:$0xf]  ;;  %v6234_v54 = vld [vmem:[%s7811_s29 + $0xa50] sm:$0xf0]  ;;  %v6109_v26 = vor.u32 %v6758_v18, %v6106_v53 }
 0x2b1   : > { %v6237_v28 = vor.u32 %v6790_v55, %v6234_v54  ;;  %v6754_v41 = vld [vmem:[%s7811_s29 + $0x924] sm:$0xf]  ;;  %v6090_v61 = vld [vmem:[%s7811_s29 + $0x930] sm:$0xf0]  ;;  %v5152_v55 = vld [vmem:[%s7811_s29 + $0x1c8] sm:$0xf] }
 0x2b2   : > { %v6786_v1 = vld [vmem:[%s7811_s29 + $0xa24] sm:$0xf]  ;;  %v6218_v30 = vld [vmem:[%s7811_s29 + $0xa30] sm:$0xf0]  ;;  %v6521_v54 = vld [vmem:[%s7811_s29 + $0x1d4] sm:$0xf0] }
 0x2b3   : > { %3982 = vmatpush.bf16.msra.mxu0 %v5437_v44  ;;  %3995 = vmatpush.bf16.msra.mxu1 %v5565_v6  ;;  %v5994_v44 = vld [vmem:[%s7811_s29 + $0x870] sm:$0xf0]  ;;  %v6269_v6 = vor.u32 %v6798_v33, %v6266_v36  ;;  %v6718_v42 = vld [vmem:[%s7811_s29 + $0x804] sm:$0xf]  ;;  %v6221_v33 = vor.u32 %v6786_v1, %v6218_v30  ;;  %v5136_v1 = vld [vmem:[%s7811_s29 + $0x1a8] sm:$0xf] }
 0x2b4   : > { %4008 = vmatpush.bf16.msra.mxu2 %v5693_v11  ;;  %4021 = vmatpush.bf16.msra.mxu3 %v5821_v0  ;;  %v6794_v11 = vld [vmem:[%s7811_s29 + $0xa64] sm:$0xf]  ;;  %v6250_v0 = vld [vmem:[%s7811_s29 + $0xa70] sm:$0xf0]  ;;  %v5997_v50 = vor.u32 %v6730_v5, %v5994_v44  ;;  %v5040_v5 = vld [vmem:[%s7811_s29 + $0xe8] sm:$0xf] }
 0x2b5   : > { %v6253_v59 = vor.u32 %v6794_v11, %v6250_v0  ;;  %v6750_v24 = vld [vmem:[%s7811_s29 + $0x904] sm:$0xf]  ;;  %v6074_v60 = vld [vmem:[%s7811_s29 + $0x910] sm:$0xf0]  ;;  %v6493_v44 = vld [vmem:[%s7811_s29 + $0xf4] sm:$0xf0] }
 0x2b6   : > { %3983 = vmatmul.bf16.vlgmr.msra.gmra.mxu0 %v8577_v39  ;;  %3996 = vmatmul.bf16.vlgmr.msra.gmra.mxu1 %v8579_v49  ;;  %v6782_v4 = vld [vmem:[%s7811_s29 + $0xa04] sm:$0xf]  ;;  %v6202_v51 = vld [vmem:[%s7811_s29 + $0xa10] sm:$0xf0]  ;;  %v6077_v11 = vor.u32 %v6750_v24, %v6074_v60  ;;  %v6557_v0 = vld [vmem:[%s7811_s29 + $0x2f4] sm:$0xf0] }
 0x2b7   : > { %4027 = vmatpush.bf16.msrb.mxu0 %v6061_v48  ;;  %4040 = vmatpush.bf16.msrb.mxu1 %v6189_v9  ;;  %v6826_v48 = vld [vmem:[%s7811_s29 + $0xb64] sm:$0xf]  ;;  %v6378_v9 = vld [vmem:[%s7811_s29 + $0xb70] sm:$0xf0]  ;;  %v5297_v18 = vor.u32 %v6557_v0, %v5296_v37  ;;  %v6517_v30 = vld [vmem:[%s7811_s29 + $0x1b4] sm:$0xf0] }
 0x2b8   : > { %4053 = vmatpush.bf16.msrb.mxu2 %v6317_v47  ;;  %4066 = vmatpush.bf16.msrb.mxu3 %v6445_v25  ;;  %v6726_v47 = vld [vmem:[%s7811_s29 + $0x844] sm:$0xf]  ;;  %v5978_v25 = vld [vmem:[%s7811_s29 + $0x850] sm:$0xf0]  ;;  %v6381_v17 = vor.u32 %v6826_v48, %v6378_v9  ;;  %v5424_v48 = vld [vmem:[%s7811_s29 + $0x3e8] sm:$0xf]  ;;  %v5137_v60 = vor.u32 %v6517_v30, %v5136_v1 }
 0x2b9   : > { %4009 = vmatmul.bf16.vlgmr.msra.gmra.mxu2 %v8584_v62  ;;  %4022 = vmatmul.bf16.vlgmr.msra.gmra.mxu3 %v8586_v45  ;;  %v5981_v56 = vor.u32 %v6726_v47, %v5978_v25  ;;  %v6589_v9 = vld [vmem:[%s7811_s29 + $0x3f4] sm:$0xf0]  ;;  %v5041_v47 = vor.u32 %v6493_v44, %v5040_v5  ;;  %v5248_v5 = vld [vmem:[%s7811_s29 + $0x288] sm:$0xf]  ;;  %v7027_v37 = vld [vmem:[%s634_s11] sm:$0xf] }
 0x2ba   : > { %v5425_v53 = vor.u32 %v6589_v9, %v5424_v48  ;;  %v6545_v44 = vld [vmem:[%s7811_s29 + $0x294] sm:$0xf0]  ;;  %v4976_v48 = vld [vmem:[%s7811_s29 + $0x68] sm:$0xf]  ;;  %s4597_s11 = scalar_lea.sflag [#allocation5], %s7808_s24 }
 0x2bb   : > { %4028 = vmatpush.bf16.msrb.mxu0 %v6045_v58  ;;  %4041 = vmatpush.bf16.msrb.mxu1 %v6173_v20  ;;  %v6822_v58 = vld [vmem:[%s7811_s29 + $0xb44] sm:$0xf]  ;;  %v6362_v20 = vld [vmem:[%s7811_s29 + $0xb50] sm:$0xf0]  ;;  %v6477_v9 = vld [vmem:[%s7811_s29 + $0x74] sm:$0xf0] }
 0x2bc   : > { %4054 = vmatpush.bf16.msrb.mxu2 %v6301_v23  ;;  %4067 = vmatpush.bf16.msrb.mxu3 %v6429_v19  ;;  %v6722_v23 = vld [vmem:[%s7811_s29 + $0x824] sm:$0xf]  ;;  %v5962_v19 = vld [vmem:[%s7811_s29 + $0x830] sm:$0xf0]  ;;  %v6365_v29 = vor.u32 %v6822_v58, %v6362_v20  ;;  %v5280_v58 = vld [vmem:[%s7811_s29 + $0x2c8] sm:$0xf] }
 0x2bd   : > { %v5965_v22 = vor.u32 %v6722_v23, %v5962_v19  ;;  %v6553_v20 = vld [vmem:[%s7811_s29 + $0x2d4] sm:$0xf0]  ;;  %v5153_v19 = vor.u32 %v6521_v54, %v5152_v55  ;;  %v5360_v55 = vld [vmem:[%s7811_s29 + $0x368] sm:$0xf] }
 0x2be   : > { %v6573_v54 = vld [vmem:[%s7811_s29 + $0x374] sm:$0xf0]  ;;  %v5216_v30 = vld [vmem:[%s7811_s29 + $0x248] sm:$0xf] }
 0x2bf   : > { %4029 = vmatpush.bf16.msrb.mxu0 %v6029_v34  ;;  %4042 = vmatpush.bf16.msrb.mxu1 %v6157_v35  ;;  %v6818_v34 = vld [vmem:[%s7811_s29 + $0xb24] sm:$0xf]  ;;  %v6346_v35 = vld [vmem:[%s7811_s29 + $0xb30] sm:$0xf0]  ;;  %v6505_v1 = vld [vmem:[%s7811_s29 + $0x154] sm:$0xf0] }
 0x2c0   : > { %4055 = vmatpush.bf16.msrb.mxu2 %v6285_v57  ;;  %4068 = vmatpush.bf16.msrb.mxu3 %v6413_v46  ;;  %v6093_v57 = vor.u32 %v6754_v41, %v6090_v61  ;;  %v5946_v46 = vld [vmem:[%s7811_s29 + $0x810] sm:$0xf0]  ;;  %v6349_v36 = vor.u32 %v6818_v34, %v6346_v35  ;;  %v5281_v41 = vor.u32 %v6553_v20, %v5280_v58  ;;  %v5264_v34 = vld [vmem:[%s7811_s29 + $0x2a8] sm:$0xf]  ;;  %v6549_v35 = vld [vmem:[%s7811_s29 + $0x2b4] sm:$0xf0] }
 0x2c1   : > { %v5949_v52 = vor.u32 %v6718_v42, %v5946_v46  ;;  %v5392_v42 = vld [vmem:[%s7811_s29 + $0x3a8] sm:$0xf] }
 0x2c3   : > { %4030 = vmatpush.bf16.msrb.mxu0 %v6013_v3  ;;  %4043 = vmatpush.bf16.msrb.mxu1 %v6141_v8  ;;  %v6814_v3 = vld [vmem:[%s7811_s29 + $0xb04] sm:$0xf]  ;;  %v6330_v8 = vld [vmem:[%s7811_s29 + $0xb10] sm:$0xf0] }
 0x2c4   : > { %4056 = vmatpush.bf16.msrb.mxu2 %v6269_v6  ;;  %4069 = vmatpush.bf16.msrb.mxu3 %v6397_v63  ;;  %v5168_v6 = vld [vmem:[%s7811_s29 + $0x1e8] sm:$0xf]  ;;  %v6525_v63 = vld [vmem:[%s7811_s29 + $0x1f4] sm:$0xf0] }
 0x2c5   : > { %v5169_v25 = vor.u32 %v6525_v63, %v5168_v6  ;;  %v5376_v6 = vld [vmem:[%s7811_s29 + $0x388] sm:$0xf]  ;;  %v6577_v63 = vld [vmem:[%s7811_s29 + $0x394] sm:$0xf0] }
 0x2c7   : > { %4031 = vmatpush.bf16.msrb.mxu0 %v5997_v50  ;;  %4044 = vmatpush.bf16.msrb.mxu1 %v6125_v21  ;;  %v6205_v50 = vor.u32 %v6782_v4, %v6202_v51  ;;  %v6333_v21 = vor.u32 %v6814_v3, %v6330_v8  ;;  %v5265_v4 = vor.u32 %v6549_v35, %v5264_v34  ;;  %v5120_v3 = vld [vmem:[%s7811_s29 + $0x188] sm:$0xf]  ;;  %v6513_v8 = vld [vmem:[%s7811_s29 + $0x194] sm:$0xf0] }
 0x2c8   : > { %4057 = vmatpush.bf16.msrb.mxu2 %v6253_v59  ;;  %4070 = vmatpush.bf16.msrb.mxu3 %v6381_v17  ;;  %v5024_v59 = vld [vmem:[%s7811_s29 + $0xc8] sm:$0xf]  ;;  %v6489_v17 = vld [vmem:[%s7811_s29 + $0xd4] sm:$0xf0]  ;;  %v5121_v0 = vor.u32 %v6513_v8, %v5120_v3 }
 0x2c9   : > { %v5025_v23 = vor.u32 %v6489_v17, %v5024_v59  ;;  %v5232_v59 = vld [vmem:[%s7811_s29 + $0x268] sm:$0xf]  ;;  %v6537_v34 = vld [vmem:[%s7811_s29 + $0x254] sm:$0xf0] }
 0x2ca   : > { %v5344_v35 = vld [vmem:[%s7811_s29 + $0x348] sm:$0xf]  ;;  %v6501_v3 = vld [vmem:[%s7811_s29 + $0x134] sm:$0xf0] }
 0x2cb   : > { %4032 = vmatpush.bf16.msrb.mxu0 %v5981_v56  ;;  %4045 = vmatpush.bf16.msrb.mxu1 %v6109_v26  ;;  %v5408_v56 = vld [vmem:[%s7811_s29 + $0x3c8] sm:$0xf]  ;;  %v6585_v26 = vld [vmem:[%s7811_s29 + $0x3d4] sm:$0xf0] }
 0x2cc   : > { %4058 = vmatpush.bf16.msrb.mxu2 %v6237_v28  ;;  %4071 = vmatpush.bf16.msrb.mxu3 %v6365_v29  ;;  %v5008_v28 = vld [vmem:[%s7811_s29 + $0xa8] sm:$0xf]  ;;  %v6485_v29 = vld [vmem:[%s7811_s29 + $0xb4] sm:$0xf0]  ;;  %v5409_v61 = vor.u32 %v6585_v26, %v5408_v56  ;;  %v4977_v56 = vor.u32 %v6477_v9, %v4976_v48 }
 0x2cd   : > { %v5009_v24 = vor.u32 %v6485_v29, %v5008_v28  ;;  %v5200_v8 = vld [vmem:[%s7811_s29 + $0x228] sm:$0xf] }
 0x2cf   : > { %4033 = vmatpush.bf16.msrb.mxu0 %v5965_v22  ;;  %4046 = vmatpush.bf16.msrb.mxu1 %v6093_v57  ;;  %v6581_v22 = vld [vmem:[%s7811_s29 + $0x3b4] sm:$0xf0] }
 0x2d0   : > { %4059 = vmatpush.bf16.msrb.mxu2 %v6221_v33  ;;  %4072 = vmatpush.bf16.msrb.mxu3 %v6349_v36  ;;  %v4992_v33 = vld [vmem:[%s7811_s29 + $0x88] sm:$0xf]  ;;  %v6481_v36 = vld [vmem:[%s7811_s29 + $0x94] sm:$0xf0]  ;;  %v5393_v51 = vor.u32 %v6581_v22, %v5392_v42 }
 0x2d1   : > { %v6569_v42 = vld [vmem:[%s7811_s29 + $0x354] sm:$0xf0] }
 0x2d2   : > { %v3776_v57 = vpop.f32.mrf.mxu0  ;;  %v8869_v46 = vpop.f32.mrf.mxu1 }
 0x2d3   : > { %4034 = vmatpush.bf16.msrb.mxu0 %v5949_v52  ;;  %4047 = vmatpush.bf16.msrb.mxu1 %v6077_v11  ;;  %v1835_v52 = vperm.slane %v7027_v37, 0  ;;  %v4993_v11 = vor.u32 %v6481_v36, %v4992_v33  ;;  %v6469_v33 = vld [vmem:[%s7811_s29 + $0x34] sm:$0xf0]  ;;  %v5217_v36 = vor.u32 %v6537_v34, %v5216_v30 }
 0x2d4   : > { %4060 = vmatpush.bf16.msrb.mxu2 %v6205_v50  ;;  %4073 = vmatpush.bf16.msrb.mxu3 %v6333_v21  ;;  %v5249_v50 = vor.u32 %v6545_v44, %v5248_v5  ;;  %v5377_v21 = vor.u32 %v6577_v63, %v5376_v6  ;;  %v6533_v44 = vld [vmem:[%s7811_s29 + $0x234] sm:$0xf0]  ;;  %v5328_v6 = vld [vmem:[%s7811_s29 + $0x328] sm:$0xf] }
 0x2d5   : > { %v1843_v28 = vmul.f32 %v1835_v52, %v8490_v38  ;;  %v6565_v63 = vld [vmem:[%s7811_s29 + $0x334] sm:$0xf0] }
 0x2d6   : > { %4035 = vmatmul.bf16.vlgmr.msrb.gmra.mxu0 %v8645_v2  ;;  %4048 = vmatmul.bf16.vlgmr.msrb.gmra.mxu1 %v8647_v10 }
 0x2d7   : > { %4079 = vmatpush.bf16.msra.mxu0 %v5041_v47  ;;  %4092 = vmatpush.bf16.msra.mxu1 %v5169_v25  ;;  %v5104_v47 = vld [vmem:[%s7811_s29 + $0x168] sm:$0xf]  ;;  %v6509_v25 = vld [vmem:[%s7811_s29 + $0x174] sm:$0xf0]  ;;  %v3777_v22 = vadd.f32 %v3776_v57, %v1843_v28 }
 0x2d8   : > { %4105 = vmatpush.bf16.msra.mxu2 %v5297_v18  ;;  %4118 = vmatpush.bf16.msra.mxu3 %v5425_v53  ;;  %v6541_v53 = vld [vmem:[%s7811_s29 + $0x274] sm:$0xf0]  ;;  %v5105_v26 = vor.u32 %v6509_v25, %v5104_v47  ;;  %v5201_v25 = vor.u32 %v6533_v44, %v5200_v8  ;;  %v5920_v44 = vld [vmem:[%s7811_s29 + $0x7c8] sm:$0xf] }
 0x2d9   : > { %4061 = vmatmul.bf16.vlgmr.msrb.gmra.mxu2 %v8649_v15  ;;  %4074 = vmatmul.bf16.vlgmr.msrb.gmra.mxu3 %v8653_v7  ;;  %v3802_v17 = vpop.f32.mrf.mxu2  ;;  %v8886_v18 = vpop.f32.mrf.mxu3  ;;  %v5233_v29 = vor.u32 %v6541_v53, %v5232_v59  ;;  %v3790_v37 = vadd.f32 %v8869_v46, %v3777_v22  ;;  %v6497_v47 = vld [vmem:[%s7811_s29 + $0x114] sm:$0xf0]  ;;  %v5329_v59 = vor.u32 %v6565_v63, %v5328_v6  ;;  %v5184_v53 = vld [vmem:[%s7811_s29 + $0x208] sm:$0xf] }
 0x2da   : > { %v3778_v58 = vpop.f32.mrf.mxu0  ;;  %v3791_v20 = vpop.f32.mrf.mxu1  ;;  %v6649_v8 = vld [vmem:[%s7811_s29 + $0x5d4] sm:$0xf0] }
 0x2db   : > { %4080 = vmatpush.bf16.msra.mxu0 %v5025_v23  ;;  %4093 = vmatpush.bf16.msra.mxu1 %v5153_v19  ;;  %v4960_v23 = vld [vmem:[%s7811_s29 + $0x48] sm:$0xf]  ;;  %v6473_v19 = vld [vmem:[%s7811_s29 + $0x54] sm:$0xf0]  ;;  %v3803_v46 = vadd.f32 %v3802_v17, %v3790_v37 }
 0x2dc   : > { %4106 = vmatpush.bf16.msra.mxu2 %v5281_v41  ;;  %4119 = vmatpush.bf16.msra.mxu3 %v5409_v61  ;;  %v5361_v41 = vor.u32 %v6573_v54, %v5360_v55  ;;  %v5088_v61 = vld [vmem:[%s7811_s29 + $0x148] sm:$0xf]  ;;  %v4961_v38 = vor.u32 %v6473_v19, %v4960_v23  ;;  %v6529_v55 = vld [vmem:[%s7811_s29 + $0x214] sm:$0xf0] }
 0x2dd   : > { %v5312_v54 = vld [vmem:[%s7811_s29 + $0x308] sm:$0xf]  ;;  %v6561_v58 = vld [vmem:[%s7811_s29 + $0x314] sm:$0xf0]  ;;  %v5185_v30 = vor.u32 %v6529_v55, %v5184_v53 }
 0x2de   : > { %v5552_v20 = vld [vmem:[%s7811_s29 + $0x4e8] sm:$0xf]  ;;  %v6653_v23 = vld [vmem:[%s7811_s29 + $0x5f4] sm:$0xf0]  ;;  %v5313_v34 = vor.u32 %v6561_v58, %v5312_v54 }
 0x2df   : > { %4081 = vmatpush.bf16.msra.mxu0 %v5009_v24  ;;  %4094 = vmatpush.bf16.msra.mxu1 %v5137_v60  ;;  %v5089_v24 = vor.u32 %v6505_v1, %v5088_v61  ;;  %v4944_v60 = vld [vmem:[%s7811_s29 + $0x28] sm:$0xf]  ;;  %v6717_v61 = vld [vmem:[%s7811_s29 + $0x7f4] sm:$0xf0]  ;;  %v3816_v1 = vadd.f32 %v8886_v18, %v3803_v46 }
 0x2e0   : > { %4107 = vmatpush.bf16.msra.mxu2 %v5265_v4  ;;  %4120 = vmatpush.bf16.msra.mxu3 %v5393_v51  ;;  %v5345_v4 = vor.u32 %v6569_v42, %v5344_v35  ;;  %v5072_v51 = vld [vmem:[%s7811_s29 + $0x128] sm:$0xf]  ;;  %v4945_v48 = vor.u32 %v6469_v33, %v4944_v60  ;;  %v6617_v60 = vld [vmem:[%s7811_s29 + $0x4d4] sm:$0xf0] }
 0x2e1   : > { %v3804_v57 = vpop.f32.mrf.mxu2  ;;  %v3817_v5 = vpop.f32.mrf.mxu3  ;;  %v5073_v9 = vor.u32 %v6501_v3, %v5072_v51  ;;  %v5808_v19 = vld [vmem:[%s7811_s29 + $0x6e8] sm:$0xf]  ;;  %v6713_v6 = vld [vmem:[%s7811_s29 + $0x7d4] sm:$0xf0] }
 0x2e2   : > { %v3828_v52 = vpop.f32.mrf.mxu0  ;;  %v5664_v3 = vld [vmem:[%s7811_s29 + $0x5c8] sm:$0xf]  ;;  %v6681_v5 = vld [vmem:[%s7811_s29 + $0x6d4] sm:$0xf0] }
 0x2e3   : > { %4082 = vmatpush.bf16.msra.mxu0 %v4993_v11  ;;  %4095 = vmatpush.bf16.msra.mxu1 %v5121_v0  ;;  %v3841_v11 = vpop.f32.mrf.mxu1  ;;  %v4928_v0 = vld [vmem:[%s7811_s29 + $0x8] sm:$0xf]  ;;  %v3829_v33 = vadd.f32 %v3828_v52, %v3816_v1  ;;  %v5665_v37 = vor.u32 %v6649_v8, %v5664_v3  ;;  %v6709_v53 = vld [vmem:[%s7811_s29 + $0x7b4] sm:$0xf0] }
 0x2e4   : > { %4108 = vmatpush.bf16.msra.mxu2 %v5249_v50  ;;  %4121 = vmatpush.bf16.msra.mxu3 %v5377_v21  ;;  %v6465_v50 = vld [vmem:[%s7811_s29 + $0x14] sm:$0xf0]  ;;  %v5056_v21 = vld [vmem:[%s7811_s29 + $0x108] sm:$0xf] }
 0x2e5   : > { %v4929_v17 = vor.u32 %v6465_v50, %v4928_v0  ;;  %v5057_v28 = vor.u32 %v6497_v47, %v5056_v21  ;;  %v5792_v57 = vld [vmem:[%s7811_s29 + $0x6c8] sm:$0xf]  ;;  %v6613_v0 = vld [vmem:[%s7811_s29 + $0x4b4] sm:$0xf0]  ;;  %v5921_v50 = vor.u32 %v6713_v6, %v5920_v44 }
 0x2e6   : > { %v5520_v52 = vld [vmem:[%s7811_s29 + $0x4a8] sm:$0xf]  ;;  %v6645_v47 = vld [vmem:[%s7811_s29 + $0x5b4] sm:$0xf0] }
 0x2e7   : > { %4083 = vmatpush.bf16.msra.mxu0 %v4977_v56  ;;  %4096 = vmatpush.bf16.msra.mxu1 %v5105_v26  ;;  %v6621_v56 = vld [vmem:[%s7811_s29 + $0x4f4] sm:$0xf0]  ;;  %v5680_v26 = vld [vmem:[%s7811_s29 + $0x5e8] sm:$0xf] }
 0x2e8   : > { %4109 = vmatpush.bf16.msra.mxu2 %v5233_v29  ;;  %4122 = vmatpush.bf16.msra.mxu3 %v5361_v41  ;;  %v6685_v29 = vld [vmem:[%s7811_s29 + $0x6f4] sm:$0xf0]  ;;  %v5936_v41 = vld [vmem:[%s7811_s29 + $0x7e8] sm:$0xf]  ;;  %v5553_v35 = vor.u32 %v6621_v56, %v5552_v20  ;;  %v5681_v42 = vor.u32 %v6653_v23, %v5680_v26 }
 0x2e9   : > { %v3854_v22 = vpop.f32.mrf.mxu2  ;;  %v5648_v21 = vld [vmem:[%s7811_s29 + $0x5a8] sm:$0xf]  ;;  %v6609_v26 = vld [vmem:[%s7811_s29 + $0x494] sm:$0xf0] }
 0x2ea   : > { %v3830_v18 = vpop.f32.mrf.mxu0  ;;  %v5776_v46 = vld [vmem:[%s7811_s29 + $0x6a8] sm:$0xf]  ;;  %v5649_v54 = vor.u32 %v6645_v47, %v5648_v21  ;;  %v6705_v1 = vld [vmem:[%s7811_s29 + $0x794] sm:$0xf0] }
 0x2eb   : > { %4084 = vmatpush.bf16.msra.mxu0 %v4961_v38  ;;  %4097 = vmatpush.bf16.msra.mxu1 %v5089_v24  ;;  %v3867_v38 = vpop.f32.mrf.mxu3  ;;  %v5536_v24 = vld [vmem:[%s7811_s29 + $0x4c8] sm:$0xf]  ;;  %v3843_v51 = vpop.f32.mrf.mxu1  ;;  %v6669_v8 = vld [vmem:[%s7811_s29 + $0x674] sm:$0xf0] }
 0x2ec   : > { %4110 = vmatpush.bf16.msra.mxu2 %v5217_v36  ;;  %4123 = vmatpush.bf16.msra.mxu3 %v5345_v4  ;;  %v5809_v36 = vor.u32 %v6685_v29, %v5808_v19  ;;  %v5937_v4 = vor.u32 %v6717_v61, %v5936_v41  ;;  %v5537_v63 = vor.u32 %v6617_v60, %v5536_v24  ;;  %v5504_v56 = vld [vmem:[%s7811_s29 + $0x488] sm:$0xf]  ;;  %v6673_v41 = vld [vmem:[%s7811_s29 + $0x694] sm:$0xf0] }
 0x2ed   : > { %v5760_v29 = vld [vmem:[%s7811_s29 + $0x688] sm:$0xf]  ;;  %v6605_v60 = vld [vmem:[%s7811_s29 + $0x474] sm:$0xf0] }
 0x2ee   : > { %v5888_v61 = vld [vmem:[%s7811_s29 + $0x788] sm:$0xf]  ;;  %v6637_v51 = vld [vmem:[%s7811_s29 + $0x574] sm:$0xf0] }
 0x2ef   : > { %4085 = vmatpush.bf16.msra.mxu0 %v4945_v48  ;;  %4098 = vmatpush.bf16.msra.mxu1 %v5073_v9  ;;  %v3842_v48 = vadd.f32 %v3841_v11, %v3829_v33  ;;  %v5793_v9 = vor.u32 %v6681_v5, %v5792_v57  ;;  %v5521_v11 = vor.u32 %v6613_v0, %v5520_v52  ;;  %v5488_v24 = vld [vmem:[%s7811_s29 + $0x468] sm:$0xf]  ;;  %v6701_v5 = vld [vmem:[%s7811_s29 + $0x774] sm:$0xf0] }
 0x2f0   : > { %4111 = vmatpush.bf16.msra.mxu2 %v5201_v25  ;;  %4124 = vmatpush.bf16.msra.mxu3 %v5329_v59  ;;  %v6677_v25 = vld [vmem:[%s7811_s29 + $0x6b4] sm:$0xf0]  ;;  %v5904_v59 = vld [vmem:[%s7811_s29 + $0x7a8] sm:$0xf]  ;;  %v5489_v44 = vor.u32 %v6605_v60, %v5488_v24 }
 0x2f1   : > { %v3855_v55 = vadd.f32 %v3854_v22, %v3842_v48  ;;  %v3856_v58 = vpop.f32.mrf.mxu2  ;;  %v5777_v23 = vor.u32 %v6677_v25, %v5776_v46  ;;  %v5905_v19 = vor.u32 %v6709_v53, %v5904_v59  ;;  %v8958_v33 = vld [vmem:[%s644_s17] sm:$0xf]  ;;  %v6601_v52 = vld [vmem:[%s7811_s29 + $0x454] sm:$0xf0] }
 0x2f2   : > { %v5616_v18 = vld [vmem:[%s7811_s29 + $0x568] sm:$0xf]  ;;  %v6633_v21 = vld [vmem:[%s7811_s29 + $0x554] sm:$0xf0] }
 0x2f3   : > { %4086 = vmatpush.bf16.msra.mxu0 %v4929_v17  ;;  %4099 = vmatpush.bf16.msra.mxu1 %v5057_v28  ;;  %v3869_v20 = vpop.f32.mrf.mxu3  ;;  %v5632_v17 = vld [vmem:[%s7811_s29 + $0x588] sm:$0xf]  ;;  %v6641_v28 = vld [vmem:[%s7811_s29 + $0x594] sm:$0xf0]  ;;  %v5617_v6 = vor.u32 %v6637_v51, %v5616_v18 }
 0x2f4   : > { %4112 = vmatpush.bf16.msra.mxu2 %v5185_v30  ;;  %4125 = vmatpush.bf16.msra.mxu3 %v5313_v34  ;;  %v3868_v30 = vadd.f32 %v3867_v38, %v3855_v55  ;;  %v3880_v34 = vpop.f32.mrf.mxu0  ;;  %v5633_v22 = vor.u32 %v6641_v28, %v5632_v17  ;;  %v5744_v3 = vld [vmem:[%s7811_s29 + $0x668] sm:$0xf]  ;;  %v6665_v59 = vld [vmem:[%s7811_s29 + $0x654] sm:$0xf0] }
 0x2f5   : > { %v5872_v57 = vld [vmem:[%s7811_s29 + $0x768] sm:$0xf]  ;;  %v5745_v48 = vor.u32 %v6669_v8, %v5744_v3  ;;  %v6697_v55 = vld [vmem:[%s7811_s29 + $0x754] sm:$0xf0] }
 0x2f6   : > { %4087 = vmatmul.bf16.vlgmr.msra.gmra.mxu0 %v8506_v12  ;;  %4100 = vmatmul.bf16.vlgmr.msra.gmra.mxu1 %v8508_v13  ;;  %v3881_v38 = vadd.f32 %v3880_v34, %v3868_v30  ;;  %v5728_v47 = vld [vmem:[%s7811_s29 + $0x648] sm:$0xf]  ;;  %v6661_v30 = vld [vmem:[%s7811_s29 + $0x634] sm:$0xf0] }
 0x2f7   : > { %4131 = vmatpush.bf16.msrb.mxu0 %v5553_v35  ;;  %4144 = vmatpush.bf16.msrb.mxu1 %v5681_v42  ;;  %v3893_v35 = vpop.f32.mrf.mxu1  ;;  %v5505_v42 = vor.u32 %v6609_v26, %v5504_v56  ;;  %v5856_v53 = vld [vmem:[%s7811_s29 + $0x748] sm:$0xf]  ;;  %v5729_v28 = vor.u32 %v6665_v59, %v5728_v47  ;;  %v6593_v24 = vld [vmem:[%s7811_s29 + $0x414] sm:$0xf0] }
 0x2f8   : > { %4157 = vmatpush.bf16.msrb.mxu2 %v5809_v36  ;;  %4170 = vmatpush.bf16.msrb.mxu3 %v5937_v4  ;;  %v5761_v36 = vor.u32 %v6673_v41, %v5760_v29  ;;  %v5889_v4 = vor.u32 %v6705_v1, %v5888_v61  ;;  %v3894_v0 = vadd.f32 %v3893_v35, %v3881_v38  ;;  %v5584_v41 = vld [vmem:[%s7811_s29 + $0x528] sm:$0xf]  ;;  %v6629_v61 = vld [vmem:[%s7811_s29 + $0x534] sm:$0xf0] }
 0x2f9   : > { %4113 = vmatmul.bf16.vlgmr.msra.gmra.mxu2 %v8510_v14  ;;  %4126 = vmatmul.bf16.vlgmr.msra.gmra.mxu3 %v8512_v16  ;;  %v5857_v29 = vor.u32 %v6697_v55, %v5856_v53  ;;  %v5712_v1 = vld [vmem:[%s7811_s29 + $0x628] sm:$0xf]  ;;  %v6693_v35 = vld [vmem:[%s7811_s29 + $0x734] sm:$0xf0]  ;;  %v5585_v38 = vor.u32 %v6629_v61, %v5584_v41 }
 0x2fa   : > { %v5840_v34 = vld [vmem:[%s7811_s29 + $0x728] sm:$0xf]  ;;  %v5713_v3 = vor.u32 %v6661_v30, %v5712_v1  ;;  %v6845_v59 = vld [vmem:[%s7811_s29 + $0xbf4] sm:$0xf0] }
 0x2fb   : > { %4132 = vmatpush.bf16.msrb.mxu0 %v5537_v63  ;;  %4145 = vmatpush.bf16.msrb.mxu1 %v5665_v37  ;;  %v4393_v63 = vperm.slane %v8958_v33, 0  ;;  %v5472_v37 = vld [vmem:[%s7811_s29 + $0x448] sm:$0xf]  ;;  %v5841_v8 = vor.u32 %v6693_v35, %v5840_v34  ;;  %v6809_v41 = vld [vmem:[%s7811_s29 + $0xad4] sm:$0xf0] }
 0x2fc   : > { %4158 = vmatpush.bf16.msrb.mxu2 %v5793_v9  ;;  %4171 = vmatpush.bf16.msrb.mxu3 %v5921_v50  ;;  %v5873_v9 = vor.u32 %v6701_v5, %v5872_v57  ;;  %v5600_v50 = vld [vmem:[%s7811_s29 + $0x548] sm:$0xf]  ;;  %v3906_v46 = vpop.f32.mrf.mxu2  ;;  %v3919_v25 = vpop.f32.mrf.mxu3  ;;  %v5473_v56 = vor.u32 %v6601_v52, %v5472_v37  ;;  %v6657_v57 = vld [vmem:[%s7811_s29 + $0x614] sm:$0xf0] }
 0x2fd   : > { %v4401_v20 = vmul.f32 %v4393_v63, %v8622_v27  ;;  %v5601_v26 = vor.u32 %v6633_v21, %v5600_v50  ;;  %v5696_v18 = vld [vmem:[%s7811_s29 + $0x608] sm:$0xf]  ;;  %v6689_v63 = vld [vmem:[%s7811_s29 + $0x714] sm:$0xf0] }
 0x2fe   : > { %v5824_v5 = vld [vmem:[%s7811_s29 + $0x708] sm:$0xf]  ;;  %v6749_v52 = vld [vmem:[%s7811_s29 + $0x8f4] sm:$0xf0]  ;;  %v5697_v55 = vor.u32 %v6657_v57, %v5696_v18 }
 0x2ff   : > { %4133 = vmatpush.bf16.msrb.mxu0 %v5521_v11  ;;  %4146 = vmatpush.bf16.msrb.mxu1 %v5649_v54  ;;  %v3907_v11 = vadd.f32 %v3906_v46, %v3894_v0  ;;  %v3882_v54 = vpop.f32.mrf.mxu0  ;;  %v3895_v58 = vpop.f32.mrf.mxu1  ;;  %v6064_v37 = vld [vmem:[%s7811_s29 + $0x8e8] sm:$0xf]  ;;  %v6813_v46 = vld [vmem:[%s7811_s29 + $0xaf4] sm:$0xf0] }
 0x300   : > { %4159 = vmatpush.bf16.msrb.mxu2 %v5777_v23  ;;  %4172 = vmatpush.bf16.msrb.mxu3 %v5905_v19  ;;  %v5456_v23 = vld [vmem:[%s7811_s29 + $0x428] sm:$0xf]  ;;  %v6597_v19 = vld [vmem:[%s7811_s29 + $0x434] sm:$0xf0]  ;;  %v6065_v54 = vor.u32 %v6749_v52, %v6064_v37 }
 0x301   : > { %v3920_v17 = vadd.f32 %v3919_v25, %v3907_v11  ;;  %v5457_v60 = vor.u32 %v6597_v19, %v5456_v23  ;;  %v6320_v50 = vld [vmem:[%s7811_s29 + $0xae8] sm:$0xf]  ;;  %v5825_v11 = vor.u32 %v6689_v63, %v5824_v5  ;;  %v6841_v1 = vld [vmem:[%s7811_s29 + $0xbd4] sm:$0xf0] }
 0x302   : > { %v6448_v25 = vld [vmem:[%s7811_s29 + $0xbe8] sm:$0xf]  ;;  %v6321_v23 = vor.u32 %v6813_v46, %v6320_v50  ;;  %v6773_v18 = vld [vmem:[%s7811_s29 + $0x9b4] sm:$0xf0] }
 0x303   : > { %4134 = vmatpush.bf16.msrb.mxu0 %v5505_v42  ;;  %4147 = vmatpush.bf16.msrb.mxu1 %v5633_v22  ;;  %v8984_v42 = vadd.f32 %v4401_v20, %v3920_v17  ;;  %v5440_v22 = vld [vmem:[%s7811_s29 + $0x408] sm:$0xf]  ;;  %v6449_v19 = vor.u32 %v6845_v59, %v6448_v25  ;;  %v6837_v57 = vld [vmem:[%s7811_s29 + $0xbb4] sm:$0xf0] }
 0x304   : > { %4160 = vmatpush.bf16.msrb.mxu2 %v5761_v36  ;;  %4173 = vmatpush.bf16.msrb.mxu3 %v5889_v4  ;;  %v5568_v36 = vld [vmem:[%s7811_s29 + $0x508] sm:$0xf]  ;;  %v6625_v4 = vld [vmem:[%s7811_s29 + $0x514] sm:$0xf0]  ;;  %v5441_v21 = vor.u32 %v6593_v24, %v5440_v22 }
 0x305   : > { %v4409_v51 = vrot.slane %v8984_v42, 4  ;;  %v5569_v47 = vor.u32 %v6625_v4, %v5568_v36  ;;  %v6048_v20 = vld [vmem:[%s7811_s29 + $0x8c8] sm:$0xf]  ;;  %v6741_v24 = vld [vmem:[%s7811_s29 + $0x8b4] sm:$0xf0] }
 0x306   : > { %v6176_v17 = vld [vmem:[%s7811_s29 + $0x9c8] sm:$0xf]  ;;  %v6737_v37 = vld [vmem:[%s7811_s29 + $0x894] sm:$0xf0] }
 0x307   : > { %4135 = vmatpush.bf16.msrb.mxu0 %v5489_v44  ;;  %4148 = vmatpush.bf16.msrb.mxu1 %v5617_v6  ;;  %v3908_v44 = vpop.f32.mrf.mxu2  ;;  %v3921_v6 = vpop.f32.mrf.mxu3  ;;  %v4410_v0 = vadd.f32 %v4409_v51, %v8984_v42  ;;  %v6432_v61 = vld [vmem:[%s7811_s29 + $0xbc8] sm:$0xf]  ;;  %v6769_v50 = vld [vmem:[%s7811_s29 + $0x994] sm:$0xf0] }
 0x308   : > { %4161 = vmatpush.bf16.msrb.mxu2 %v5745_v48  ;;  %4174 = vmatpush.bf16.msrb.mxu3 %v5873_v9  ;;  %v6192_v48 = vld [vmem:[%s7811_s29 + $0x9e8] sm:$0xf]  ;;  %v6781_v9 = vld [vmem:[%s7811_s29 + $0x9f4] sm:$0xf0]  ;;  %v6433_v36 = vor.u32 %v6841_v1, %v6432_v61 }
 0x309   : > { %v4411_v53 = vrot.slane %v4410_v0, 2  ;;  %v6193_v58 = vor.u32 %v6781_v9, %v6192_v48  ;;  %v6032_v22 = vld [vmem:[%s7811_s29 + $0x8a8] sm:$0xf]  ;;  %v6833_v25 = vld [vmem:[%s7811_s29 + $0xb94] sm:$0xf0] }
 0x30a   : > { %v6160_v4 = vld [vmem:[%s7811_s29 + $0x9a8] sm:$0xf]  ;;  %v6033_v44 = vor.u32 %v6741_v24, %v6032_v22 }
 0x30b   : > { %4136 = vmatpush.bf16.msrb.mxu0 %v5473_v56  ;;  %4149 = vmatpush.bf16.msrb.mxu1 %v5601_v26  ;;  %v6745_v56 = vld [vmem:[%s7811_s29 + $0x8d4] sm:$0xf0]  ;;  %v4412_v26 = vadd.f32 %v4411_v53, %v4410_v0  ;;  %v6288_v51 = vld [vmem:[%s7811_s29 + $0xaa8] sm:$0xf]  ;;  %v6161_v6 = vor.u32 %v6773_v18, %v6160_v4 }
 0x30c   : > { %4162 = vmatpush.bf16.msrb.mxu2 %v5729_v28  ;;  %4175 = vmatpush.bf16.msrb.mxu3 %v5857_v29  ;;  %v6777_v28 = vld [vmem:[%s7811_s29 + $0x9d4] sm:$0xf0]  ;;  %v6304_v29 = vld [vmem:[%s7811_s29 + $0xac8] sm:$0xf]  ;;  %v6049_v34 = vor.u32 %v6745_v56, %v6048_v20 }
 0x30d   : > { %v4413_v30 = vrot.slane %v4412_v26, 1  ;;  %v6177_v35 = vor.u32 %v6777_v28, %v6176_v17  ;;  %v6016_v63 = vld [vmem:[%s7811_s29 + $0x888] sm:$0xf]  ;;  %v6797_v28 = vld [vmem:[%s7811_s29 + $0xa74] sm:$0xf0] }
 0x30e   : > { %v6144_v9 = vld [vmem:[%s7811_s29 + $0x988] sm:$0xf] }
 0x30f   : > { %4137 = vmatpush.bf16.msrb.mxu0 %v5457_v60  ;;  %4150 = vmatpush.bf16.msrb.mxu1 %v5585_v38  ;;  %v4414_v60 = vadd.f32 %v4413_v30, %v4412_v26  ;;  %v6305_v38 = vor.u32 %v6809_v41, %v6304_v29  ;;  %v6400_v46 = vld [vmem:[%s7811_s29 + $0xb88] sm:$0xf]  ;;  %v6829_v41 = vld [vmem:[%s7811_s29 + $0xb74] sm:$0xf0] }
 0x310   : > { %4163 = vmatpush.bf16.msrb.mxu2 %v5713_v3  ;;  %4176 = vmatpush.bf16.msrb.mxu3 %v5841_v8  ;;  %v6805_v3 = vld [vmem:[%s7811_s29 + $0xab4] sm:$0xf0]  ;;  %v6416_v8 = vld [vmem:[%s7811_s29 + $0xba8] sm:$0xf] }
 0x311   : > { %v4433_v5 = vmul.f32 %v4414_v60, %v7901_v31  ;;  %v6289_v0 = vor.u32 %v6805_v3, %v6288_v51  ;;  %v6417_v48 = vor.u32 %v6837_v57, %v6416_v8  ;;  %v6128_v20 = vld [vmem:[%s7811_s29 + $0x968] sm:$0xf]  ;;  %v6793_v3 = vld [vmem:[%s7811_s29 + $0xa54] sm:$0xf0] }
 0x312   : > { %v6256_v17 = vld [vmem:[%s7811_s29 + $0xa68] sm:$0xf]  ;;  %v6825_v57 = vld [vmem:[%s7811_s29 + $0xb54] sm:$0xf0] }
 0x313   : > { %4138 = vmatpush.bf16.msrb.mxu0 %v5441_v21  ;;  %4151 = vmatpush.bf16.msrb.mxu1 %v5569_v47  ;;  %v9028_v52 = vsub.f32 %v8984_v42, %v4433_v5  ;;  %v6272_v21 = vld [vmem:[%s7811_s29 + $0xa88] sm:$0xf]  ;;  %v6801_v47 = vld [vmem:[%s7811_s29 + $0xa94] sm:$0xf0]  ;;  %v9038_v42 = vpop.f32.mrf.mxu0  ;;  %v9040_v53 = vpop.f32.mrf.mxu1  ;;  %v6257_v60 = vor.u32 %v6797_v28, %v6256_v17 }
 0x314   : > { %4164 = vmatpush.bf16.msrb.mxu2 %v5697_v55  ;;  %4177 = vmatpush.bf16.msrb.mxu3 %v5825_v11  ;;  %v6017_v55 = vor.u32 %v6737_v37, %v6016_v63  ;;  %v6145_v11 = vor.u32 %v6769_v50, %v6144_v9  ;;  %v6273_v26 = vor.u32 %v6801_v47, %v6272_v21  ;;  %v6384_v29 = vld [vmem:[%s7811_s29 + $0xb68] sm:$0xf] }
 0x315   : > { %v4441_v59 = vmul.f32 %v9028_v52, %v9028_v52  ;;  %v6112_v22 = vld [vmem:[%s7811_s29 + $0x948] sm:$0xf] }
 0x316   : > { %4139 = vmatmul.bf16.vlgmr.msrb.gmra.mxu0 %v8577_v39  ;;  %4152 = vmatmul.bf16.vlgmr.msrb.gmra.mxu1 %v8579_v49  ;;  %v6240_v4 = vld [vmem:[%s7811_s29 + $0xa48] sm:$0xf] }
 0x317   : > { %4183 = vmatpush.bf16.msra.mxu0 %v6065_v54  ;;  %4196 = vmatpush.bf16.msra.mxu1 %v6193_v58  ;;  %v6000_v54 = vld [vmem:[%s7811_s29 + $0x868] sm:$0xf]  ;;  %v6733_v58 = vld [vmem:[%s7811_s29 + $0x874] sm:$0xf0]  ;;  %v4445_v56 = vrot.slane %v4441_v59, 4  ;;  %v6241_v21 = vor.u32 %v6793_v3, %v6240_v4 }
 0x318   : > { %4209 = vmatpush.bf16.msra.mxu2 %v6321_v23  ;;  %4222 = vmatpush.bf16.msra.mxu3 %v6449_v19  ;;  %v6401_v23 = vor.u32 %v6833_v25, %v6400_v46  ;;  %v6765_v19 = vld [vmem:[%s7811_s29 + $0x974] sm:$0xf0]  ;;  %v6001_v1 = vor.u32 %v6733_v58, %v6000_v54  ;;  %v6368_v8 = vld [vmem:[%s7811_s29 + $0xb48] sm:$0xf]  ;;  %v6555_v4 = vld [vmem:[%s7811_s29 + $0x2ec] sm:$0xf] }
 0x319   : > { %4165 = vmatmul.bf16.vlgmr.msrb.gmra.mxu2 %v8584_v62  ;;  %4178 = vmatmul.bf16.vlgmr.msrb.gmra.mxu3 %v8586_v45  ;;  %v4446_v61 = vadd.f32 %v4445_v56, %v4441_v59  ;;  %v6129_v30 = vor.u32 %v6765_v19, %v6128_v20  ;;  %v6096_v9 = vld [vmem:[%s7811_s29 + $0x928] sm:$0xf]  ;;  %v6369_v47 = vor.u32 %v6825_v57, %v6368_v8  ;;  %v6757_v46 = vld [vmem:[%s7811_s29 + $0x934] sm:$0xf0]  ;;  %v5298_v57 = vld [vmem:[%s7811_s29 + $0x2f8] sm:$0xf0] }
 0x31a   : > { %v6224_v25 = vld [vmem:[%s7811_s29 + $0xa28] sm:$0xf]  ;;  %v6789_v59 = vld [vmem:[%s7811_s29 + $0xa34] sm:$0xf0] }
 0x31b   : > { %4184 = vmatpush.bf16.msra.mxu0 %v6049_v34  ;;  %4197 = vmatpush.bf16.msra.mxu1 %v6177_v35  ;;  %v5984_v34 = vld [vmem:[%s7811_s29 + $0x848] sm:$0xf]  ;;  %v6729_v35 = vld [vmem:[%s7811_s29 + $0x854] sm:$0xf0]  ;;  %v4447_v24 = vrot.slane %v4446_v61, 2 }
 0x31c   : > { %4210 = vmatpush.bf16.msra.mxu2 %v6305_v38  ;;  %4223 = vmatpush.bf16.msra.mxu3 %v6433_v36  ;;  %v6385_v38 = vor.u32 %v6829_v41, %v6384_v29  ;;  %v6761_v36 = vld [vmem:[%s7811_s29 + $0x954] sm:$0xf0]  ;;  %v9055_v18 = vpop.f32.mrf.mxu2  ;;  %v9057_v51 = vpop.f32.mrf.mxu3  ;;  %v5985_v63 = vor.u32 %v6729_v35, %v5984_v34  ;;  %v5952_v58 = vld [vmem:[%s7811_s29 + $0x808] sm:$0xf]  ;;  %v6225_v29 = vor.u32 %v6789_v59, %v6224_v25  ;;  %v6551_v25 = vld [vmem:[%s7811_s29 + $0x2cc] sm:$0xf] }
 0x31d   : > { %v4448_v5 = vadd.f32 %v4447_v24, %v4446_v61  ;;  %v6113_v37 = vor.u32 %v6761_v36, %v6112_v22  ;;  %v6721_v20 = vld [vmem:[%s7811_s29 + $0x814] sm:$0xf0]  ;;  %v6208_v17 = vld [vmem:[%s7811_s29 + $0xa08] sm:$0xf]  ;;  %v6491_v22 = vld [vmem:[%s7811_s29 + $0xec] sm:$0xf] }
 0x31e   : > { %v6753_v19 = vld [vmem:[%s7811_s29 + $0x914] sm:$0xf0]  ;;  %v5042_v24 = vld [vmem:[%s7811_s29 + $0xf8] sm:$0xf0]  ;;  %v5953_v3 = vor.u32 %v6721_v20, %v5952_v58  ;;  %v6483_v20 = vld [vmem:[%s7811_s29 + $0xac] sm:$0xf] }
 0x31f   : > { %4185 = vmatpush.bf16.msra.mxu0 %v6033_v44  ;;  %4198 = vmatpush.bf16.msra.mxu1 %v6161_v6  ;;  %v3934_v44 = vpop.f32.mrf.mxu0  ;;  %v3947_v6 = vpop.f32.mrf.mxu1  ;;  %v4449_v50 = vrot.slane %v4448_v5, 1  ;;  %v6785_v61 = vld [vmem:[%s7811_s29 + $0xa14] sm:$0xf0]  ;;  %v5170_v36 = vld [vmem:[%s7811_s29 + $0x1f8] sm:$0xf0] }
 0x320   : > { %4211 = vmatpush.bf16.msra.mxu2 %v6289_v0  ;;  %4224 = vmatpush.bf16.msra.mxu3 %v6417_v48  ;;  %v5968_v0 = vld [vmem:[%s7811_s29 + $0x828] sm:$0xf]  ;;  %v6725_v48 = vld [vmem:[%s7811_s29 + $0x834] sm:$0xf0]  ;;  %v5426_v44 = vld [vmem:[%s7811_s29 + $0x3f8] sm:$0xf0]  ;;  %v6209_v6 = vor.u32 %v6785_v61, %v6208_v17 }
 0x321   : > { %v4450_v54 = vadd.f32 %v4449_v50, %v4448_v5  ;;  %v5969_v56 = vor.u32 %v6725_v48, %v5968_v0  ;;  %v6587_v5 = vld [vmem:[%s7811_s29 + $0x3ec] sm:$0xf]  ;;  %v5301_v50 = vor.u32 %v6555_v4, %v5298_v57  ;;  %v5282_v59 = vld [vmem:[%s7811_s29 + $0x2d8] sm:$0xf0] }
 0x322   : > { %v6487_v48 = vld [vmem:[%s7811_s29 + $0xcc] sm:$0xf]  ;;  %v5266_v61 = vld [vmem:[%s7811_s29 + $0x2b8] sm:$0xf0] }
 0x323   : > { %4186 = vmatpush.bf16.msra.mxu0 %v6017_v55  ;;  %4199 = vmatpush.bf16.msra.mxu1 %v6145_v11  ;;  %v6352_v55 = vld [vmem:[%s7811_s29 + $0xb28] sm:$0xf]  ;;  %v6821_v11 = vld [vmem:[%s7811_s29 + $0xb34] sm:$0xf0]  ;;  %v4469_v28 = vmul.f32 %v4450_v54, %v7901_v31  ;;  %v6515_v17 = vld [vmem:[%s7811_s29 + $0x1ac] sm:$0xf] }
 0x324   : > { %4212 = vmatpush.bf16.msra.mxu2 %v6273_v26  ;;  %4225 = vmatpush.bf16.msra.mxu3 %v6401_v23  ;;  %v6097_v26 = vor.u32 %v6757_v46, %v6096_v9  ;;  %v6080_v23 = vld [vmem:[%s7811_s29 + $0x908] sm:$0xf]  ;;  %v6353_v41 = vor.u32 %v6821_v11, %v6352_v55  ;;  %v3960_v34 = vpop.f32.mrf.mxu2  ;;  %v3973_v35 = vpop.f32.mrf.mxu3  ;;  %v5026_v9 = vld [vmem:[%s7811_s29 + $0xd8] sm:$0xf0]  ;;  %v6583_v55 = vld [vmem:[%s7811_s29 + $0x3cc] sm:$0xf] }
 0x325   : > { %v6081_v8 = vor.u32 %v6753_v19, %v6080_v23  ;;  %v5154_v46 = vld [vmem:[%s7811_s29 + $0x1d8] sm:$0xf0]  ;;  %v5029_v54 = vor.u32 %v6487_v48, %v5026_v9  ;;  %v5285_v23 = vor.u32 %v6551_v25, %v5282_v59  ;;  %v6543_v57 = vld [vmem:[%s7811_s29 + $0x28c] sm:$0xf] }
 0x326   : > { %v5410_v11 = vld [vmem:[%s7811_s29 + $0x3d8] sm:$0xf0]  ;;  %v6475_v9 = vld [vmem:[%s7811_s29 + $0x6c] sm:$0xf] }
 0x327   : > { %4187 = vmatpush.bf16.msra.mxu0 %v6001_v1  ;;  %4200 = vmatpush.bf16.msra.mxu1 %v6129_v30  ;;  %v6336_v1 = vld [vmem:[%s7811_s29 + $0xb08] sm:$0xf]  ;;  %v6817_v30 = vld [vmem:[%s7811_s29 + $0xb14] sm:$0xf0]  ;;  %v5413_v19 = vor.u32 %v6583_v55, %v5410_v11  ;;  %v6507_v25 = vld [vmem:[%s7811_s29 + $0x16c] sm:$0xf] }
 0x328   : > { %4213 = vmatpush.bf16.msra.mxu2 %v6257_v60  ;;  %4226 = vmatpush.bf16.msra.mxu3 %v6385_v38  ;;  %v6523_v60 = vld [vmem:[%s7811_s29 + $0x1ec] sm:$0xf]  ;;  %v9082_v38 = vadd.f32 1e-05, %v4469_v28  ;;  %v5138_v28 = vld [vmem:[%s7811_s29 + $0x1b8] sm:$0xf0] }
 0x329   : > { %v5173_v0 = vor.u32 %v6523_v60, %v5170_v36  ;;  %v4994_v60 = vld [vmem:[%s7811_s29 + $0x98] sm:$0xf0]  ;;  %v6511_v36 = vld [vmem:[%s7811_s29 + $0x18c] sm:$0xf] }
 0x32a   : > { %7019 = vrsqrt.f32 %v9082_v38  ;;  %v5106_v11 = vld [vmem:[%s7811_s29 + $0x178] sm:$0xf0]  ;;  %vm4483_vm8 = vweird.f32 %v9082_v38 }
 0x32b   : > { %4188 = vmatpush.bf16.msra.mxu0 %v5985_v63  ;;  %4201 = vmatpush.bf16.msra.mxu1 %v6113_v37  ;;  %v6337_v63 = vor.u32 %v6817_v30, %v6336_v1  ;;  %v5045_v37 = vor.u32 %v6491_v22, %v5042_v24  ;;  %v6579_v1 = vld [vmem:[%s7811_s29 + $0x3ac] sm:$0xf]  ;;  %v5394_v30 = vld [vmem:[%s7811_s29 + $0x3b8] sm:$0xf0]  ;;  %v5141_v22 = vor.u32 %v6515_v17, %v5138_v28 }
 0x32c   : > { %4214 = vmatpush.bf16.msra.mxu2 %v6241_v21  ;;  %4227 = vmatpush.bf16.msra.mxu3 %v6369_v47  ;;  %v5429_v21 = vor.u32 %v6587_v5, %v5426_v44  ;;  %v6519_v47 = vld [vmem:[%s7811_s29 + $0x1cc] sm:$0xf]  ;;  %v5250_v5 = vld [vmem:[%s7811_s29 + $0x298] sm:$0xf0] }
 0x32d   : > { %v5157_v58 = vor.u32 %v6519_v47, %v5154_v46  ;;  %v6479_v24 = vld [vmem:[%s7811_s29 + $0x8c] sm:$0xf]  ;;  %v4978_v46 = vld [vmem:[%s7811_s29 + $0x78] sm:$0xf0]  ;;  %v5253_v59 = vor.u32 %v6543_v57, %v5250_v5  ;;  %v3933_v57 = vadd.f32 %v9038_v42, %v8547_v40 }
 0x32e   : > { %v5074_v40 = vld [vmem:[%s7811_s29 + $0x138] sm:$0xf0]  ;;  %v6531_v42 = vld [vmem:[%s7811_s29 + $0x22c] sm:$0xf] }
 0x32f   : > { %4189 = vmatpush.bf16.msra.mxu0 %v5969_v56  ;;  %4202 = vmatpush.bf16.msra.mxu1 %v6097_v26  ;;  %v5010_v56 = vld [vmem:[%s7811_s29 + $0xb8] sm:$0xf0] }
 0x330   : > { %4215 = vmatpush.bf16.msra.mxu2 %v6225_v29  ;;  %4228 = vmatpush.bf16.msra.mxu3 %v6353_v41  ;;  %v9100_v26 = vpop.eup %7019  ;;  %v6547_v29 = vld [vmem:[%s7811_s29 + $0x2ac] sm:$0xf]  ;;  %v5013_v35 = vor.u32 %v6483_v20, %v5010_v56 }
 0x331   : > { %v4478_v41 = vmul.f32 %v9100_v26, %v9082_v38  ;;  %v5269_v4 = vor.u32 %v6547_v29, %v5266_v61  ;;  %vm4484_vm6 = vweird.f32 %v9100_v26  ;;  %v6571_v56 = vld [vmem:[%s7811_s29 + $0x36c] sm:$0xf]  ;;  %v4981_v29 = vor.u32 %v6475_v9, %v4978_v46  ;;  %v4962_v61 = vld [vmem:[%s7811_s29 + $0x58] sm:$0xf0] }
 0x332   : > { %vm4485_vm13 = vmor %vm4483_vm8, %vm4484_vm6  ;;  %v5109_v38 = vor.u32 %v6507_v25, %v5106_v11  ;;  %v6467_v9 = vld [vmem:[%s7811_s29 + $0x2c] sm:$0xf]  ;;  %v5330_v11 = vld [vmem:[%s7811_s29 + $0x338] sm:$0xf0] }
 0x333   : > { %4190 = vmatpush.bf16.msra.mxu0 %v5953_v3  ;;  %4203 = vmatpush.bf16.msra.mxu1 %v6081_v8  ;;  %v4479_v34 = vmul.f32 %v9100_v26, %v4478_v41  ;;  %v5397_v3 = vor.u32 %v6579_v1, %v5394_v30  ;;  %v5122_v8 = vld [vmem:[%s7811_s29 + $0x198] sm:$0xf0]  ;;  %v9129_v48 = vpop.f32.mrf.mxu1  ;;  %v6471_v41 = vld [vmem:[%s7811_s29 + $0x4c] sm:$0xf] }
 0x334   : > { %4216 = vmatpush.bf16.msra.mxu2 %v6209_v6  ;;  %4229 = vmatpush.bf16.msra.mxu3 %v6337_v63  ;;  %v6575_v6 = vld [vmem:[%s7811_s29 + $0x38c] sm:$0xf]  ;;  %v5378_v63 = vld [vmem:[%s7811_s29 + $0x398] sm:$0xf0]  ;;  %v5125_v47 = vor.u32 %v6511_v36, %v5122_v8 }
 0x335   : > { %v4480_v44 = vmul.f32 0.5, %v4479_v34  ;;  %v5381_v55 = vor.u32 %v6575_v6, %v5378_v63  ;;  %v6503_v1 = vld [vmem:[%s7811_s29 + $0x14c] sm:$0xf]  ;;  %v5346_v8 = vld [vmem:[%s7811_s29 + $0x358] sm:$0xf0]  ;;  %v4965_v6 = vor.u32 %v6471_v41, %v4962_v61 }
 0x336   : > { %4191 = vmatmul.bf16.vlgmr.msra.gmra.mxu0 %v8645_v2  ;;  %4204 = vmatmul.bf16.vlgmr.msra.gmra.mxu1 %v8647_v10  ;;  %v6499_v46 = vld [vmem:[%s7811_s29 + $0x12c] sm:$0xf]  ;;  %v5186_v61 = vld [vmem:[%s7811_s29 + $0x218] sm:$0xf0] }
 0x337   : > { %4235 = vmatpush.bf16.msrb.mxu0 %v5045_v37  ;;  %4248 = vmatpush.bf16.msrb.mxu1 %v5173_v0  ;;  %v9125_v37 = vld [vmem:[%s689_s28] sm:$0xf]  ;;  %v9127_v0 = vpop.f32.mrf.mxu0  ;;  %v6527_v41 = vld [vmem:[%s7811_s29 + $0x20c] sm:$0xf] }
 0x338   : > { %4261 = vmatpush.bf16.msrb.mxu2 %v5301_v50  ;;  %4274 = vmatpush.bf16.msrb.mxu3 %v5429_v21  ;;  %v4481_v50 = vsub.f32 1.5, %v4480_v44  ;;  %v4997_v21 = vor.u32 %v6479_v24, %v4994_v60  ;;  %v4523_v17 = vperm.slane %v9125_v37, 0  ;;  %v6535_v24 = vld [vmem:[%s7811_s29 + $0x24c] sm:$0xf] }
 0x339   : > { %4217 = vmatmul.bf16.vlgmr.msra.gmra.mxu2 %v8649_v15  ;;  %4230 = vmatmul.bf16.vlgmr.msra.gmra.mxu3 %v8653_v7 }
 0x33a   : > { %v4482_v20 = vmul.f32 %v9100_v26, %v4481_v50  ;;  %v4946_v50 = vld [vmem:[%s7811_s29 + $0x38] sm:$0xf0] }
 0x33b   : > { %4236 = vmatpush.bf16.msrb.mxu0 %v5029_v54  ;;  %4249 = vmatpush.bf16.msrb.mxu1 %v5157_v58  ;;  %v6539_v54 = vld [vmem:[%s7811_s29 + $0x26c] sm:$0xf]  ;;  %v5234_v58 = vld [vmem:[%s7811_s29 + $0x278] sm:$0xf0]  ;;  %v3999_v44 = vpop.f32.mrf.mxu1 }
 0x33c   : > { %4262 = vmatpush.bf16.msrb.mxu2 %v5285_v23  ;;  %4275 = vmatpush.bf16.msrb.mxu3 %v5413_v19  ;;  %v5362_v23 = vld [vmem:[%s7811_s29 + $0x378] sm:$0xf0]  ;;  %v9144_v19 = vld [vmem:[%s699_s5] sm:$0xf]  ;;  %v4486_v28 = vsel %vm4485_vm13, %v9100_v26, %v4482_v20  ;;  %v5237_v34 = vor.u32 %v6539_v54, %v5234_v58  ;;  %v9158_v60 = vpop.f32.mrf.mxu2  ;;  %v9160_v36 = vpop.f32.mrf.mxu3  ;;  %v3946_v54 = vadd.f32 %v9040_v53, %v3933_v57  ;;  %v6463_v58 = vld [vmem:[%s7811_s29 + $0xc] sm:$0xf] }
 0x33d   : > { %v4517_v30 = vmul.f32 %v4486_v28, %v9028_v52  ;;  %v4537_v26 = vperm.slane %v9144_v19, 0  ;;  %v4949_v20 = vor.u32 %v6467_v9, %v4946_v50  ;;  %v6495_v53 = vld [vmem:[%s7811_s29 + $0x10c] sm:$0xf] }
 0x33e   : > { %v3959_v28 = vadd.f32 %v9055_v18, %v3946_v54  ;;  %v6715_v57 = vld [vmem:[%s7811_s29 + $0x7ec] sm:$0xf] }
 0x33f   : > { %4237 = vmatpush.bf16.msrb.mxu0 %v5013_v35  ;;  %4250 = vmatpush.bf16.msrb.mxu1 %v5141_v22  ;;  %v5365_v35 = vor.u32 %v6571_v56, %v5362_v23  ;;  %v5090_v22 = vld [vmem:[%s7811_s29 + $0x158] sm:$0xf0]  ;;  %v4531_v52 = vmul.f32 %v4523_v17, %v4517_v30  ;;  %v3986_v5 = vpop.f32.mrf.mxu0  ;;  %v5077_v56 = vor.u32 %v6499_v46, %v5074_v40  ;;  %v6711_v54 = vld [vmem:[%s7811_s29 + $0x7cc] sm:$0xf] }
 0x340   : > { %4263 = vmatpush.bf16.msrb.mxu2 %v5269_v4  ;;  %4276 = vmatpush.bf16.msrb.mxu3 %v5397_v3  ;;  %v5218_v4 = vld [vmem:[%s7811_s29 + $0x258] sm:$0xf0]  ;;  %v6567_v3 = vld [vmem:[%s7811_s29 + $0x34c] sm:$0xf]  ;;  %v5093_v63 = vor.u32 %v6503_v1, %v5090_v22  ;;  %v3972_v44 = vadd.f32 %v9057_v51, %v3959_v28 }
 0x341   : > { %v9172_v25 = vadd.f32 %v4537_v26, %v4531_v52  ;;  %v4930_v23 = vld [vmem:[%s7811_s29 + $0x18] sm:$0xf0]  ;;  %v6559_v1 = vld [vmem:[%s7811_s29 + $0x30c] sm:$0xf] }
 0x342   : > { %v5058_v17 = vld [vmem:[%s7811_s29 + $0x118] sm:$0xf0]  ;;  %v6619_v22 = vld [vmem:[%s7811_s29 + $0x4ec] sm:$0xf]  ;;  %v4933_v18 = vor.u32 %v6463_v58, %v4930_v23  ;;  %v3985_v46 = vadd.f32 %v9127_v0, %v3972_v44 }
 0x343   : > { %4238 = vmatpush.bf16.msrb.mxu0 %v4997_v21  ;;  %4251 = vmatpush.bf16.msrb.mxu1 %v5125_v47  ;;  %v5221_v21 = vor.u32 %v6535_v24, %v5218_v4  ;;  %v5349_v47 = vor.u32 %v6567_v3, %v5346_v8  ;;  %4549 = vst [vmem:[%s9181_s25] sm:$0xff] %v9172_v25  ;;  %v5554_v24 = vld [vmem:[%s7811_s29 + $0x4f8] sm:$0xf0]  ;;  %v6651_v26 = vld [vmem:[%s7811_s29 + $0x5ec] sm:$0xf] }
 0x344   : > { %4264 = vmatpush.bf16.msrb.mxu2 %v5253_v59  ;;  %4277 = vmatpush.bf16.msrb.mxu3 %v5381_v55  ;;  %v5202_v59 = vld [vmem:[%s7811_s29 + $0x238] sm:$0xf0]  ;;  %v6563_v55 = vld [vmem:[%s7811_s29 + $0x32c] sm:$0xf]  ;;  %v4012_v30 = vpop.f32.mrf.mxu2  ;;  %v5061_v8 = vor.u32 %v6495_v53, %v5058_v17  ;;  %v5557_v9 = vor.u32 %v6619_v22, %v5554_v24  ;;  %v3998_v53 = vadd.f32 %v9129_v48, %v3985_v46 }
 0x345   : > { %v5682_v4 = vld [vmem:[%s7811_s29 + $0x5f8] sm:$0xf0]  ;;  %v6683_v3 = vld [vmem:[%s7811_s29 + $0x6ec] sm:$0xf] }
 0x346   : > { %v5810_v52 = vld [vmem:[%s7811_s29 + $0x6f8] sm:$0xf0]  ;;  %v5685_v50 = vor.u32 %v6651_v26, %v5682_v4  ;;  %v6679_v51 = vld [vmem:[%s7811_s29 + $0x6cc] sm:$0xf]  ;;  %v4011_v48 = vadd.f32 %v9158_v60, %v3998_v53 }
 0x347   : > { %4239 = vmatpush.bf16.msrb.mxu0 %v4981_v29  ;;  %4252 = vmatpush.bf16.msrb.mxu1 %v5109_v38  ;;  %v5205_v29 = vor.u32 %v6531_v42, %v5202_v59  ;;  %v5333_v38 = vor.u32 %v6563_v55, %v5330_v11  ;;  %v5938_v5 = vld [vmem:[%s7811_s29 + $0x7f8] sm:$0xf0]  ;;  %v5813_v40 = vor.u32 %v6683_v3, %v5810_v52  ;;  %v6647_v59 = vld [vmem:[%s7811_s29 + $0x5cc] sm:$0xf] }
 0x348   : > { %4265 = vmatpush.bf16.msrb.mxu2 %v5237_v34  ;;  %4278 = vmatpush.bf16.msrb.mxu3 %v5365_v35  ;;  %v4025_v34 = vpop.f32.mrf.mxu3  ;;  %v5314_v35 = vld [vmem:[%s7811_s29 + $0x318] sm:$0xf0]  ;;  %v5941_v42 = vor.u32 %v6715_v57, %v5938_v5  ;;  %v6639_v60 = vld [vmem:[%s7811_s29 + $0x58c] sm:$0xf] }
 0x349   : > { %v5666_v55 = vld [vmem:[%s7811_s29 + $0x5d8] sm:$0xf0]  ;;  %v6671_v4 = vld [vmem:[%s7811_s29 + $0x68c] sm:$0xf] }
 0x34a   : > { %v5794_v11 = vld [vmem:[%s7811_s29 + $0x6d8] sm:$0xf0]  ;;  %v6703_v3 = vld [vmem:[%s7811_s29 + $0x78c] sm:$0xf] }
 0x34b   : > { %4240 = vmatpush.bf16.msrb.mxu0 %v4965_v6  ;;  %4253 = vmatpush.bf16.msrb.mxu1 %v5093_v63  ;;  %v5189_v6 = vor.u32 %v6527_v41, %v5186_v61  ;;  %v5317_v63 = vor.u32 %v6559_v1, %v5314_v35  ;;  %v5922_v58 = vld [vmem:[%s7811_s29 + $0x7d8] sm:$0xf0]  ;;  %v5797_v17 = vor.u32 %v6679_v51, %v5794_v11  ;;  %v6675_v41 = vld [vmem:[%s7811_s29 + $0x6ac] sm:$0xf]  ;;  %v4394_v51 = vperm.slane %v8958_v33, 1 }
 0x34c   : > { %4266 = vmatpush.bf16.msrb.mxu2 %v5221_v21  ;;  %4279 = vmatpush.bf16.msrb.mxu3 %v5349_v47  ;;  %v6615_v21 = vld [vmem:[%s7811_s29 + $0x4cc] sm:$0xf]  ;;  %v5538_v47 = vld [vmem:[%s7811_s29 + $0x4d8] sm:$0xf0]  ;;  %v5925_v28 = vor.u32 %v6711_v54, %v5922_v58 }
 0x34d   : > { %v5541_v0 = vor.u32 %v6615_v21, %v5538_v47  ;;  %v5522_v23 = vld [vmem:[%s7811_s29 + $0x4b8] sm:$0xf0]  ;;  %v6707_v1 = vld [vmem:[%s7811_s29 + $0x7ac] sm:$0xf] }
 0x34e   : > { %v5778_v61 = vld [vmem:[%s7811_s29 + $0x6b8] sm:$0xf0]  ;;  %v6603_v44 = vld [vmem:[%s7811_s29 + $0x46c] sm:$0xf] }
 0x34f   : > { %4241 = vmatpush.bf16.msrb.mxu0 %v4949_v20  ;;  %4254 = vmatpush.bf16.msrb.mxu1 %v5077_v56  ;;  %v5669_v20 = vor.u32 %v6647_v59, %v5666_v55  ;;  %v6611_v56 = vld [vmem:[%s7811_s29 + $0x4ac] sm:$0xf]  ;;  %v5906_v30 = vld [vmem:[%s7811_s29 + $0x7b8] sm:$0xf0]  ;;  %v5781_v22 = vor.u32 %v6675_v41, %v5778_v61 }
 0x350   : > { %4267 = vmatpush.bf16.msrb.mxu2 %v5205_v29  ;;  %4280 = vmatpush.bf16.msrb.mxu3 %v5333_v38  ;;  %v6643_v29 = vld [vmem:[%s7811_s29 + $0x5ac] sm:$0xf]  ;;  %v5650_v38 = vld [vmem:[%s7811_s29 + $0x5b8] sm:$0xf0]  ;;  %v5909_v24 = vor.u32 %v6707_v1, %v5906_v30  ;;  %v4402_v30 = vmul.f32 %v4394_v51, %v8622_v27 }
 0x351   : > { %v5653_v34 = vor.u32 %v6643_v29, %v5650_v38  ;;  %v5506_v35 = vld [vmem:[%s7811_s29 + $0x498] sm:$0xf0]  ;;  %v6667_v47 = vld [vmem:[%s7811_s29 + $0x66c] sm:$0xf] }
 0x352   : > { %v5634_v26 = vld [vmem:[%s7811_s29 + $0x598] sm:$0xf0]  ;;  %v6599_v11 = vld [vmem:[%s7811_s29 + $0x44c] sm:$0xf] }
 0x353   : > { %4242 = vmatpush.bf16.msrb.mxu0 %v4933_v18  ;;  %4255 = vmatpush.bf16.msrb.mxu1 %v5061_v8  ;;  %v4024_v18 = vadd.f32 %v9160_v36, %v4011_v48  ;;  %v4036_v8 = vpop.f32.mrf.mxu0  ;;  %v4049_v52 = vpop.f32.mrf.mxu1  ;;  %v5637_v5 = vor.u32 %v6639_v60, %v5634_v26  ;;  %v6635_v36 = vld [vmem:[%s7811_s29 + $0x56c] sm:$0xf]  ;;  %v5618_v21 = vld [vmem:[%s7811_s29 + $0x578] sm:$0xf0] }
 0x354   : > { %4268 = vmatpush.bf16.msrb.mxu2 %v5189_v6  ;;  %4281 = vmatpush.bf16.msrb.mxu3 %v5317_v63  ;;  %v5490_v6 = vld [vmem:[%s7811_s29 + $0x478] sm:$0xf0]  ;;  %v5621_v55 = vor.u32 %v6635_v36, %v5618_v21  ;;  %v6663_v53 = vld [vmem:[%s7811_s29 + $0x64c] sm:$0xf] }
 0x355   : > { %v4037_v63 = vadd.f32 %v4036_v8, %v4024_v18  ;;  %v5746_v46 = vld [vmem:[%s7811_s29 + $0x678] sm:$0xf0]  ;;  %v5493_v59 = vor.u32 %v6603_v44, %v5490_v6  ;;  %v6695_v38 = vld [vmem:[%s7811_s29 + $0x74c] sm:$0xf] }
 0x356   : > { %4243 = vmatmul.bf16.vlgmr.msrb.gmra.mxu0 %v8506_v12  ;;  %4256 = vmatmul.bf16.vlgmr.msrb.gmra.mxu1 %v8508_v13  ;;  %v5525_v12 = vor.u32 %v6611_v56, %v5522_v23  ;;  %v6607_v13 = vld [vmem:[%s7811_s29 + $0x48c] sm:$0xf]  ;;  %v5474_v54 = vld [vmem:[%s7811_s29 + $0x458] sm:$0xf0] }
 0x357   : > { %4287 = vmatpush.bf16.msra.mxu0 %v5557_v9  ;;  %4300 = vmatpush.bf16.msra.mxu1 %v5685_v50  ;;  %v5509_v57 = vor.u32 %v6607_v13, %v5506_v35  ;;  %v4050_v58 = vadd.f32 %v4049_v52, %v4037_v63  ;;  %v6631_v56 = vld [vmem:[%s7811_s29 + $0x54c] sm:$0xf]  ;;  %v5602_v23 = vld [vmem:[%s7811_s29 + $0x558] sm:$0xf0]  ;;  %v5477_v48 = vor.u32 %v6599_v11, %v5474_v54 }
 0x358   : > { %4313 = vmatpush.bf16.msra.mxu2 %v5813_v40  ;;  %4326 = vmatpush.bf16.msra.mxu3 %v5941_v42  ;;  %v6699_v40 = vld [vmem:[%s7811_s29 + $0x76c] sm:$0xf]  ;;  %v5874_v42 = vld [vmem:[%s7811_s29 + $0x778] sm:$0xf0] }
 0x359   : > { %4269 = vmatmul.bf16.vlgmr.msrb.gmra.mxu2 %v8510_v14  ;;  %4282 = vmatmul.bf16.vlgmr.msrb.gmra.mxu3 %v8512_v16  ;;  %v5762_v14 = vld [vmem:[%s7811_s29 + $0x698] sm:$0xf0]  ;;  %v6627_v60 = vld [vmem:[%s7811_s29 + $0x52c] sm:$0xf] }
 0x35a   : > { %v5890_v16 = vld [vmem:[%s7811_s29 + $0x798] sm:$0xf0]  ;;  %v5765_v9 = vor.u32 %v6671_v4, %v5762_v14  ;;  %v6659_v4 = vld [vmem:[%s7811_s29 + $0x62c] sm:$0xf] }
 0x35b   : > { %4288 = vmatpush.bf16.msra.mxu0 %v5541_v0  ;;  %4301 = vmatpush.bf16.msra.mxu1 %v5669_v20  ;;  %v5893_v50 = vor.u32 %v6703_v3, %v5890_v16  ;;  %v5749_v0 = vor.u32 %v6667_v47, %v5746_v46  ;;  %v5877_v20 = vor.u32 %v6699_v40, %v5874_v42  ;;  %v5730_v29 = vld [vmem:[%s7811_s29 + $0x658] sm:$0xf0]  ;;  %v4038_v33 = vpop.f32.mrf.mxu0  ;;  %v4051_v1 = vpop.f32.mrf.mxu1  ;;  %v6691_v3 = vld [vmem:[%s7811_s29 + $0x72c] sm:$0xf] }
 0x35c   : > { %4314 = vmatpush.bf16.msra.mxu2 %v5797_v17  ;;  %4327 = vmatpush.bf16.msra.mxu3 %v5925_v28  ;;  %v4062_v17 = vpop.f32.mrf.mxu2  ;;  %v4075_v28 = vpop.f32.mrf.mxu3  ;;  %v5858_v41 = vld [vmem:[%s7811_s29 + $0x758] sm:$0xf0]  ;;  %v6591_v8 = vld [vmem:[%s7811_s29 + $0x40c] sm:$0xf] }
 0x35d   : > { %v4063_v61 = vadd.f32 %v4062_v17, %v4050_v58  ;;  %v5458_v13 = vld [vmem:[%s7811_s29 + $0x438] sm:$0xf0]  ;;  %v6623_v44 = vld [vmem:[%s7811_s29 + $0x50c] sm:$0xf] }
 0x35e   : > { %v5586_v26 = vld [vmem:[%s7811_s29 + $0x538] sm:$0xf0]  ;;  %v6655_v63 = vld [vmem:[%s7811_s29 + $0x60c] sm:$0xf] }
 0x35f   : > { %4289 = vmatpush.bf16.msra.mxu0 %v5525_v12  ;;  %4302 = vmatpush.bf16.msra.mxu1 %v5653_v34  ;;  %v5605_v12 = vor.u32 %v6631_v56, %v5602_v23  ;;  %v6595_v34 = vld [vmem:[%s7811_s29 + $0x42c] sm:$0xf]  ;;  %v4076_v35 = vadd.f32 %v4075_v28, %v4063_v61  ;;  %v5714_v14 = vld [vmem:[%s7811_s29 + $0x638] sm:$0xf0] }
 0x360   : > { %4315 = vmatpush.bf16.msra.mxu2 %v5781_v22  ;;  %4328 = vmatpush.bf16.msra.mxu3 %v5909_v24  ;;  %v5733_v22 = vor.u32 %v6663_v53, %v5730_v29  ;;  %v5861_v24 = vor.u32 %v6695_v38, %v5858_v41  ;;  %v5842_v16 = vld [vmem:[%s7811_s29 + $0x738] sm:$0xf0]  ;;  %v6687_v47 = vld [vmem:[%s7811_s29 + $0x70c] sm:$0xf] }
 0x361   : > { %v9260_v18 = vadd.f32 %v4402_v30, %v4076_v35  ;;  %v5442_v52 = vld [vmem:[%s7811_s29 + $0x418] sm:$0xf0]  ;;  %v5845_v36 = vor.u32 %v6691_v3, %v5842_v16  ;;  %v6779_v11 = vld [vmem:[%s7811_s29 + $0x9ec] sm:$0xf] }
 0x362   : > { %v5570_v6 = vld [vmem:[%s7811_s29 + $0x518] sm:$0xf0]  ;;  %v6811_v58 = vld [vmem:[%s7811_s29 + $0xaec] sm:$0xf] }
 0x363   : > { %4290 = vmatpush.bf16.msra.mxu0 %v5509_v57  ;;  %4303 = vmatpush.bf16.msra.mxu1 %v5637_v5  ;;  %v5461_v57 = vor.u32 %v6595_v34, %v5458_v13  ;;  %v5589_v5 = vor.u32 %v6627_v60, %v5586_v26  ;;  %v5698_v21 = vld [vmem:[%s7811_s29 + $0x618] sm:$0xf0]  ;;  %v6843_v23 = vld [vmem:[%s7811_s29 + $0xbec] sm:$0xf] }
 0x364   : > { %4316 = vmatpush.bf16.msra.mxu2 %v5765_v9  ;;  %4329 = vmatpush.bf16.msra.mxu3 %v5893_v50  ;;  %v4415_v9 = vrot.slane %v9260_v18, 4  ;;  %v5717_v50 = vor.u32 %v6659_v4, %v5714_v14  ;;  %v4064_v46 = vpop.f32.mrf.mxu2  ;;  %v4077_v40 = vpop.f32.mrf.mxu3  ;;  %v5826_v42 = vld [vmem:[%s7811_s29 + $0x718] sm:$0xf0]  ;;  %v5701_v28 = vor.u32 %v6655_v63, %v5698_v21  ;;  %v6743_v61 = vld [vmem:[%s7811_s29 + $0x8cc] sm:$0xf] }
 0x365   : > { %v6194_v54 = vld [vmem:[%s7811_s29 + $0x9f8] sm:$0xf0]  ;;  %v5829_v29 = vor.u32 %v6687_v47, %v5826_v42  ;;  %v6807_v13 = vld [vmem:[%s7811_s29 + $0xacc] sm:$0xf] }
 0x366   : > { %v4416_v51 = vadd.f32 %v4415_v9, %v9260_v18  ;;  %v6322_v56 = vld [vmem:[%s7811_s29 + $0xaf8] sm:$0xf0]  ;;  %v6197_v41 = vor.u32 %v6779_v11, %v6194_v54  ;;  %v6739_v14 = vld [vmem:[%s7811_s29 + $0x8ac] sm:$0xf] }
 0x367   : > { %4291 = vmatpush.bf16.msra.mxu0 %v5493_v59  ;;  %4304 = vmatpush.bf16.msra.mxu1 %v5621_v55  ;;  %v6747_v59 = vld [vmem:[%s7811_s29 + $0x8ec] sm:$0xf]  ;;  %v6066_v55 = vld [vmem:[%s7811_s29 + $0x8f8] sm:$0xf0]  ;;  %v6325_v30 = vor.u32 %v6811_v58, %v6322_v56 }
 0x368   : > { %4317 = vmatpush.bf16.msra.mxu2 %v5749_v0  ;;  %4330 = vmatpush.bf16.msra.mxu3 %v5877_v20  ;;  %v5445_v0 = vor.u32 %v6591_v8, %v5442_v52  ;;  %v5573_v20 = vor.u32 %v6623_v44, %v5570_v6  ;;  %v6450_v53 = vld [vmem:[%s7811_s29 + $0xbf8] sm:$0xf0]  ;;  %v4417_v17 = vrot.slane %v4416_v51, 2  ;;  %v6069_v38 = vor.u32 %v6747_v59, %v6066_v55  ;;  %v6803_v44 = vld [vmem:[%s7811_s29 + $0xaac] sm:$0xf] }
 0x369   : > { %v6050_v33 = vld [vmem:[%s7811_s29 + $0x8d8] sm:$0xf0]  ;;  %v6835_v63 = vld [vmem:[%s7811_s29 + $0xbac] sm:$0xf] }
 0x36a   : > { %v4418_v1 = vadd.f32 %v4417_v17, %v4416_v51  ;;  %v6178_v34 = vld [vmem:[%s7811_s29 + $0x9d8] sm:$0xf0]  ;;  %v6053_v26 = vor.u32 %v6743_v61, %v6050_v33  ;;  %v6767_v40 = vld [vmem:[%s7811_s29 + $0x98c] sm:$0xf] }
 0x36b   : > { %4292 = vmatpush.bf16.msra.mxu0 %v5477_v48  ;;  %4305 = vmatpush.bf16.msra.mxu1 %v5605_v12  ;;  %v6453_v48 = vor.u32 %v6843_v23, %v6450_v53  ;;  %v6775_v12 = vld [vmem:[%s7811_s29 + $0x9cc] sm:$0xf]  ;;  %v6306_v35 = vld [vmem:[%s7811_s29 + $0xad8] sm:$0xf0] }
 0x36c   : > { %4318 = vmatpush.bf16.msra.mxu2 %v5733_v22  ;;  %4331 = vmatpush.bf16.msra.mxu3 %v5861_v24  ;;  %v6839_v22 = vld [vmem:[%s7811_s29 + $0xbcc] sm:$0xf]  ;;  %v6434_v24 = vld [vmem:[%s7811_s29 + $0xbd8] sm:$0xf0]  ;;  %v4419_v60 = vrot.slane %v4418_v1, 1  ;;  %v6181_v4 = vor.u32 %v6775_v12, %v6178_v34  ;;  %v6309_v8 = vor.u32 %v6807_v13, %v6306_v35 }
 0x36d   : > { %v6034_v3 = vld [vmem:[%s7811_s29 + $0x8b8] sm:$0xf0]  ;;  %v6437_v52 = vor.u32 %v6839_v22, %v6434_v24  ;;  %v6799_v42 = vld [vmem:[%s7811_s29 + $0xa8c] sm:$0xf] }
 0x36e   : > { %v4420_v16 = vadd.f32 %v4419_v60, %v4418_v1  ;;  %v6290_v6 = vld [vmem:[%s7811_s29 + $0xab8] sm:$0xf0]  ;;  %v6831_v55 = vld [vmem:[%s7811_s29 + $0xb8c] sm:$0xf] }
 0x36f   : > { %4293 = vmatpush.bf16.msra.mxu0 %v5461_v57  ;;  %4306 = vmatpush.bf16.msra.mxu1 %v5589_v5  ;;  %v6771_v57 = vld [vmem:[%s7811_s29 + $0x9ac] sm:$0xf]  ;;  %v6162_v5 = vld [vmem:[%s7811_s29 + $0x9b8] sm:$0xf0]  ;;  %v6293_v46 = vor.u32 %v6803_v44, %v6290_v6 }
 0x370   : > { %4319 = vmatpush.bf16.msra.mxu2 %v5717_v50  ;;  %4332 = vmatpush.bf16.msra.mxu3 %v5845_v36  ;;  %v6418_v9 = vld [vmem:[%s7811_s29 + $0xbb8] sm:$0xf0]  ;;  %v4434_v50 = vmul.f32 %v4420_v16, %v7901_v31  ;;  %v6165_v36 = vor.u32 %v6771_v57, %v6162_v5  ;;  %v6763_v23 = vld [vmem:[%s7811_s29 + $0x96c] sm:$0xf] }
 0x371   : > { %v6018_v21 = vld [vmem:[%s7811_s29 + $0x898] sm:$0xf0]  ;;  %v6827_v61 = vld [vmem:[%s7811_s29 + $0xb6c] sm:$0xf] }
 0x372   : > { %v9304_v47 = vsub.f32 %v9260_v18, %v4434_v50  ;;  %v6274_v59 = vld [vmem:[%s7811_s29 + $0xa98] sm:$0xf0]  ;;  %v6727_v12 = vld [vmem:[%s7811_s29 + $0x84c] sm:$0xf] }
 0x373   : > { %4294 = vmatpush.bf16.msra.mxu0 %v5445_v0  ;;  %4307 = vmatpush.bf16.msra.mxu1 %v5573_v20  ;;  %v6402_v51 = vld [vmem:[%s7811_s29 + $0xb98] sm:$0xf0]  ;;  %v9314_v18 = vpop.f32.mrf.mxu0  ;;  %v9316_v54 = vpop.f32.mrf.mxu1  ;;  %v6731_v20 = vld [vmem:[%s7811_s29 + $0x86c] sm:$0xf]  ;;  %v6277_v17 = vor.u32 %v6799_v42, %v6274_v59 }
 0x374   : > { %4320 = vmatpush.bf16.msra.mxu2 %v5701_v28  ;;  %4333 = vmatpush.bf16.msra.mxu3 %v5829_v29  ;;  %v4442_v11 = vmul.f32 %v9304_v47, %v9304_v47  ;;  %v6002_v56 = vld [vmem:[%s7811_s29 + $0x878] sm:$0xf0]  ;;  %v6405_v28 = vor.u32 %v6831_v55, %v6402_v51  ;;  %v6759_v13 = vld [vmem:[%s7811_s29 + $0x94c] sm:$0xf] }
 0x375   : > { %v6130_v29 = vld [vmem:[%s7811_s29 + $0x978] sm:$0xf0]  ;;  %v6823_v16 = vld [vmem:[%s7811_s29 + $0xb4c] sm:$0xf] }
 0x376   : > { %4295 = vmatmul.bf16.vlgmr.msra.gmra.mxu0 %v8577_v39  ;;  %4308 = vmatmul.bf16.vlgmr.msra.gmra.mxu1 %v8579_v49  ;;  %v6037_v39 = vor.u32 %v6739_v14, %v6034_v3  ;;  %v6735_v49 = vld [vmem:[%s7811_s29 + $0x88c] sm:$0xf]  ;;  %v4451_v53 = vrot.slane %v4442_v11, 4  ;;  %v6386_v33 = vld [vmem:[%s7811_s29 + $0xb78] sm:$0xf0] }
 0x377   : > { %4339 = vmatpush.bf16.msrb.mxu0 %v6069_v38  ;;  %4352 = vmatpush.bf16.msrb.mxu1 %v6197_v41  ;;  %v6021_v58 = vor.u32 %v6735_v49, %v6018_v21  ;;  %v6795_v38 = vld [vmem:[%s7811_s29 + $0xa6c] sm:$0xf]  ;;  %v6258_v41 = vld [vmem:[%s7811_s29 + $0xa78] sm:$0xf0]  ;;  %v6389_v24 = vor.u32 %v6827_v61, %v6386_v33 }
 0x378   : > { %4365 = vmatpush.bf16.msrb.mxu2 %v6325_v30  ;;  %4378 = vmatpush.bf16.msrb.mxu3 %v6453_v48  ;;  %v4452_v1 = vadd.f32 %v4451_v53, %v4442_v11  ;;  %v6005_v30 = vor.u32 %v6731_v20, %v6002_v56  ;;  %v6133_v48 = vor.u32 %v6763_v23, %v6130_v29  ;;  %v5986_v34 = vld [vmem:[%s7811_s29 + $0x858] sm:$0xf0]  ;;  %v6755_v50 = vld [vmem:[%s7811_s29 + $0x92c] sm:$0xf] }
 0x379   : > { %4321 = vmatmul.bf16.vlgmr.msra.gmra.mxu2 %v8584_v62  ;;  %4334 = vmatmul.bf16.vlgmr.msra.gmra.mxu3 %v8586_v45  ;;  %v6421_v62 = vor.u32 %v6835_v63, %v6418_v9  ;;  %v6146_v45 = vld [vmem:[%s7811_s29 + $0x998] sm:$0xf0]  ;;  %v6261_v22 = vor.u32 %v6795_v38, %v6258_v41  ;;  %v5989_v44 = vor.u32 %v6727_v12, %v5986_v34  ;;  %v6723_v63 = vld [vmem:[%s7811_s29 + $0x82c] sm:$0xf] }
 0x37a   : > { %v6149_v0 = vor.u32 %v6767_v40, %v6146_v45  ;;  %v4453_v35 = vrot.slane %v4452_v1, 2  ;;  %v6114_v60 = vld [vmem:[%s7811_s29 + $0x958] sm:$0xf0]  ;;  %v6819_v40 = vld [vmem:[%s7811_s29 + $0xb2c] sm:$0xf] }
 0x37b   : > { %4340 = vmatpush.bf16.msrb.mxu0 %v6053_v26  ;;  %4353 = vmatpush.bf16.msrb.mxu1 %v6181_v4  ;;  %v6791_v26 = vld [vmem:[%s7811_s29 + $0xa4c] sm:$0xf]  ;;  %v6242_v3 = vld [vmem:[%s7811_s29 + $0xa58] sm:$0xf0]  ;;  %v4090_v57 = vpop.f32.mrf.mxu0  ;;  %v4103_v5 = vpop.f32.mrf.mxu1  ;;  %v6117_v6 = vor.u32 %v6759_v13, %v6114_v60 }
 0x37c   : > { %4366 = vmatpush.bf16.msrb.mxu2 %v6309_v8  ;;  %4379 = vmatpush.bf16.msrb.mxu3 %v6437_v52  ;;  %v9331_v4 = vpop.f32.mrf.mxu2  ;;  %v9333_v14 = vpop.f32.mrf.mxu3  ;;  %v6370_v8 = vld [vmem:[%s7811_s29 + $0xb58] sm:$0xf0]  ;;  %v4454_v52 = vadd.f32 %v4453_v35, %v4452_v1  ;;  %v6719_v51 = vld [vmem:[%s7811_s29 + $0x80c] sm:$0xf] }
 0x37d   : > { %v5970_v9 = vld [vmem:[%s7811_s29 + $0x838] sm:$0xf0]  ;;  %v6373_v49 = vor.u32 %v6823_v16, %v6370_v8  ;;  %v6751_v56 = vld [vmem:[%s7811_s29 + $0x90c] sm:$0xf] }
 0x37e   : > { %v6098_v21 = vld [vmem:[%s7811_s29 + $0x938] sm:$0xf0]  ;;  %v5973_v59 = vor.u32 %v6723_v63, %v5970_v9  ;;  %v6783_v53 = vld [vmem:[%s7811_s29 + $0xa0c] sm:$0xf] }
 0x37f   : > { %4341 = vmatpush.bf16.msrb.mxu0 %v6037_v39  ;;  %4354 = vmatpush.bf16.msrb.mxu1 %v6165_v36  ;;  %v4455_v39 = vrot.slane %v4454_v52, 1  ;;  %v6245_v36 = vor.u32 %v6791_v26, %v6242_v3  ;;  %v6354_v45 = vld [vmem:[%s7811_s29 + $0xb38] sm:$0xf0]  ;;  %v6101_v55 = vor.u32 %v6755_v50, %v6098_v21  ;;  %v6815_v38 = vld [vmem:[%s7811_s29 + $0xb0c] sm:$0xf] }
 0x380   : > { %4367 = vmatpush.bf16.msrb.mxu2 %v6293_v46  ;;  %4380 = vmatpush.bf16.msrb.mxu3 %v6421_v62  ;;  %v6787_v46 = vld [vmem:[%s7811_s29 + $0xa2c] sm:$0xf]  ;;  %v6226_v62 = vld [vmem:[%s7811_s29 + $0xa38] sm:$0xf0]  ;;  %v6357_v20 = vor.u32 %v6819_v40, %v6354_v45 }
 0x381   : > { %v4456_v42 = vadd.f32 %v4455_v39, %v4454_v52  ;;  %v5954_v11 = vld [vmem:[%s7811_s29 + $0x818] sm:$0xf0]  ;;  %v9360_v3 = vld [vmem:[%s7839_s19 + $0x1] ss:$2 sm:$0xf] }
 0x382   : > { %v6082_v23 = vld [vmem:[%s7811_s29 + $0x918] sm:$0xf0]  ;;  %v5957_v33 = vor.u32 %v6719_v51, %v5954_v11  ;;  %v9364_v16 = vld [vmem:[%s7839_s19] ss:$2 sm:$0xf]  ;;  %v4575_v57 = vperm.slane %v9360_v3, 0 }
 0x383   : > { %4342 = vmatpush.bf16.msrb.mxu0 %v6021_v58  ;;  %4355 = vmatpush.bf16.msrb.mxu1 %v6149_v0  ;;  %v4470_v58 = vmul.f32 %v4456_v42, %v7901_v31  ;;  %v6229_v0 = vor.u32 %v6787_v46, %v6226_v62  ;;  %v6210_v29 = vld [vmem:[%s7811_s29 + $0xa18] sm:$0xf0]  ;;  %v6085_v1 = vor.u32 %v6751_v56, %v6082_v23  ;;  %v4555_v5 = vperm.slane %v9364_v16, 0 }
 0x384   : > { %4368 = vmatpush.bf16.msrb.mxu2 %v6277_v17  ;;  %4381 = vmatpush.bf16.msrb.mxu3 %v6405_v28  ;;  %v4116_v17 = vpop.f32.mrf.mxu2  ;;  %v4129_v28 = vpop.f32.mrf.mxu3  ;;  %v6338_v41 = vld [vmem:[%s7811_s29 + $0xb18] sm:$0xf0]  ;;  %v4576_v9 = vperm.slane %v9360_v3, 1  ;;  %v4556_v50 = vperm.slane %v9364_v16, 1  ;;  %s4616_s29 = sshll.u32 %s4612_s20, 4  ;;  %s4617_s29 = int_to_ptr.hbm [resolvable:$true] %s4616_s29 }
 0x385   : > { %v4474_v61 = vadd.f32 1e-05, %v4470_v58  ;;  %v4563_v21 = vmul.f32 %v4555_v5, %v9172_v25  ;;  %s7405_s7 = sshra.s32 %s4617_s29, 4  ;;  %s7406_s7 = int_to_ptr.hbm [resolvable:$true] %s7405_s7 }
 0x386   : > { %s7407_s16 = scalar_lea.hbm %s7406_s7, 32  ;;  %p7412_p6 = scmp.lt.s32.totalorder %s7406_s7, %s9567_s22 }
 0x387   : > { %4343 = vmatpush.bf16.msrb.mxu0 %v6005_v30  ;;  %4356 = vmatpush.bf16.msrb.mxu1 %v6133_v48  ;;  %7021 = vrsqrt.f32 %v4474_v61  ;;  %v6213_v30 = vor.u32 %v6783_v53, %v6210_v29  ;;  %v6341_v48 = vor.u32 %v6815_v38, %v6338_v41  ;;  %vm4493_vm14 = vweird.f32 %v4474_v61  ;;  %p7408_p13 = scmp.ne.s32.totalorder %s7406_s7, %s7407_s16  ;;  %p7413_p9 = scmp.lt.s32.totalorder %s7411_s21, %s7407_s16 }
 0x388   : > { %4369 = vmatpush.bf16.msrb.mxu2 %v6261_v22  ;;  %4382 = vmatpush.bf16.msrb.mxu3 %v6389_v24 }
 0x389   : > { %p7409_p8 = pnand %p7408_p13, %p7652_p0  ;;  %p7414_p11 = por %p7413_p9, %p7412_p6 }
 0x38b   : > { %4344 = vmatpush.bf16.msrb.mxu0 %v5989_v44  ;;  %4357 = vmatpush.bf16.msrb.mxu1 %v6117_v6  ;;  %v4089_v6 = vadd.f32 %v9314_v18, %v8552_v43  ;;  %p7410_p10 = pneg %p7409_p8 }
 0x38c   : > { %4370 = vmatpush.bf16.msrb.mxu2 %v6245_v36  ;;  %4383 = vmatpush.bf16.msrb.mxu3 %v6373_v49 }
 0x38d   : > { %v7022_v12 = vpop.eup %7021  ;;  %v4102_v36 = vadd.f32 %v9316_v54, %v4089_v6  ;;  %p7415_p3 = pnand %p7414_p11, %p7410_p10 }
 0x38e   : > { %v4488_v34 = vmul.f32 %v7022_v12, %v4474_v61  ;;  %vm4494_vm10 = vweird.f32 %v7022_v12 }
 0x38f   : > { %4345 = vmatpush.bf16.msrb.mxu0 %v5973_v59  ;;  %4358 = vmatpush.bf16.msrb.mxu1 %v6101_v55  ;;  %vm4495_vm15 = vmor %vm4493_vm14, %vm4494_vm10  ;;  %v4115_v62 = vadd.f32 %v9331_v4, %v4102_v36 }
 0x390   : > { %4371 = vmatpush.bf16.msrb.mxu2 %v6229_v0  ;;  %4384 = vmatpush.bf16.msrb.mxu3 %v6357_v20  ;;  %v4489_v13 = vmul.f32 %v7022_v12, %v4488_v34  ;;  %v9386_v20 = vld [vmem:[%s644_s17] sm:$0xf] }
 0x391   : > { %v4128_v42 = vadd.f32 %v9333_v14, %v4115_v62  ;;  %v4395_v4 = vperm.slane %v9386_v20, 2 }
 0x392   : > { %v4490_v35 = vmul.f32 0.5, %v4489_v13 }
 0x393   : > { %4346 = vmatpush.bf16.msrb.mxu0 %v5957_v33  ;;  %4359 = vmatpush.bf16.msrb.mxu1 %v6085_v1  ;;  %v4140_v22 = vpop.f32.mrf.mxu0  ;;  %v4153_v24 = vpop.f32.mrf.mxu1  ;;  %v4403_v14 = vmul.f32 %v4395_v4, %v8622_v27  ;;  %v4577_v4 = vperm.slane %v9360_v3, 2 }
 0x394   : > { %4372 = vmatpush.bf16.msrb.mxu2 %v6213_v30  ;;  %4385 = vmatpush.bf16.msrb.mxu3 %v6341_v48  ;;  %v4491_v60 = vsub.f32 1.5, %v4490_v35  ;;  %v4141_v59 = vadd.f32 %v4140_v22, %v4128_v42 }
 0x396   : > { %4347 = vmatmul.bf16.vlgmr.msrb.gmra.mxu0 %v8645_v2  ;;  %4360 = vmatmul.bf16.vlgmr.msrb.gmra.mxu1 %v8647_v10  ;;  %v4492_v26 = vmul.f32 %v7022_v12, %v4491_v60  ;;  %v4524_v2 = vperm.slane %v9125_v37, 1  ;;  %v4154_v55 = vadd.f32 %v4153_v24, %v4141_v59 }
 0x397   : > { %4373 = vmatmul.bf16.vlgmr.msrb.gmra.mxu2 %v8649_v15  ;;  %4386 = vmatmul.bf16.vlgmr.msrb.gmra.mxu3 %v8653_v7  ;;  %v4538_v7 = vperm.slane %v9144_v19, 1 }
 0x398   : > { %v4496_v10 = vsel %vm4495_vm15, %v7022_v12, %v4492_v26 }
 0x399   : > { %v4518_v15 = vmul.f32 %v4496_v10, %v9304_v47  ;;  %v4583_v47 = vmul.f32 %v4575_v57, %v9172_v25 }
 0x39b   : > { %v4532_v44 = vmul.f32 %v4524_v2, %v4518_v15  ;;  %v4142_v63 = vpop.f32.mrf.mxu0  ;;  %v4155_v37 = vpop.f32.mrf.mxu1 }
 0x39c   : > { %v4166_v8 = vpop.f32.mrf.mxu2  ;;  %v4179_v52 = vpop.f32.mrf.mxu3 }
 0x39d   : > { %v4546_v39 = vadd.f32 %v4538_v7, %v4532_v44  ;;  %v4167_v51 = vadd.f32 %v4166_v8, %v4154_v55  ;;  %v4539_v55 = vperm.slane %v9144_v19, 2 }
 0x39f   : > { %4550 = vst [vmem:[%s9181_s25 + $0x8] sm:$0xff] %v4546_v39  ;;  %v4584_v49 = vmul.f32 %v4576_v9, %v4546_v39  ;;  %v4564_v46 = vmul.f32 %v4556_v50, %v4546_v39  ;;  %v4180_v54 = vadd.f32 %v4179_v52, %v4167_v51 }
 0x3a1   : > { %v9379_v43 = vadd.f32 %v4584_v49, %v4583_v47  ;;  %v9381_v18 = vadd.f32 %v4564_v46, %v4563_v21 }
 0x3a4   : > { %v4168_v40 = vpop.f32.mrf.mxu2  ;;  %v4181_v45 = vpop.f32.mrf.mxu3 }
 0x3a5   : > { %v9394_v40 = vld [vmem:[%s689_s28] sm:$0xf] }
 0x3a6   : > { %v4525_v45 = vperm.slane %v9394_v40, 2 }
 0x3b3   : > { %v4192_v11 = vpop.f32.mrf.mxu0  ;;  %v4205_v58 = vpop.f32.mrf.mxu1 }
 0x3b4   : > { %v4193_v0 = vadd.f32 %v4192_v11, %v4180_v54 }
 0x3b6   : > { %v4206_v25 = vadd.f32 %v4205_v58, %v4193_v0 }
 0x3bb   : > { %v4194_v17 = vpop.f32.mrf.mxu0  ;;  %v4207_v28 = vpop.f32.mrf.mxu1 }
 0x3bc   : > { %v4218_v56 = vpop.f32.mrf.mxu2  ;;  %v4231_v23 = vpop.f32.mrf.mxu3 }
 0x3bd   : > { %v4219_v53 = vadd.f32 %v4218_v56, %v4206_v25  ;;  %v4557_v56 = vperm.slane %v9364_v16, 2 }
 0x3bf   : > { %v4232_v29 = vadd.f32 %v4231_v23, %v4219_v53 }
 0x3c1   : > { %v4407_v38 = vadd.f32 %v4403_v14, %v4232_v29 }
 0x3c3   : > { %v4421_v41 = vrot.slane %v4407_v38, 4 }
 0x3c4   : > { %v4220_v61 = vpop.f32.mrf.mxu2  ;;  %v4233_v33 = vpop.f32.mrf.mxu3 }
 0x3c5   : > { %v4422_v1 = vadd.f32 %v4421_v41, %v4407_v38 }
 0x3c7   : > { %v4423_v30 = vrot.slane %v4422_v1, 2 }
 0x3c9   : > { %v4424_v48 = vadd.f32 %v4423_v30, %v4422_v1 }
 0x3cb   : > { %v4425_v12 = vrot.slane %v4424_v48, 1 }
 0x3cd   : > { %v4426_v34 = vadd.f32 %v4425_v12, %v4424_v48 }
 0x3cf   : > { %v4435_v13 = vmul.f32 %v4426_v34, %v7901_v31 }
 0x3d1   : > { %v4439_v35 = vsub.f32 %v4407_v38, %v4435_v13 }
 0x3d3   : > { %v4443_v22 = vmul.f32 %v4439_v35, %v4439_v35  ;;  %v4244_v24 = vpop.f32.mrf.mxu0  ;;  %v4257_v60 = vpop.f32.mrf.mxu1 }
 0x3d4   : > { %v4245_v51 = vadd.f32 %v4244_v24, %v8557_v32 }
 0x3d5   : > { %v4457_v26 = vrot.slane %v4443_v22, 4 }
 0x3d6   : > { %v4258_v53 = vadd.f32 %v4257_v60, %v4245_v51  ;;  %v4526_v51 = vperm.slane %v9394_v40, 3 }
 0x3d7   : > { %v4458_v2 = vadd.f32 %v4457_v26, %v4443_v22 }
 0x3d9   : > { %v4459_v10 = vrot.slane %v4458_v2, 2 }
 0x3db   : > { %v4460_v8 = vadd.f32 %v4459_v10, %v4458_v2  ;;  %v4246_v52 = vpop.f32.mrf.mxu0  ;;  %v4259_v57 = vpop.f32.mrf.mxu1 }
 0x3dc   : > { %v4270_v15 = vpop.f32.mrf.mxu2  ;;  %v4283_v7 = vpop.f32.mrf.mxu3 }
 0x3dd   : > { %v4461_v5 = vrot.slane %v4460_v8, 1  ;;  %v4271_v29 = vadd.f32 %v4270_v15, %v4258_v53 }
 0x3df   : > { %v4462_v44 = vadd.f32 %v4461_v5, %v4460_v8  ;;  %v4284_v41 = vadd.f32 %v4283_v7, %v4271_v29 }
 0x3e1   : > { %v4471_v6 = vmul.f32 %v4462_v44, %v7901_v31 }
 0x3e3   : > { %v4475_v9 = vadd.f32 1e-05, %v4471_v6 }
 0x3e4   : > { %v4272_v63 = vpop.f32.mrf.mxu2  ;;  %v4285_v37 = vpop.f32.mrf.mxu3 }
 0x3e5   : > { %7023 = vrsqrt.f32 %v4475_v9  ;;  %vm4503_vm0 = vweird.f32 %v4475_v9 }
 0x3eb   : > { %v7024_v50 = vpop.eup %7023 }
 0x3ec   : > { %v4498_v39 = vmul.f32 %v7024_v50, %v4475_v9  ;;  %vm4504_vm12 = vweird.f32 %v7024_v50 }
 0x3ed   : > { %vm4505_vm1 = vmor %vm4503_vm0, %vm4504_vm12 }
 0x3ee   : > { %v4499_v47 = vmul.f32 %v7024_v50, %v4498_v39 }
 0x3f0   : > { %v4500_v36 = vmul.f32 0.5, %v4499_v47 }
 0x3f2   : > { %v4501_v46 = vsub.f32 1.5, %v4500_v36 }
 0x3f3   : > { %v4296_v49 = vpop.f32.mrf.mxu0  ;;  %v4309_v21 = vpop.f32.mrf.mxu1 }
 0x3f4   : > { %v4502_v62 = vmul.f32 %v7024_v50, %v4501_v46  ;;  %v4297_v61 = vadd.f32 %v4296_v49, %v4284_v41 }
 0x3f6   : > { %v4506_v42 = vsel %vm4505_vm1, %v7024_v50, %v4502_v62  ;;  %v4310_v33 = vadd.f32 %v4309_v21, %v4297_v61 }
 0x3f7   : > { %v4519_v59 = vmul.f32 %v4506_v42, %v4439_v35  ;;  %v4396_v35 = vperm.slane %v9386_v20, 3 }
 0x3f9   : > { %v4533_v25 = vmul.f32 %v4525_v45, %v4519_v59  ;;  %v4404_v2 = vmul.f32 %v4396_v35, %v8622_v27 }
 0x3fb   : > { %v4298_v58 = vpop.f32.mrf.mxu0  ;;  %v4311_v0 = vpop.f32.mrf.mxu1  ;;  %v4547_v23 = vadd.f32 %v4539_v55, %v4533_v25  ;;  %v4578_v25 = vperm.slane %v9360_v3, 3 }
 0x3fc   : > { %v4322_v54 = vpop.f32.mrf.mxu2  ;;  %v4335_v11 = vpop.f32.mrf.mxu3 }
 0x3fd   : > { %4551 = vst [vmem:[%s9181_s25 + $0x10] sm:$0xff] %v4547_v23  ;;  %v4585_v17 = vmul.f32 %v4577_v4, %v4547_v23  ;;  %v4565_v28 = vmul.f32 %v4557_v56, %v4547_v23  ;;  %v4323_v1 = vadd.f32 %v4322_v54, %v4310_v33  ;;  %v4558_v4 = vperm.slane %v9364_v16, 3 }
 0x3ff   : > { %v9403_v14 = vadd.f32 %v9379_v43, %v4585_v17  ;;  %v9406_v32 = vadd.f32 %v9381_v18, %v4565_v28  ;;  %v4336_v30 = vadd.f32 %v4335_v11, %v4323_v1  ;;  %v7030_v11 = vld [vmem:[%s699_s5] sm:$0xf] }
 0x400   : > { %v4540_v58 = vperm.slane %v7030_v11, 3 }
 0x404   : > { %v4324_v19 = vpop.f32.mrf.mxu2  ;;  %v4337_v38 = vpop.f32.mrf.mxu3 }
 0x413   : > { %v4348_v48 = vpop.f32.mrf.mxu0  ;;  %v4361_v12 = vpop.f32.mrf.mxu1 }
 0x414   : > { %v4349_v34 = vadd.f32 %v4348_v48, %v4336_v30 }
 0x416   : > { %v4362_v13 = vadd.f32 %v4361_v12, %v4349_v34 }
 0x41a   : > { %v4374_v22 = vpop.f32.mrf.mxu2  ;;  %v4387_v24 = vpop.f32.mrf.mxu3 }
 0x41b   : > { %v4375_v43 = vadd.f32 %v4374_v22, %v4362_v13  ;;  %v4350_v60 = vpop.f32.mrf.mxu0  ;;  %v4363_v26 = vpop.f32.mrf.mxu1 }
 0x41d   : > { %v4388_v18 = vadd.f32 %v4387_v24, %v4375_v43 }
 0x41f   : > { %v4408_v10 = vadd.f32 %v4404_v2, %v4388_v18 }
 0x421   : > { %v4427_v15 = vrot.slane %v4408_v10, 4 }
 0x422   : > { %v4376_v7 = vpop.f32.mrf.mxu2  ;;  %v4389_v8 = vpop.f32.mrf.mxu3 }
 0x423   : > { %v4428_v52 = vadd.f32 %v4427_v15, %v4408_v10 }
 0x425   : > { %v4429_v57 = vrot.slane %v4428_v52, 2 }
 0x427   : > { %v4430_v5 = vadd.f32 %v4429_v57, %v4428_v52 }
 0x429   : > { %v4431_v44 = vrot.slane %v4430_v5, 1 }
 0x42b   : > { %v4432_v6 = vadd.f32 %v4431_v44, %v4430_v5 }
 0x42d   : > { %v4436_v63 = vmul.f32 %v4432_v6, %v7901_v31 }
 0x42f   : > { %v4440_v20 = vsub.f32 %v4408_v10, %v4436_v63 }
 0x431   : > { %v4444_v37 = vmul.f32 %v4440_v20, %v4440_v20 }
 0x433   : > { %v4463_v9 = vrot.slane %v4444_v37, 4 }
 0x435   : > { %v4464_v50 = vadd.f32 %v4463_v9, %v4444_v37 }
 0x437   : > { %v4465_v39 = vrot.slane %v4464_v50, 2 }
 0x439   : > { %v4466_v47 = vadd.f32 %v4465_v39, %v4464_v50 }
 0x43b   : > { %v4467_v36 = vrot.slane %v4466_v47, 1 }
 0x43d   : > { %v4468_v27 = vadd.f32 %v4467_v36, %v4466_v47 }
 0x43f   : > { %v4472_v49 = vmul.f32 %v4468_v27, %v7901_v31 }
 0x441   : > { %v4476_v21 = vadd.f32 1e-05, %v4472_v49 }
 0x443   : > { %7025 = vrsqrt.f32 %v4476_v21  ;;  %vm4513_vm7 = vweird.f32 %v4476_v21 }
 0x449   : > { %v7026_v46 = vpop.eup %7025 }
 0x44a   : > { %v4508_v62 = vmul.f32 %v7026_v46, %v4476_v21  ;;  %vm4514_vm2 = vweird.f32 %v7026_v46 }
 0x44b   : > { %vm4515_vm3 = vmor %vm4513_vm7, %vm4514_vm2 }
 0x44c   : > { %v4509_v45 = vmul.f32 %v7026_v46, %v4508_v62 }
 0x44e   : > { %v4510_v42 = vmul.f32 0.5, %v4509_v45 }
 0x450   : > { %v4511_v59 = vsub.f32 1.5, %v4510_v42 }
 0x452   : > { %v4512_v55 = vmul.f32 %v7026_v46, %v4511_v59 }
 0x454   : > { %v4516_v31 = vsel %vm4515_vm3, %v7026_v46, %v4512_v55 }
 0x455   : > { %v4520_v54 = vmul.f32 %v4516_v31, %v4440_v20 }
 0x457   : > { %v4534_v0 = vmul.f32 %v4526_v51, %v4520_v54 }
 0x459   : > { %v4548_v56 = vadd.f32 %v4540_v58, %v4534_v0 }
 0x45b   : > { %4552 = vst [vmem:[%s9181_s25 + $0x18] sm:$0xff] %v4548_v56  ;;  %v4586_v40 = vmul.f32 %v4578_v25, %v4548_v56  ;;  %v4566_v23 = vmul.f32 %v4558_v4, %v4548_v56 }
 0x45c   : > { %7418 = shalt.err (!%p7415_p3)
}
 0x45d   : > { %6885 = dma.vmem_to_hbm [thread:$0]  (%p7652_p0), %s4615_s4, 512, %s4617_s29, %s4597_s11   ;;  %v4589_v3 = vadd.f32 %v9403_v14, %v4586_v40  ;;  %v4569_v16 = vadd.f32 %v9406_v32, %v4566_v23  ;;  %v1298_v53 = vlaneseq  ;;  %vm4594_vm11 = vcmask 15360  }
 0x45e   : > { %p781_p7 = scmp.lt.s32.totalorder %s9528_s27, 1  ;;  %s9569_s12 = sld [smem:[#allocation51_spill]] }
 0x45f   : > { %4590 = vadd.xlane.f32.xlu2 %v4589_v3  ;;  %4570 = vadd.xlane.f32.xlu1 %v4569_v16  ;;  %v1299_v17 = vand.u32 127, %v1298_v53 }
 0x460   : > { %s9578_s27 = smov (!%p781_p7, %s9528_s27), 1 }
 0x461   : > { %s4917_s24 = sshll.u32 %s9578_s27, 3  ;;  %vm4592_vm9 = vcmp.eq.s32.totalorder %v1299_v17, 0 }
 0x464   : > { %s784_s25 = scalar_lea.vmem %s9569_s12, %s4917_s24 }
 0x4d2   : > { %v4591_v28 = vpop.xlane.xlu2 %4590  ;;  %v4571_v29 = vpop.xlane.xlu1 %4570 }
 0x4d3   : > { %v4593_v19 = vsel %vm4592_vm9, %v4571_v29, %v4591_v28 }
 0x4d4   : > { %4595 = vst.msk [vmem:[%s784_s25] sm:$0xff] %vm4594_vm11, %v4593_v19 }
 0x4d5 PF: > { %s9570_s13 = sld [smem:[#allocation33_spill]]  ;;  %p9572_p0 = scmp.ge.s32.totalorder %s7485_s9, 2 }
 0x4d7   : > { %p6926_p12 = pnand %p9572_p0, %p7660_p4 }
 0x4d9   : > { %p6927_p2 = pneg %p6926_p12 }
 0x4db   : > { %s4631_s26 = sand.u32 1, %s9570_s13  }
 0x4dc   : > { %s4632_s27 = scalar_lea.sflag [#allocation5], %s4631_s26 }
 0x4dd   : > { %7468 = dma.done.wait (%p6927_p2), %s4632_s27, 512  }
 0x4de   : > { %7470 = vsyncadd (%p6927_p2), %s4632_s27, 4294966784  ;;  %s9573_s9 = sld [smem:[#allocation38_spill]] }
 0x4df   : > { %s9574_s15 = sld [smem:[#allocation34_spill]] }
 0x4e0   : > { %s9575_s16 = sld [smem:[#allocation35_spill]] }
 0x4e1   : > { %s9576_s17 = sld [smem:[#allocation39_spill]] }
 0x4e4   : > { %p42_p5 = scmp.ge.s32.totalorder %s9573_s9, 4  }
 0x4e6   :  { %44 = sbr.rel (!%p42_p5) target bundleno = 24 (0x18), region = 216 }
 0x4eb   :  { %4645 = vsyncpa [#allocation4], 1 }
 0x4ec   :  { %4647 = vsyncpa [#allocation4 + $0x1], 1 }
 0x4ed   :  { %4648 = vsyncpa [#allocation7], 1 }
 0x4ee   :  { %4650 = vsyncpa [#allocation7 + $0x1], 1 }
 0x4ef   :  { %4651 = vsyncpa [#allocation10], 1 }
 0x4f0   :  { %4653 = vsyncpa [#allocation10 + $0x1], 1 }
 0x4f1   :  { %4654 = vsyncpa [#allocation13], 1 }
 0x4f2   :  { %4655 = vsyncpa [#allocation16], 1 }
 0x4f3   :  { %4656 = vsyncpa [#allocation19], 1 }
 0x4f4   :  { %4658 = vsyncpa [#allocation19 + $0x1], 1 }
 0x4f5   :  { %4659 = vsyncpa [#allocation22], 1 }
 0x4f6   :  { %4661 = vsyncpa [#allocation22 + $0x1], 1 }
 0x4f7   :  { %4662 = vsyncpa [#allocation5], 1 }
 0x4f8   :  { %4664 = vsyncpa [#allocation5 + $0x1], 1 }

</bundles_post_ra>
